<compile_context>
chip_gen: v7x
topology: tpu7x:2x2x1
jax: 0.10.0
libtpu: 0.0.40
codegen_flags: <defaults>
</compile_context>

<pallas_src>
import math
import functools

import jax
import jax.numpy as jnp
from jax.experimental import pallas as pl
from jax.experimental.pallas import tpu as pltpu


_DIAG = (0, 4, 8)                       # diagonal planes (p = 3i + j)
_PAIRS = ((1, 3), (2, 6), (5, 7))       # (upper, lower) off-diagonal plane pairs


def _bdot(x, w):
    """MXU matmul: bf16 operands, f32 accumulation."""
    return jnp.dot(x.astype(jnp.bfloat16), w, preferred_element_type=jnp.float32)


# ----------------------------------------------------------------------------
# Fused kernel: edge MLP + cutoff, normalize, structured decompose+linears,
# message passing (two wide bf16 one-hot matmuls), fused 3x3 products,
# second decompose+linears, residual with matrix square.
# ----------------------------------------------------------------------------
def _interaction_kernel(cutoff_lower, cutoff_upper, group,
                        x_ref, attr_ref, dist_ref, g_ref, s_ref,
                        w1e_ref, b1e_ref, w2e_ref, b2e_ref, w3e_ref, b3e_ref,
                        w1n_ref, b1n_ref, w3n_ref, b3n_ref, o_ref):
    f32 = jnp.float32
    bf16 = jnp.bfloat16
    H = o_ref.shape[1] // 9

    # ---------------- edge MLP (3 x Linear + SiLU) + cosine cutoff ---------------
    h = jax.nn.silu(_bdot(attr_ref[...], w1e_ref[...]) + b1e_ref[...])
    h = jax.nn.silu(_bdot(h, w2e_ref[...]) + b2e_ref[...])
    h = jax.nn.silu(_bdot(h, w3e_ref[...]) + b3e_ref[...])                     # [E, 3H]
    d = dist_ref[...]                                                           # [E, 1]
    if cutoff_lower > 0:
        c = 0.5 * (jnp.cos(math.pi * (2.0 * (d - cutoff_lower)
                                      / (cutoff_upper - cutoff_lower) + 1.0)) + 1.0)
        c = jnp.where((d < cutoff_upper) & (d > cutoff_lower), c, 0.0)
    else:
        c = 0.5 * (jnp.cos(d * math.pi / cutoff_upper) + 1.0)
        c = jnp.where(d < cutoff_upper, c, 0.0)
    f3 = h * c                                            # [E, 3H] lane blocks [fI|fA|fS]
    fI, fA, fS = f3[:, :H], f3[:, H:2 * H], f3[:, 2 * H:3 * H]

    # ---------------- normalize input tensor (per-plane list, no stacks) ---------
    xs = [x_ref[p] for p in range(9)]                                           # 9 x [N, H]
    ss = xs[0] * xs[0]
    for p in range(1, 9):
        ss = ss + xs[p] * xs[p]
    inv = pl.reciprocal(jnp.sqrt(ss) + 1.0, approx=True)                        # [N, H]
    xn = [xs[p] * inv for p in range(9)]

    # ---------------- stage 1: decompose + channel linears (fused, structured) ---
    wI1, wA1, wS1 = w1n_ref[0], w1n_ref[1], w1n_ref[2]                          # bf16 [H,H]
    bI1, bA1, bS1 = b1n_ref[0], b1n_ref[1], b1n_ref[2]                          # f32 [1,H]

    tr3 = (xn[0] + xn[4] + xn[8]) * (1.0 / 3.0)
    iI = _bdot(tr3, wI1)                                                        # I irrep (1 dot)
    sd = {p: _bdot(xn[p] - tr3, wS1) for p in _DIAG}                            # S diag (3 dots)
    aw = {p: _bdot(0.5 * (xn[p] - xn[q]), wA1) for p, q in _PAIRS}              # A upper (3 dots)
    so = {p: _bdot(0.5 * (xn[p] + xn[q]), wS1) for p, q in _PAIRS}              # S upper (3 dots)

    bsum1 = bI1 + bA1 + bS1
    Y = [None] * 9
    for p in _DIAG:
        Y[p] = iI + sd[p] + bsum1
    for p, q in _PAIRS:
        Y[p] = aw[p] + so[p] + bsum1
        Y[q] = -aw[p] + so[p] + bsum1

    # ---------------- message passing: 2 wide bf16 one-hot matmuls ---------------
    # gather only the 10 independent planes: [iI | aw1 aw2 aw5 | sd0 sd4 sd8 | so1 so2 so5]
    slab = jnp.concatenate(
        [v.astype(bf16) for v in (iI, aw[1], aw[2], aw[5],
                                  sd[0], sd[4], sd[8], so[1], so[2], so[5])], axis=1)
    g = jnp.dot(g_ref[...], slab, preferred_element_type=f32)                   # [E, 10H]

    def gsl(k):
        return g[:, k * H:(k + 1) * H]

    g_iI = gsl(0)
    g_aw = {1: gsl(1), 2: gsl(2), 5: gsl(3)}
    g_sd = {0: gsl(4), 4: gsl(5), 8: gsl(6)}
    g_so = {1: gsl(7), 2: gsl(8), 5: gsl(9)}

    # per-edge messages, plane by plane, at lane-aligned offsets (no fac concat)
    cb = fI * bI1 + fA * bA1 + fS * bS1                                         # bias part
    tI = fI * g_iI
    m = [None] * 9
    for p in _DIAG:
        m[p] = cb + tI + fS * g_sd[p]
    for p, q in _PAIRS:
        u = fA * g_aw[p]
        v = fS * g_so[p]
        m[p] = cb + u + v
        m[q] = cb - u + v

    m_slab = jnp.concatenate([m[p].astype(bf16) for p in range(9)], axis=1)     # [E, 9H]
    msg_flat = jnp.dot(s_ref[...], m_slab, preferred_element_type=f32)          # [N, 9H]
    msg = [msg_flat[:, p * H:(p + 1) * H] for p in range(9)]

    # ---------------- 3x3 products (fused accumulation, pure VPU) ----------------
    new = []
    for i in range(3):
        for j in range(3):
            if group == "O(3)":
                acc = msg[3 * i] * Y[j] + Y[3 * i] * msg[j]
                acc = acc + msg[3 * i + 1] * Y[3 + j] + Y[3 * i + 1] * msg[3 + j]
                acc = acc + msg[3 * i + 2] * Y[6 + j] + Y[3 * i + 2] * msg[6 + j]
            else:  # "SO(3)"
                acc = 2.0 * (msg[3 * i] * Y[j]
                             + msg[3 * i + 1] * Y[3 + j]
                             + msg[3 * i + 2] * Y[6 + j])
            new.append(acc)

    # ---------------- stage 3: normalize, decompose + linears, dX ----------------
    # note: I+A+S of `new` equals `new`, so the Frobenius norm is taken on `new`.
    ss2 = new[0] * new[0]
    for p in range(1, 9):
        ss2 = ss2 + new[p] * new[p]
    invn = pl.reciprocal(jnp.sqrt(ss2) + 1.0, approx=True)

    wI3, wA3, wS3 = w3n_ref[0], w3n_ref[1], w3n_ref[2]
    bI3, bA3, bS3 = b3n_ref[0], b3n_ref[1], b3n_ref[2]

    trn = (new[0] + new[4] + new[8]) * (1.0 / 3.0)
    iI3 = _bdot(trn * invn, wI3)
    sd3 = {p: _bdot((new[p] - trn) * invn, wS3) for p in _DIAG}
    aw3 = {p: _bdot(0.5 * (new[p] - new[q]) * invn, wA3) for p, q in _PAIRS}
    so3 = {p: _bdot(0.5 * (new[p] + new[q]) * invn, wS3) for p, q in _PAIRS}

    bsum3 = bI3 + bA3 + bS3
    dX = [None] * 9
    for p in _DIAG:
        dX[p] = iI3 + sd3[p] + bsum3
    for p, q in _PAIRS:
        dX[p] = aw3[p] + so3[p] + bsum3
        dX[q] = -aw3[p] + so3[p] + bsum3

    # ---------------- residual Xn + dX + dX^2, lane-aligned per-plane stores ------
    for i in range(3):
        for j in range(3):
            p = 3 * i + j
            d2 = (dX[3 * i] * dX[j]
                  + dX[3 * i + 1] * dX[3 + j]
                  + dX[3 * i + 2] * dX[6 + j])
            o_ref[:, p * H:(p + 1) * H] = (xn[p] + dX[p] + d2).astype(o_ref.dtype)


# ----------------------------------------------------------------------------
# Wrapper: layout glue + one-hot construction + the single pallas_call.
# ----------------------------------------------------------------------------
def interaction_forward(X, edge_index, edge_weight, edge_attr, params,
                        cutoff_lower=0.0, cutoff_upper=4.5, group="O(3)"):
    Nn, H, _, _ = X.shape
    E = edge_index.shape[1]

    # dense one-hot gather / scatter matrices (bf16: 0/1 exact, half the DMA bytes)
    node_ids = jnp.arange(Nn)
    G = (edge_index[1][:, None] == node_ids[None, :]).astype(jnp.bfloat16)   # [E, Nn]
    Sc = (node_ids[:, None] == edge_index[0][None, :]).astype(jnp.bfloat16)  # [Nn, E]

    # layout: [N, H, 3, 3] -> [9, N, H]  (p = 3i+j on the leading dim)
    x9 = jnp.transpose(X, (2, 3, 0, 1)).reshape(9, Nn, H)

    # zero-pad the RBF features to the padded K of the first edge linear
    Kp = params["w1e"].shape[0]
    attr = jnp.pad(edge_attr, ((0, 0), (0, Kp - edge_attr.shape[1]))).astype(jnp.bfloat16)
    dist = edge_weight.reshape(E, 1).astype(jnp.float32)

    args = (x9, attr, dist, G, Sc,
            params["w1e"], params["b1e"], params["w2e"], params["b2e"],
            params["w3e_perm"], params["b3e_perm"],
            params["w1n"], params["b1n"], params["w3n"], params["b3n"])

    # vmem limit from actual buffer sizes (+ headroom for in-kernel temporaries)
    nbytes = sum(int(a.size) * a.dtype.itemsize for a in args) + Nn * 9 * H * 4
    vmem_limit = int(min(100 * 2 ** 20, max(32 * 2 ** 20, 8 * nbytes)))

    vmem = pl.BlockSpec(memory_space=pltpu.MemorySpace.VMEM)
    kern = functools.partial(_interaction_kernel, cutoff_lower, cutoff_upper, group)
    out = pl.pallas_call(
        kern,
        out_shape=jax.ShapeDtypeStruct((Nn, 9 * H), jnp.float32),
        in_specs=[vmem] * 15,
        out_specs=vmem,
        compiler_params=pltpu.CompilerParams(vmem_limit_bytes=vmem_limit),
    )(*args)

    # [N, 9H] (lane block p = 3i+j) -> [N, H, 3, 3]
    return out.reshape(Nn, 3, 3, H).transpose(0, 3, 1, 2)


# ----------------------------------------------------------------------------
# Deterministic parameter init (torch convention W: [out, in]) + kernel layout.
# ----------------------------------------------------------------------------
def init_params(key, num_rbf, H):
    ks = jax.random.split(key, 9)

    def lin(k, out_f, in_f):
        k1, k2 = jax.random.split(k)
        w = jax.random.normal(k1, (out_f, in_f), jnp.float32) / jnp.sqrt(float(in_f))
        b = jax.random.normal(k2, (out_f,), jnp.float32) * 0.1
        return w, b

    L1 = [lin(ks[i], H, H) for i in range(3)]
    L2 = [lin(ks[3], H, num_rbf), lin(ks[4], 2 * H, H), lin(ks[5], 3 * H, 2 * H)]
    L3 = [lin(ks[6 + i], H, H) for i in range(3)]

    bf16 = jnp.bfloat16
    # zero-pad the first edge linear along K to a multiple of 128 (MXU depth)
    Kp = 128 * max(1, -(-num_rbf // 128))
    w1e = jnp.zeros((Kp, H), jnp.float32).at[:num_rbf].set(L2[0][0].T)

    # permute cols of the last edge-linear so output col c*H+h == torch col 3h+c
    perm = jnp.array([3 * h + c for c in range(3) for h in range(H)], jnp.int32)
    params = {
        "w1n": jnp.stack([w.T for w, _ in L1]).astype(bf16),        # [3, H, H] bf16
        "b1n": jnp.stack([b[None, :] for _, b in L1]),              # [3, 1, H] f32
        "w3n": jnp.stack([w.T for w, _ in L3]).astype(bf16),
        "b3n": jnp.stack([b[None, :] for _, b in L3]),
        "w1e": w1e.astype(bf16), "b1e": L2[0][1][None, :],
        "w2e": L2[1][0].T.astype(bf16), "b2e": L2[1][1][None, :],
        "w3e_perm": L2[2][0].T[:, perm].astype(bf16),
        "b3e_perm": L2[2][1][perm][None, :],
    }
    torch_params = {"L1": L1, "L2": L2, "L3": L3}
    return params, torch_params


# ----------------------------------------------------------------------------
# Pure-JAX f32 reference mirroring the PyTorch module (for verification).
# ----------------------------------------------------------------------------
def reference_forward(X, edge_index, edge_weight, edge_attr, tp,
                      cutoff_lower=0.0, cutoff_upper=4.5, group="O(3)"):
    def tensor_norm(t):
        return jnp.sqrt(jnp.sum(t * t, axis=(-2, -1)))

    def decompose(t):
        eye = jnp.eye(3, dtype=t.dtype)
        I = jnp.trace(t, axis1=-2, axis2=-1)[..., None, None] / 3.0 * eye
        A = 0.5 * (t - jnp.swapaxes(t, -1, -2))
        S = 0.5 * (t + jnp.swapaxes(t, -1, -2)) - I
        return I, A, S

    def chan_lin(t, wb):
        w, b = wb
        return jnp.einsum("nhij,gh->ngij", t, w) + b[None, :, None, None]

    def cutoff(d):
        if cutoff_lower > 0:
            c = 0.5 * (jnp.cos(math.pi * (2 * (d - cutoff_lower)
                                          / (cutoff_upper - cutoff_lower) + 1.0)) + 1.0)
            return c * (d < cutoff_upper) * (d > cutoff_lower)
        c = 0.5 * (jnp.cos(d * math.pi / cutoff_upper) + 1.0)
        return c * (d < cutoff_upper)

    X = X / (tensor_norm(X) + 1)[..., None, None]
    I, A, S = decompose(X)
    I = chan_lin(I, tp["L1"][0]); A = chan_lin(A, tp["L1"][1]); S = chan_lin(S, tp["L1"][2])
    Y = I + A + S
    ea = edge_attr
    for wb in tp["L2"]:
        ea = jax.nn.silu(ea @ wb[0].T + wb[1])
    C = cutoff(edge_weight)
    ea = (ea * C[:, None]).reshape(ea.shape[0], -1, 3)

    def mp(factor, tensor):
        message = factor[..., None, None] * tensor[edge_index[1]]
        return jnp.zeros_like(tensor).at[edge_index[0]].add(message)

    msg = mp(ea[..., 0], I) + mp(ea[..., 1], A) + mp(ea[..., 2], S)
    if group == "O(3)":
        new = jnp.matmul(msg, Y) + jnp.matmul(Y, msg)
    else:
        new = 2 * jnp.matmul(msg, Y)
    I, A, S = decompose(new)
    norm = (tensor_norm(I + A + S) + 1)[..., None, None]
    I, A, S = I / norm, A / norm, S / norm
    I = chan_lin(I, tp["L3"][0]); A = chan_lin(A, tp["L3"][1]); S = chan_lin(S, tp["L3"][2])
    dX = I + A + S
    return X + dX + jnp.matmul(dX, dX)


if __name__ == "__main__":
    H = 128         # hidden_channels (lane-aligned -> unmasked stores, aligned slices)
    num_rbf = 32
    Nn = 8          # N + 1 nodes
    E = 64          # num_pairs

    key = jax.random.PRNGKey(0)
    k1, k2, k3, k4, kp = jax.random.split(key, 5)

    X = jax.random.normal(k1, (Nn, H, 3, 3), jnp.float32)
    edge_index = jax.random.randint(k2, (2, E), 0, Nn)
    edge_weight = jax.random.uniform(k3, (E,), jnp.float32, 0.0, 5.0)
    edge_attr = jax.random.normal(k4, (E, num_rbf), jnp.float32)

    params, torch_params = init_params(kp, num_rbf, H)

    out = interaction_forward(X, edge_index, edge_weight, edge_attr, params,
                              cutoff_lower=0.0, cutoff_upper=4.5, group="O(3)")
    out = jax.block_until_ready(out)

    ref = reference_forward(X, edge_index, edge_weight, edge_attr, torch_params,
                            cutoff_lower=0.0, cutoff_upper=4.5, group="O(3)")
    assert out.shape == (Nn, H, 3, 3)
    assert bool(jnp.all(jnp.isfinite(out)))
    assert float(jnp.max(jnp.abs(out - ref))) < 5e-2
    print("KERNEL_OK")
</pallas_src>

<mosaic_0001>
module attributes {stable_mosaic.version = 11 : i64} {
  func.func @_interaction_kernel(%arg0: memref<9x8x128xf32, #tpu.memory_space<vmem>>, %arg1: memref<64x128xbf16, #tpu.memory_space<vmem>>, %arg2: memref<64x1xf32, #tpu.memory_space<vmem>>, %arg3: memref<64x8xbf16, #tpu.memory_space<vmem>>, %arg4: memref<8x64xbf16, #tpu.memory_space<vmem>>, %arg5: memref<128x128xbf16, #tpu.memory_space<vmem>>, %arg6: memref<1x128xf32, #tpu.memory_space<vmem>>, %arg7: memref<128x256xbf16, #tpu.memory_space<vmem>>, %arg8: memref<1x256xf32, #tpu.memory_space<vmem>>, %arg9: memref<256x384xbf16, #tpu.memory_space<vmem>>, %arg10: memref<1x384xf32, #tpu.memory_space<vmem>>, %arg11: memref<3x128x128xbf16, #tpu.memory_space<vmem>>, %arg12: memref<3x1x128xf32, #tpu.memory_space<vmem>>, %arg13: memref<3x128x128xbf16, #tpu.memory_space<vmem>>, %arg14: memref<3x1x128xf32, #tpu.memory_space<vmem>>, %arg15: memref<8x1152xf32, #tpu.memory_space<vmem>>) attributes {dimension_semantics = [], scalar_prefetch = 0 : i64, scratch_operands = 0 : i64, tpu.core_type = #tpu.core_type<tc>} {
    %c0 = arith.constant 0 : index
    %c0_0 = arith.constant 0 : index
    %0 = vector.load %arg1[%c0, %c0_0] : memref<64x128xbf16, #tpu.memory_space<vmem>>, vector<64x128xbf16>
    %c0_1 = arith.constant 0 : index
    %c0_2 = arith.constant 0 : index
    %1 = vector.load %arg5[%c0_1, %c0_2] : memref<128x128xbf16, #tpu.memory_space<vmem>>, vector<128x128xbf16>
    %cst = arith.constant dense<0.000000e+00> : vector<64x128xf32>
    %2 = tpu.matmul %0, %1, %cst {dimension_numbers = #tpu.dot_dimension_numbers<[1], [0], [0], [1], [0, 0, 1, 1], [], []>} : vector<64x128xbf16>, vector<128x128xbf16>, vector<64x128xf32> -> vector<64x128xf32>
    %c0_3 = arith.constant 0 : index
    %c0_4 = arith.constant 0 : index
    %3 = vector.load %arg6[%c0_3, %c0_4] : memref<1x128xf32, #tpu.memory_space<vmem>>, vector<1x128xf32>
    %4 = vector.broadcast %3 : vector<1x128xf32> to vector<64x128xf32>
    %5 = arith.addf %2, %4 : vector<64x128xf32>
    %6 = arith.negf %5 : vector<64x128xf32>
    %7 = math.exp %6 : vector<64x128xf32>
    %cst_5 = arith.constant 1.000000e+00 : f32
    %8 = vector.broadcast %cst_5 : f32 to vector<64x128xf32>
    %9 = arith.addf %8, %7 : vector<64x128xf32>
    %10 = arith.divf %8, %9 : vector<64x128xf32>
    %11 = arith.mulf %5, %10 : vector<64x128xf32>
    %c0_6 = arith.constant 0 : index
    %c0_7 = arith.constant 0 : index
    %12 = vector.load %arg7[%c0_6, %c0_7] : memref<128x256xbf16, #tpu.memory_space<vmem>>, vector<128x256xbf16>
    %13 = arith.truncf %11 : vector<64x128xf32> to vector<64x128xbf16>
    %cst_8 = arith.constant dense<0.000000e+00> : vector<64x256xf32>
    %14 = tpu.matmul %13, %12, %cst_8 {dimension_numbers = #tpu.dot_dimension_numbers<[1], [0], [0], [1], [0, 0, 1, 1], [], []>} : vector<64x128xbf16>, vector<128x256xbf16>, vector<64x256xf32> -> vector<64x256xf32>
    %c0_9 = arith.constant 0 : index
    %c0_10 = arith.constant 0 : index
    %15 = vector.load %arg8[%c0_9, %c0_10] : memref<1x256xf32, #tpu.memory_space<vmem>>, vector<1x256xf32>
    %16 = vector.broadcast %15 : vector<1x256xf32> to vector<64x256xf32>
    %17 = arith.addf %14, %16 : vector<64x256xf32>
    %18 = arith.negf %17 : vector<64x256xf32>
    %19 = math.exp %18 : vector<64x256xf32>
    %cst_11 = arith.constant 1.000000e+00 : f32
    %20 = vector.broadcast %cst_11 : f32 to vector<64x256xf32>
    %21 = arith.addf %20, %19 : vector<64x256xf32>
    %22 = arith.divf %20, %21 : vector<64x256xf32>
    %23 = arith.mulf %17, %22 : vector<64x256xf32>
    %c0_12 = arith.constant 0 : index
    %c0_13 = arith.constant 0 : index
    %24 = vector.load %arg9[%c0_12, %c0_13] : memref<256x384xbf16, #tpu.memory_space<vmem>>, vector<256x384xbf16>
    %25 = arith.truncf %23 : vector<64x256xf32> to vector<64x256xbf16>
    %cst_14 = arith.constant dense<0.000000e+00> : vector<64x384xf32>
    %26 = tpu.matmul %25, %24, %cst_14 {dimension_numbers = #tpu.dot_dimension_numbers<[1], [0], [0], [1], [0, 0, 1, 1], [], []>} : vector<64x256xbf16>, vector<256x384xbf16>, vector<64x384xf32> -> vector<64x384xf32>
    %c0_15 = arith.constant 0 : index
    %c0_16 = arith.constant 0 : index
    %27 = vector.load %arg10[%c0_15, %c0_16] : memref<1x384xf32, #tpu.memory_space<vmem>>, vector<1x384xf32>
    %28 = vector.broadcast %27 : vector<1x384xf32> to vector<64x384xf32>
    %29 = arith.addf %26, %28 : vector<64x384xf32>
    %30 = arith.negf %29 : vector<64x384xf32>
    %31 = math.exp %30 : vector<64x384xf32>
    %cst_17 = arith.constant 1.000000e+00 : f32
    %32 = vector.broadcast %cst_17 : f32 to vector<64x384xf32>
    %33 = arith.addf %32, %31 : vector<64x384xf32>
    %34 = arith.divf %32, %33 : vector<64x384xf32>
    %35 = arith.mulf %29, %34 : vector<64x384xf32>
    %c0_18 = arith.constant 0 : index
    %c0_19 = arith.constant 0 : index
    %36 = vector.load %arg2[%c0_18, %c0_19] : memref<64x1xf32, #tpu.memory_space<vmem>>, vector<64x1xf32>
    %cst_20 = arith.constant 3.14159274 : f32
    %37 = vector.broadcast %cst_20 : f32 to vector<64x1xf32>
    %38 = arith.mulf %36, %37 : vector<64x1xf32>
    %cst_21 = arith.constant 4.500000e+00 : f32
    %39 = vector.broadcast %cst_21 : f32 to vector<64x1xf32>
    %40 = arith.divf %38, %39 : vector<64x1xf32>
    %41 = math.cos %40 : vector<64x1xf32>
    %cst_22 = arith.constant 1.000000e+00 : f32
    %42 = vector.broadcast %cst_22 : f32 to vector<64x1xf32>
    %43 = arith.addf %41, %42 : vector<64x1xf32>
    %cst_23 = arith.constant 5.000000e-01 : f32
    %44 = vector.broadcast %cst_23 : f32 to vector<64x1xf32>
    %45 = arith.mulf %44, %43 : vector<64x1xf32>
    %cst_24 = arith.constant 4.500000e+00 : f32
    %46 = vector.broadcast %cst_24 : f32 to vector<64x1xf32>
    %47 = arith.cmpf olt, %36, %46 : vector<64x1xf32>
    %cst_25 = arith.constant 0.000000e+00 : f32
    %48 = vector.broadcast %cst_25 : f32 to vector<64x1xf32>
    %49 = arith.select %47, %45, %48 : vector<64x1xi1>, vector<64x1xf32>
    %50 = vector.broadcast %49 : vector<64x1xf32> to vector<64x384xf32>
    %51 = arith.mulf %35, %50 : vector<64x384xf32>
    %52 = vector.extract_strided_slice %51 {offsets = [0, 0], sizes = [64, 128], strides = [1, 1]} : vector<64x384xf32> to vector<64x128xf32>
    %53 = vector.extract_strided_slice %51 {offsets = [0, 128], sizes = [64, 128], strides = [1, 1]} : vector<64x384xf32> to vector<64x128xf32>
    %54 = vector.extract_strided_slice %51 {offsets = [0, 256], sizes = [64, 128], strides = [1, 1]} : vector<64x384xf32> to vector<64x128xf32>
    %c0_26 = arith.constant 0 : index
    %c0_27 = arith.constant 0 : index
    %c0_28 = arith.constant 0 : index
    %55 = vector.load %arg0[%c0_26, %c0_27, %c0_28] : memref<9x8x128xf32, #tpu.memory_space<vmem>>, vector<1x8x128xf32>
    %56 = vector.shape_cast %55 : vector<1x8x128xf32> to vector<8x128xf32>
    %c1 = arith.constant 1 : index
    %c0_29 = arith.constant 0 : index
    %c0_30 = arith.constant 0 : index
    %57 = vector.load %arg0[%c1, %c0_29, %c0_30] : memref<9x8x128xf32, #tpu.memory_space<vmem>>, vector<1x8x128xf32>
    %58 = vector.shape_cast %57 : vector<1x8x128xf32> to vector<8x128xf32>
    %c2 = arith.constant 2 : index
    %c0_31 = arith.constant 0 : index
    %c0_32 = arith.constant 0 : index
    %59 = vector.load %arg0[%c2, %c0_31, %c0_32] : memref<9x8x128xf32, #tpu.memory_space<vmem>>, vector<1x8x128xf32>
    %60 = vector.shape_cast %59 : vector<1x8x128xf32> to vector<8x128xf32>
    %c3 = arith.constant 3 : index
    %c0_33 = arith.constant 0 : index
    %c0_34 = arith.constant 0 : index
    %61 = vector.load %arg0[%c3, %c0_33, %c0_34] : memref<9x8x128xf32, #tpu.memory_space<vmem>>, vector<1x8x128xf32>
    %62 = vector.shape_cast %61 : vector<1x8x128xf32> to vector<8x128xf32>
    %c4 = arith.constant 4 : index
    %c0_35 = arith.constant 0 : index
    %c0_36 = arith.constant 0 : index
    %63 = vector.load %arg0[%c4, %c0_35, %c0_36] : memref<9x8x128xf32, #tpu.memory_space<vmem>>, vector<1x8x128xf32>
    %64 = vector.shape_cast %63 : vector<1x8x128xf32> to vector<8x128xf32>
    %c5 = arith.constant 5 : index
    %c0_37 = arith.constant 0 : index
    %c0_38 = arith.constant 0 : index
    %65 = vector.load %arg0[%c5, %c0_37, %c0_38] : memref<9x8x128xf32, #tpu.memory_space<vmem>>, vector<1x8x128xf32>
    %66 = vector.shape_cast %65 : vector<1x8x128xf32> to vector<8x128xf32>
    %c6 = arith.constant 6 : index
    %c0_39 = arith.constant 0 : index
    %c0_40 = arith.constant 0 : index
    %67 = vector.load %arg0[%c6, %c0_39, %c0_40] : memref<9x8x128xf32, #tpu.memory_space<vmem>>, vector<1x8x128xf32>
    %68 = vector.shape_cast %67 : vector<1x8x128xf32> to vector<8x128xf32>
    %c7 = arith.constant 7 : index
    %c0_41 = arith.constant 0 : index
    %c0_42 = arith.constant 0 : index
    %69 = vector.load %arg0[%c7, %c0_41, %c0_42] : memref<9x8x128xf32, #tpu.memory_space<vmem>>, vector<1x8x128xf32>
    %70 = vector.shape_cast %69 : vector<1x8x128xf32> to vector<8x128xf32>
    %c8 = arith.constant 8 : index
    %c0_43 = arith.constant 0 : index
    %c0_44 = arith.constant 0 : index
    %71 = vector.load %arg0[%c8, %c0_43, %c0_44] : memref<9x8x128xf32, #tpu.memory_space<vmem>>, vector<1x8x128xf32>
    %72 = vector.shape_cast %71 : vector<1x8x128xf32> to vector<8x128xf32>
    %73 = arith.mulf %56, %56 : vector<8x128xf32>
    %74 = arith.mulf %58, %58 : vector<8x128xf32>
    %75 = arith.addf %73, %74 : vector<8x128xf32>
    %76 = arith.mulf %60, %60 : vector<8x128xf32>
    %77 = arith.addf %75, %76 : vector<8x128xf32>
    %78 = arith.mulf %62, %62 : vector<8x128xf32>
    %79 = arith.addf %77, %78 : vector<8x128xf32>
    %80 = arith.mulf %64, %64 : vector<8x128xf32>
    %81 = arith.addf %79, %80 : vector<8x128xf32>
    %82 = arith.mulf %66, %66 : vector<8x128xf32>
    %83 = arith.addf %81, %82 : vector<8x128xf32>
    %84 = arith.mulf %68, %68 : vector<8x128xf32>
    %85 = arith.addf %83, %84 : vector<8x128xf32>
    %86 = arith.mulf %70, %70 : vector<8x128xf32>
    %87 = arith.addf %85, %86 : vector<8x128xf32>
    %88 = arith.mulf %72, %72 : vector<8x128xf32>
    %89 = arith.addf %87, %88 : vector<8x128xf32>
    %90 = math.sqrt %89 : vector<8x128xf32>
    %cst_45 = arith.constant 1.000000e+00 : f32
    %91 = vector.broadcast %cst_45 : f32 to vector<8x128xf32>
    %92 = arith.addf %90, %91 : vector<8x128xf32>
    %93 = tpu.reciprocal %92 {approx = true} : vector<8x128xf32> -> vector<8x128xf32>
    %94 = arith.mulf %56, %93 : vector<8x128xf32>
    %95 = arith.mulf %58, %93 : vector<8x128xf32>
    %96 = arith.mulf %60, %93 : vector<8x128xf32>
    %97 = arith.mulf %62, %93 : vector<8x128xf32>
    %98 = arith.mulf %64, %93 : vector<8x128xf32>
    %99 = arith.mulf %66, %93 : vector<8x128xf32>
    %100 = arith.mulf %68, %93 : vector<8x128xf32>
    %101 = arith.mulf %70, %93 : vector<8x128xf32>
    %102 = arith.mulf %72, %93 : vector<8x128xf32>
    %c0_46 = arith.constant 0 : index
    %c0_47 = arith.constant 0 : index
    %c0_48 = arith.constant 0 : index
    %103 = vector.load %arg11[%c0_46, %c0_47, %c0_48] : memref<3x128x128xbf16, #tpu.memory_space<vmem>>, vector<1x128x128xbf16>
    %104 = vector.shape_cast %103 : vector<1x128x128xbf16> to vector<128x128xbf16>
    %c1_49 = arith.constant 1 : index
    %c0_50 = arith.constant 0 : index
    %c0_51 = arith.constant 0 : index
    %105 = vector.load %arg11[%c1_49, %c0_50, %c0_51] : memref<3x128x128xbf16, #tpu.memory_space<vmem>>, vector<1x128x128xbf16>
    %106 = vector.shape_cast %105 : vector<1x128x128xbf16> to vector<128x128xbf16>
    %c2_52 = arith.constant 2 : index
    %c0_53 = arith.constant 0 : index
    %c0_54 = arith.constant 0 : index
    %107 = vector.load %arg11[%c2_52, %c0_53, %c0_54] : memref<3x128x128xbf16, #tpu.memory_space<vmem>>, vector<1x128x128xbf16>
    %108 = vector.shape_cast %107 : vector<1x128x128xbf16> to vector<128x128xbf16>
    %c0_55 = arith.constant 0 : index
    %c0_56 = arith.constant 0 : index
    %c0_57 = arith.constant 0 : index
    %109 = vector.load %arg12[%c0_55, %c0_56, %c0_57] : memref<3x1x128xf32, #tpu.memory_space<vmem>>, vector<1x1x128xf32>
    %110 = vector.shape_cast %109 : vector<1x1x128xf32> to vector<1x128xf32>
    %c1_58 = arith.constant 1 : index
    %c0_59 = arith.constant 0 : index
    %c0_60 = arith.constant 0 : index
    %111 = vector.load %arg12[%c1_58, %c0_59, %c0_60] : memref<3x1x128xf32, #tpu.memory_space<vmem>>, vector<1x1x128xf32>
    %112 = vector.shape_cast %111 : vector<1x1x128xf32> to vector<1x128xf32>
    %c2_61 = arith.constant 2 : index
    %c0_62 = arith.constant 0 : index
    %c0_63 = arith.constant 0 : index
    %113 = vector.load %arg12[%c2_61, %c0_62, %c0_63] : memref<3x1x128xf32, #tpu.memory_space<vmem>>, vector<1x1x128xf32>
    %114 = vector.shape_cast %113 : vector<1x1x128xf32> to vector<1x128xf32>
    %115 = arith.addf %94, %98 : vector<8x128xf32>
    %116 = arith.addf %115, %102 : vector<8x128xf32>
    %cst_64 = arith.constant 0.333333343 : f32
    %117 = vector.broadcast %cst_64 : f32 to vector<8x128xf32>
    %118 = arith.mulf %116, %117 : vector<8x128xf32>
    %119 = arith.truncf %118 : vector<8x128xf32> to vector<8x128xbf16>
    %cst_65 = arith.constant dense<0.000000e+00> : vector<8x128xf32>
    %120 = tpu.matmul %119, %104, %cst_65 {dimension_numbers = #tpu.dot_dimension_numbers<[1], [0], [0], [1], [0, 0, 1, 1], [], []>} : vector<8x128xbf16>, vector<128x128xbf16>, vector<8x128xf32> -> vector<8x128xf32>
    %121 = arith.subf %94, %118 : vector<8x128xf32>
    %122 = arith.truncf %121 : vector<8x128xf32> to vector<8x128xbf16>
    %cst_66 = arith.constant dense<0.000000e+00> : vector<8x128xf32>
    %123 = tpu.matmul %122, %108, %cst_66 {dimension_numbers = #tpu.dot_dimension_numbers<[1], [0], [0], [1], [0, 0, 1, 1], [], []>} : vector<8x128xbf16>, vector<128x128xbf16>, vector<8x128xf32> -> vector<8x128xf32>
    %124 = arith.subf %98, %118 : vector<8x128xf32>
    %125 = arith.truncf %124 : vector<8x128xf32> to vector<8x128xbf16>
    %cst_67 = arith.constant dense<0.000000e+00> : vector<8x128xf32>
    %126 = tpu.matmul %125, %108, %cst_67 {dimension_numbers = #tpu.dot_dimension_numbers<[1], [0], [0], [1], [0, 0, 1, 1], [], []>} : vector<8x128xbf16>, vector<128x128xbf16>, vector<8x128xf32> -> vector<8x128xf32>
    %127 = arith.subf %102, %118 : vector<8x128xf32>
    %128 = arith.truncf %127 : vector<8x128xf32> to vector<8x128xbf16>
    %cst_68 = arith.constant dense<0.000000e+00> : vector<8x128xf32>
    %129 = tpu.matmul %128, %108, %cst_68 {dimension_numbers = #tpu.dot_dimension_numbers<[1], [0], [0], [1], [0, 0, 1, 1], [], []>} : vector<8x128xbf16>, vector<128x128xbf16>, vector<8x128xf32> -> vector<8x128xf32>
    %130 = arith.subf %95, %97 : vector<8x128xf32>
    %cst_69 = arith.constant 5.000000e-01 : f32
    %131 = vector.broadcast %cst_69 : f32 to vector<8x128xf32>
    %132 = arith.mulf %131, %130 : vector<8x128xf32>
    %133 = arith.truncf %132 : vector<8x128xf32> to vector<8x128xbf16>
    %cst_70 = arith.constant dense<0.000000e+00> : vector<8x128xf32>
    %134 = tpu.matmul %133, %106, %cst_70 {dimension_numbers = #tpu.dot_dimension_numbers<[1], [0], [0], [1], [0, 0, 1, 1], [], []>} : vector<8x128xbf16>, vector<128x128xbf16>, vector<8x128xf32> -> vector<8x128xf32>
    %135 = arith.subf %96, %100 : vector<8x128xf32>
    %cst_71 = arith.constant 5.000000e-01 : f32
    %136 = vector.broadcast %cst_71 : f32 to vector<8x128xf32>
    %137 = arith.mulf %136, %135 : vector<8x128xf32>
    %138 = arith.truncf %137 : vector<8x128xf32> to vector<8x128xbf16>
    %cst_72 = arith.constant dense<0.000000e+00> : vector<8x128xf32>
    %139 = tpu.matmul %138, %106, %cst_72 {dimension_numbers = #tpu.dot_dimension_numbers<[1], [0], [0], [1], [0, 0, 1, 1], [], []>} : vector<8x128xbf16>, vector<128x128xbf16>, vector<8x128xf32> -> vector<8x128xf32>
    %140 = arith.subf %99, %101 : vector<8x128xf32>
    %cst_73 = arith.constant 5.000000e-01 : f32
    %141 = vector.broadcast %cst_73 : f32 to vector<8x128xf32>
    %142 = arith.mulf %141, %140 : vector<8x128xf32>
    %143 = arith.truncf %142 : vector<8x128xf32> to vector<8x128xbf16>
    %cst_74 = arith.constant dense<0.000000e+00> : vector<8x128xf32>
    %144 = tpu.matmul %143, %106, %cst_74 {dimension_numbers = #tpu.dot_dimension_numbers<[1], [0], [0], [1], [0, 0, 1, 1], [], []>} : vector<8x128xbf16>, vector<128x128xbf16>, vector<8x128xf32> -> vector<8x128xf32>
    %145 = arith.addf %95, %97 : vector<8x128xf32>
    %cst_75 = arith.constant 5.000000e-01 : f32
    %146 = vector.broadcast %cst_75 : f32 to vector<8x128xf32>
    %147 = arith.mulf %146, %145 : vector<8x128xf32>
    %148 = arith.truncf %147 : vector<8x128xf32> to vector<8x128xbf16>
    %cst_76 = arith.constant dense<0.000000e+00> : vector<8x128xf32>
    %149 = tpu.matmul %148, %108, %cst_76 {dimension_numbers = #tpu.dot_dimension_numbers<[1], [0], [0], [1], [0, 0, 1, 1], [], []>} : vector<8x128xbf16>, vector<128x128xbf16>, vector<8x128xf32> -> vector<8x128xf32>
    %150 = arith.addf %96, %100 : vector<8x128xf32>
    %cst_77 = arith.constant 5.000000e-01 : f32
    %151 = vector.broadcast %cst_77 : f32 to vector<8x128xf32>
    %152 = arith.mulf %151, %150 : vector<8x128xf32>
    %153 = arith.truncf %152 : vector<8x128xf32> to vector<8x128xbf16>
    %cst_78 = arith.constant dense<0.000000e+00> : vector<8x128xf32>
    %154 = tpu.matmul %153, %108, %cst_78 {dimension_numbers = #tpu.dot_dimension_numbers<[1], [0], [0], [1], [0, 0, 1, 1], [], []>} : vector<8x128xbf16>, vector<128x128xbf16>, vector<8x128xf32> -> vector<8x128xf32>
    %155 = arith.addf %99, %101 : vector<8x128xf32>
    %cst_79 = arith.constant 5.000000e-01 : f32
    %156 = vector.broadcast %cst_79 : f32 to vector<8x128xf32>
    %157 = arith.mulf %156, %155 : vector<8x128xf32>
    %158 = arith.truncf %157 : vector<8x128xf32> to vector<8x128xbf16>
    %cst_80 = arith.constant dense<0.000000e+00> : vector<8x128xf32>
    %159 = tpu.matmul %158, %108, %cst_80 {dimension_numbers = #tpu.dot_dimension_numbers<[1], [0], [0], [1], [0, 0, 1, 1], [], []>} : vector<8x128xbf16>, vector<128x128xbf16>, vector<8x128xf32> -> vector<8x128xf32>
    %160 = arith.addf %110, %112 : vector<1x128xf32>
    %161 = arith.addf %160, %114 : vector<1x128xf32>
    %162 = arith.addf %120, %123 : vector<8x128xf32>
    %163 = vector.broadcast %161 : vector<1x128xf32> to vector<8x128xf32>
    %164 = arith.addf %162, %163 : vector<8x128xf32>
    %165 = arith.addf %120, %126 : vector<8x128xf32>
    %166 = vector.broadcast %161 : vector<1x128xf32> to vector<8x128xf32>
    %167 = arith.addf %165, %166 : vector<8x128xf32>
    %168 = arith.addf %120, %129 : vector<8x128xf32>
    %169 = vector.broadcast %161 : vector<1x128xf32> to vector<8x128xf32>
    %170 = arith.addf %168, %169 : vector<8x128xf32>
    %171 = arith.addf %134, %149 : vector<8x128xf32>
    %172 = vector.broadcast %161 : vector<1x128xf32> to vector<8x128xf32>
    %173 = arith.addf %171, %172 : vector<8x128xf32>
    %cst_81 = arith.constant 0.000000e+00 : f32
    %174 = vector.broadcast %cst_81 : f32 to vector<8x128xf32>
    %175 = arith.subf %174, %134 : vector<8x128xf32>
    %176 = arith.addf %175, %149 : vector<8x128xf32>
    %177 = vector.broadcast %161 : vector<1x128xf32> to vector<8x128xf32>
    %178 = arith.addf %176, %177 : vector<8x128xf32>
    %179 = arith.addf %139, %154 : vector<8x128xf32>
    %180 = vector.broadcast %161 : vector<1x128xf32> to vector<8x128xf32>
    %181 = arith.addf %179, %180 : vector<8x128xf32>
    %cst_82 = arith.constant 0.000000e+00 : f32
    %182 = vector.broadcast %cst_82 : f32 to vector<8x128xf32>
    %183 = arith.subf %182, %139 : vector<8x128xf32>
    %184 = arith.addf %183, %154 : vector<8x128xf32>
    %185 = vector.broadcast %161 : vector<1x128xf32> to vector<8x128xf32>
    %186 = arith.addf %184, %185 : vector<8x128xf32>
    %187 = arith.addf %144, %159 : vector<8x128xf32>
    %188 = vector.broadcast %161 : vector<1x128xf32> to vector<8x128xf32>
    %189 = arith.addf %187, %188 : vector<8x128xf32>
    %cst_83 = arith.constant 0.000000e+00 : f32
    %190 = vector.broadcast %cst_83 : f32 to vector<8x128xf32>
    %191 = arith.subf %190, %144 : vector<8x128xf32>
    %192 = arith.addf %191, %159 : vector<8x128xf32>
    %193 = vector.broadcast %161 : vector<1x128xf32> to vector<8x128xf32>
    %194 = arith.addf %192, %193 : vector<8x128xf32>
    %195 = arith.truncf %120 : vector<8x128xf32> to vector<8x128xbf16>
    %196 = arith.truncf %134 : vector<8x128xf32> to vector<8x128xbf16>
    %197 = arith.truncf %139 : vector<8x128xf32> to vector<8x128xbf16>
    %198 = arith.truncf %144 : vector<8x128xf32> to vector<8x128xbf16>
    %199 = arith.truncf %123 : vector<8x128xf32> to vector<8x128xbf16>
    %200 = arith.truncf %126 : vector<8x128xf32> to vector<8x128xbf16>
    %201 = arith.truncf %129 : vector<8x128xf32> to vector<8x128xbf16>
    %202 = arith.truncf %149 : vector<8x128xf32> to vector<8x128xbf16>
    %203 = arith.truncf %154 : vector<8x128xf32> to vector<8x128xbf16>
    %204 = arith.truncf %159 : vector<8x128xf32> to vector<8x128xbf16>
    %205 = tpu.concatenate %195, %196, %197, %198, %199, %200, %201, %202, %203, %204 in 1 : vector<8x128xbf16>, vector<8x128xbf16>, vector<8x128xbf16>, vector<8x128xbf16>, vector<8x128xbf16>, vector<8x128xbf16>, vector<8x128xbf16>, vector<8x128xbf16>, vector<8x128xbf16>, vector<8x128xbf16> -> vector<8x1280xbf16>
    %c0_84 = arith.constant 0 : index
    %c0_85 = arith.constant 0 : index
    %206 = vector.load %arg3[%c0_84, %c0_85] : memref<64x8xbf16, #tpu.memory_space<vmem>>, vector<64x8xbf16>
    %cst_86 = arith.constant dense<0.000000e+00> : vector<64x1280xf32>
    %207 = tpu.matmul %206, %205, %cst_86 {dimension_numbers = #tpu.dot_dimension_numbers<[1], [0], [0], [1], [0, 0, 1, 1], [], []>} : vector<64x8xbf16>, vector<8x1280xbf16>, vector<64x1280xf32> -> vector<64x1280xf32>
    %208 = vector.extract_strided_slice %207 {offsets = [0, 0], sizes = [64, 128], strides = [1, 1]} : vector<64x1280xf32> to vector<64x128xf32>
    %209 = vector.extract_strided_slice %207 {offsets = [0, 128], sizes = [64, 128], strides = [1, 1]} : vector<64x1280xf32> to vector<64x128xf32>
    %210 = vector.extract_strided_slice %207 {offsets = [0, 256], sizes = [64, 128], strides = [1, 1]} : vector<64x1280xf32> to vector<64x128xf32>
    %211 = vector.extract_strided_slice %207 {offsets = [0, 384], sizes = [64, 128], strides = [1, 1]} : vector<64x1280xf32> to vector<64x128xf32>
    %212 = vector.extract_strided_slice %207 {offsets = [0, 512], sizes = [64, 128], strides = [1, 1]} : vector<64x1280xf32> to vector<64x128xf32>
    %213 = vector.extract_strided_slice %207 {offsets = [0, 640], sizes = [64, 128], strides = [1, 1]} : vector<64x1280xf32> to vector<64x128xf32>
    %214 = vector.extract_strided_slice %207 {offsets = [0, 768], sizes = [64, 128], strides = [1, 1]} : vector<64x1280xf32> to vector<64x128xf32>
    %215 = vector.extract_strided_slice %207 {offsets = [0, 896], sizes = [64, 128], strides = [1, 1]} : vector<64x1280xf32> to vector<64x128xf32>
    %216 = vector.extract_strided_slice %207 {offsets = [0, 1024], sizes = [64, 128], strides = [1, 1]} : vector<64x1280xf32> to vector<64x128xf32>
    %217 = vector.extract_strided_slice %207 {offsets = [0, 1152], sizes = [64, 128], strides = [1, 1]} : vector<64x1280xf32> to vector<64x128xf32>
    %218 = vector.broadcast %110 : vector<1x128xf32> to vector<64x128xf32>
    %219 = arith.mulf %52, %218 : vector<64x128xf32>
    %220 = vector.broadcast %112 : vector<1x128xf32> to vector<64x128xf32>
    %221 = arith.mulf %53, %220 : vector<64x128xf32>
    %222 = arith.addf %219, %221 : vector<64x128xf32>
    %223 = vector.broadcast %114 : vector<1x128xf32> to vector<64x128xf32>
    %224 = arith.mulf %54, %223 : vector<64x128xf32>
    %225 = arith.addf %222, %224 : vector<64x128xf32>
    %226 = arith.mulf %52, %208 : vector<64x128xf32>
    %227 = arith.addf %225, %226 : vector<64x128xf32>
    %228 = arith.mulf %54, %212 : vector<64x128xf32>
    %229 = arith.addf %227, %228 : vector<64x128xf32>
    %230 = arith.addf %225, %226 : vector<64x128xf32>
    %231 = arith.mulf %54, %213 : vector<64x128xf32>
    %232 = arith.addf %230, %231 : vector<64x128xf32>
    %233 = arith.addf %225, %226 : vector<64x128xf32>
    %234 = arith.mulf %54, %214 : vector<64x128xf32>
    %235 = arith.addf %233, %234 : vector<64x128xf32>
    %236 = arith.mulf %53, %209 : vector<64x128xf32>
    %237 = arith.mulf %54, %215 : vector<64x128xf32>
    %238 = arith.addf %225, %236 : vector<64x128xf32>
    %239 = arith.addf %238, %237 : vector<64x128xf32>
    %240 = arith.subf %225, %236 : vector<64x128xf32>
    %241 = arith.addf %240, %237 : vector<64x128xf32>
    %242 = arith.mulf %53, %210 : vector<64x128xf32>
    %243 = arith.mulf %54, %216 : vector<64x128xf32>
    %244 = arith.addf %225, %242 : vector<64x128xf32>
    %245 = arith.addf %244, %243 : vector<64x128xf32>
    %246 = arith.subf %225, %242 : vector<64x128xf32>
    %247 = arith.addf %246, %243 : vector<64x128xf32>
    %248 = arith.mulf %53, %211 : vector<64x128xf32>
    %249 = arith.mulf %54, %217 : vector<64x128xf32>
    %250 = arith.addf %225, %248 : vector<64x128xf32>
    %251 = arith.addf %250, %249 : vector<64x128xf32>
    %252 = arith.subf %225, %248 : vector<64x128xf32>
    %253 = arith.addf %252, %249 : vector<64x128xf32>
    %254 = arith.truncf %229 : vector<64x128xf32> to vector<64x128xbf16>
    %255 = arith.truncf %239 : vector<64x128xf32> to vector<64x128xbf16>
    %256 = arith.truncf %245 : vector<64x128xf32> to vector<64x128xbf16>
    %257 = arith.truncf %241 : vector<64x128xf32> to vector<64x128xbf16>
    %258 = arith.truncf %232 : vector<64x128xf32> to vector<64x128xbf16>
    %259 = arith.truncf %251 : vector<64x128xf32> to vector<64x128xbf16>
    %260 = arith.truncf %247 : vector<64x128xf32> to vector<64x128xbf16>
    %261 = arith.truncf %253 : vector<64x128xf32> to vector<64x128xbf16>
    %262 = arith.truncf %235 : vector<64x128xf32> to vector<64x128xbf16>
    %263 = tpu.concatenate %254, %255, %256, %257, %258, %259, %260, %261, %262 in 1 : vector<64x128xbf16>, vector<64x128xbf16>, vector<64x128xbf16>, vector<64x128xbf16>, vector<64x128xbf16>, vector<64x128xbf16>, vector<64x128xbf16>, vector<64x128xbf16>, vector<64x128xbf16> -> vector<64x1152xbf16>
    %c0_87 = arith.constant 0 : index
    %c0_88 = arith.constant 0 : index
    %264 = vector.load %arg4[%c0_87, %c0_88] : memref<8x64xbf16, #tpu.memory_space<vmem>>, vector<8x64xbf16>
    %cst_89 = arith.constant dense<0.000000e+00> : vector<8x1152xf32>
    %265 = tpu.matmul %264, %263, %cst_89 {dimension_numbers = #tpu.dot_dimension_numbers<[1], [0], [0], [1], [0, 0, 1, 1], [], []>} : vector<8x64xbf16>, vector<64x1152xbf16>, vector<8x1152xf32> -> vector<8x1152xf32>
    %266 = vector.extract_strided_slice %265 {offsets = [0, 0], sizes = [8, 128], strides = [1, 1]} : vector<8x1152xf32> to vector<8x128xf32>
    %267 = vector.extract_strided_slice %265 {offsets = [0, 128], sizes = [8, 128], strides = [1, 1]} : vector<8x1152xf32> to vector<8x128xf32>
    %268 = vector.extract_strided_slice %265 {offsets = [0, 256], sizes = [8, 128], strides = [1, 1]} : vector<8x1152xf32> to vector<8x128xf32>
    %269 = vector.extract_strided_slice %265 {offsets = [0, 384], sizes = [8, 128], strides = [1, 1]} : vector<8x1152xf32> to vector<8x128xf32>
    %270 = vector.extract_strided_slice %265 {offsets = [0, 512], sizes = [8, 128], strides = [1, 1]} : vector<8x1152xf32> to vector<8x128xf32>
    %271 = vector.extract_strided_slice %265 {offsets = [0, 640], sizes = [8, 128], strides = [1, 1]} : vector<8x1152xf32> to vector<8x128xf32>
    %272 = vector.extract_strided_slice %265 {offsets = [0, 768], sizes = [8, 128], strides = [1, 1]} : vector<8x1152xf32> to vector<8x128xf32>
    %273 = vector.extract_strided_slice %265 {offsets = [0, 896], sizes = [8, 128], strides = [1, 1]} : vector<8x1152xf32> to vector<8x128xf32>
    %274 = vector.extract_strided_slice %265 {offsets = [0, 1024], sizes = [8, 128], strides = [1, 1]} : vector<8x1152xf32> to vector<8x128xf32>
    %275 = arith.mulf %266, %164 : vector<8x128xf32>
    %276 = arith.mulf %164, %266 : vector<8x128xf32>
    %277 = arith.addf %275, %276 : vector<8x128xf32>
    %278 = arith.mulf %267, %178 : vector<8x128xf32>
    %279 = arith.addf %277, %278 : vector<8x128xf32>
    %280 = arith.mulf %173, %269 : vector<8x128xf32>
    %281 = arith.addf %279, %280 : vector<8x128xf32>
    %282 = arith.mulf %268, %186 : vector<8x128xf32>
    %283 = arith.addf %281, %282 : vector<8x128xf32>
    %284 = arith.mulf %181, %272 : vector<8x128xf32>
    %285 = arith.addf %283, %284 : vector<8x128xf32>
    %286 = arith.mulf %266, %173 : vector<8x128xf32>
    %287 = arith.mulf %164, %267 : vector<8x128xf32>
    %288 = arith.addf %286, %287 : vector<8x128xf32>
    %289 = arith.mulf %267, %167 : vector<8x128xf32>
    %290 = arith.addf %288, %289 : vector<8x128xf32>
    %291 = arith.mulf %173, %270 : vector<8x128xf32>
    %292 = arith.addf %290, %291 : vector<8x128xf32>
    %293 = arith.mulf %268, %194 : vector<8x128xf32>
    %294 = arith.addf %292, %293 : vector<8x128xf32>
    %295 = arith.mulf %181, %273 : vector<8x128xf32>
    %296 = arith.addf %294, %295 : vector<8x128xf32>
    %297 = arith.mulf %266, %181 : vector<8x128xf32>
    %298 = arith.mulf %164, %268 : vector<8x128xf32>
    %299 = arith.addf %297, %298 : vector<8x128xf32>
    %300 = arith.mulf %267, %189 : vector<8x128xf32>
    %301 = arith.addf %299, %300 : vector<8x128xf32>
    %302 = arith.mulf %173, %271 : vector<8x128xf32>
    %303 = arith.addf %301, %302 : vector<8x128xf32>
    %304 = arith.mulf %268, %170 : vector<8x128xf32>
    %305 = arith.addf %303, %304 : vector<8x128xf32>
    %306 = arith.mulf %181, %274 : vector<8x128xf32>
    %307 = arith.addf %305, %306 : vector<8x128xf32>
    %308 = arith.mulf %269, %164 : vector<8x128xf32>
    %309 = arith.mulf %178, %266 : vector<8x128xf32>
    %310 = arith.addf %308, %309 : vector<8x128xf32>
    %311 = arith.mulf %270, %178 : vector<8x128xf32>
    %312 = arith.addf %310, %311 : vector<8x128xf32>
    %313 = arith.mulf %167, %269 : vector<8x128xf32>
    %314 = arith.addf %312, %313 : vector<8x128xf32>
    %315 = arith.mulf %271, %186 : vector<8x128xf32>
    %316 = arith.addf %314, %315 : vector<8x128xf32>
    %317 = arith.mulf %189, %272 : vector<8x128xf32>
    %318 = arith.addf %316, %317 : vector<8x128xf32>
    %319 = arith.mulf %269, %173 : vector<8x128xf32>
    %320 = arith.mulf %178, %267 : vector<8x128xf32>
    %321 = arith.addf %319, %320 : vector<8x128xf32>
    %322 = arith.mulf %270, %167 : vector<8x128xf32>
    %323 = arith.addf %321, %322 : vector<8x128xf32>
    %324 = arith.mulf %167, %270 : vector<8x128xf32>
    %325 = arith.addf %323, %324 : vector<8x128xf32>
    %326 = arith.mulf %271, %194 : vector<8x128xf32>
    %327 = arith.addf %325, %326 : vector<8x128xf32>
    %328 = arith.mulf %189, %273 : vector<8x128xf32>
    %329 = arith.addf %327, %328 : vector<8x128xf32>
    %330 = arith.mulf %269, %181 : vector<8x128xf32>
    %331 = arith.mulf %178, %268 : vector<8x128xf32>
    %332 = arith.addf %330, %331 : vector<8x128xf32>
    %333 = arith.mulf %270, %189 : vector<8x128xf32>
    %334 = arith.addf %332, %333 : vector<8x128xf32>
    %335 = arith.mulf %167, %271 : vector<8x128xf32>
    %336 = arith.addf %334, %335 : vector<8x128xf32>
    %337 = arith.mulf %271, %170 : vector<8x128xf32>
    %338 = arith.addf %336, %337 : vector<8x128xf32>
    %339 = arith.mulf %189, %274 : vector<8x128xf32>
    %340 = arith.addf %338, %339 : vector<8x128xf32>
    %341 = arith.mulf %272, %164 : vector<8x128xf32>
    %342 = arith.mulf %186, %266 : vector<8x128xf32>
    %343 = arith.addf %341, %342 : vector<8x128xf32>
    %344 = arith.mulf %273, %178 : vector<8x128xf32>
    %345 = arith.addf %343, %344 : vector<8x128xf32>
    %346 = arith.mulf %194, %269 : vector<8x128xf32>
    %347 = arith.addf %345, %346 : vector<8x128xf32>
    %348 = arith.mulf %274, %186 : vector<8x128xf32>
    %349 = arith.addf %347, %348 : vector<8x128xf32>
    %350 = arith.mulf %170, %272 : vector<8x128xf32>
    %351 = arith.addf %349, %350 : vector<8x128xf32>
    %352 = arith.mulf %272, %173 : vector<8x128xf32>
    %353 = arith.mulf %186, %267 : vector<8x128xf32>
    %354 = arith.addf %352, %353 : vector<8x128xf32>
    %355 = arith.mulf %273, %167 : vector<8x128xf32>
    %356 = arith.addf %354, %355 : vector<8x128xf32>
    %357 = arith.mulf %194, %270 : vector<8x128xf32>
    %358 = arith.addf %356, %357 : vector<8x128xf32>
    %359 = arith.mulf %274, %194 : vector<8x128xf32>
    %360 = arith.addf %358, %359 : vector<8x128xf32>
    %361 = arith.mulf %170, %273 : vector<8x128xf32>
    %362 = arith.addf %360, %361 : vector<8x128xf32>
    %363 = arith.mulf %272, %181 : vector<8x128xf32>
    %364 = arith.mulf %186, %268 : vector<8x128xf32>
    %365 = arith.addf %363, %364 : vector<8x128xf32>
    %366 = arith.mulf %273, %189 : vector<8x128xf32>
    %367 = arith.addf %365, %366 : vector<8x128xf32>
    %368 = arith.mulf %194, %271 : vector<8x128xf32>
    %369 = arith.addf %367, %368 : vector<8x128xf32>
    %370 = arith.mulf %274, %170 : vector<8x128xf32>
    %371 = arith.addf %369, %370 : vector<8x128xf32>
    %372 = arith.mulf %170, %274 : vector<8x128xf32>
    %373 = arith.addf %371, %372 : vector<8x128xf32>
    %374 = arith.mulf %285, %285 : vector<8x128xf32>
    %375 = arith.mulf %296, %296 : vector<8x128xf32>
    %376 = arith.addf %374, %375 : vector<8x128xf32>
    %377 = arith.mulf %307, %307 : vector<8x128xf32>
    %378 = arith.addf %376, %377 : vector<8x128xf32>
    %379 = arith.mulf %318, %318 : vector<8x128xf32>
    %380 = arith.addf %378, %379 : vector<8x128xf32>
    %381 = arith.mulf %329, %329 : vector<8x128xf32>
    %382 = arith.addf %380, %381 : vector<8x128xf32>
    %383 = arith.mulf %340, %340 : vector<8x128xf32>
    %384 = arith.addf %382, %383 : vector<8x128xf32>
    %385 = arith.mulf %351, %351 : vector<8x128xf32>
    %386 = arith.addf %384, %385 : vector<8x128xf32>
    %387 = arith.mulf %362, %362 : vector<8x128xf32>
    %388 = arith.addf %386, %387 : vector<8x128xf32>
    %389 = arith.mulf %373, %373 : vector<8x128xf32>
    %390 = arith.addf %388, %389 : vector<8x128xf32>
    %391 = math.sqrt %390 : vector<8x128xf32>
    %cst_90 = arith.constant 1.000000e+00 : f32
    %392 = vector.broadcast %cst_90 : f32 to vector<8x128xf32>
    %393 = arith.addf %391, %392 : vector<8x128xf32>
    %394 = tpu.reciprocal %393 {approx = true} : vector<8x128xf32> -> vector<8x128xf32>
    %c0_91 = arith.constant 0 : index
    %c0_92 = arith.constant 0 : index
    %c0_93 = arith.constant 0 : index
    %395 = vector.load %arg13[%c0_91, %c0_92, %c0_93] : memref<3x128x128xbf16, #tpu.memory_space<vmem>>, vector<1x128x128xbf16>
    %396 = vector.shape_cast %395 : vector<1x128x128xbf16> to vector<128x128xbf16>
    %c1_94 = arith.constant 1 : index
    %c0_95 = arith.constant 0 : index
    %c0_96 = arith.constant 0 : index
    %397 = vector.load %arg13[%c1_94, %c0_95, %c0_96] : memref<3x128x128xbf16, #tpu.memory_space<vmem>>, vector<1x128x128xbf16>
    %398 = vector.shape_cast %397 : vector<1x128x128xbf16> to vector<128x128xbf16>
    %c2_97 = arith.constant 2 : index
    %c0_98 = arith.constant 0 : index
    %c0_99 = arith.constant 0 : index
    %399 = vector.load %arg13[%c2_97, %c0_98, %c0_99] : memref<3x128x128xbf16, #tpu.memory_space<vmem>>, vector<1x128x128xbf16>
    %400 = vector.shape_cast %399 : vector<1x128x128xbf16> to vector<128x128xbf16>
    %c0_100 = arith.constant 0 : index
    %c0_101 = arith.constant 0 : index
    %c0_102 = arith.constant 0 : index
    %401 = vector.load %arg14[%c0_100, %c0_101, %c0_102] : memref<3x1x128xf32, #tpu.memory_space<vmem>>, vector<1x1x128xf32>
    %402 = vector.shape_cast %401 : vector<1x1x128xf32> to vector<1x128xf32>
    %c1_103 = arith.constant 1 : index
    %c0_104 = arith.constant 0 : index
    %c0_105 = arith.constant 0 : index
    %403 = vector.load %arg14[%c1_103, %c0_104, %c0_105] : memref<3x1x128xf32, #tpu.memory_space<vmem>>, vector<1x1x128xf32>
    %404 = vector.shape_cast %403 : vector<1x1x128xf32> to vector<1x128xf32>
    %c2_106 = arith.constant 2 : index
    %c0_107 = arith.constant 0 : index
    %c0_108 = arith.constant 0 : index
    %405 = vector.load %arg14[%c2_106, %c0_107, %c0_108] : memref<3x1x128xf32, #tpu.memory_space<vmem>>, vector<1x1x128xf32>
    %406 = vector.shape_cast %405 : vector<1x1x128xf32> to vector<1x128xf32>
    %407 = arith.addf %285, %329 : vector<8x128xf32>
    %408 = arith.addf %407, %373 : vector<8x128xf32>
    %cst_109 = arith.constant 0.333333343 : f32
    %409 = vector.broadcast %cst_109 : f32 to vector<8x128xf32>
    %410 = arith.mulf %408, %409 : vector<8x128xf32>
    %411 = arith.mulf %410, %394 : vector<8x128xf32>
    %412 = arith.truncf %411 : vector<8x128xf32> to vector<8x128xbf16>
    %cst_110 = arith.constant dense<0.000000e+00> : vector<8x128xf32>
    %413 = tpu.matmul %412, %396, %cst_110 {dimension_numbers = #tpu.dot_dimension_numbers<[1], [0], [0], [1], [0, 0, 1, 1], [], []>} : vector<8x128xbf16>, vector<128x128xbf16>, vector<8x128xf32> -> vector<8x128xf32>
    %414 = arith.subf %285, %410 : vector<8x128xf32>
    %415 = arith.mulf %414, %394 : vector<8x128xf32>
    %416 = arith.truncf %415 : vector<8x128xf32> to vector<8x128xbf16>
    %cst_111 = arith.constant dense<0.000000e+00> : vector<8x128xf32>
    %417 = tpu.matmul %416, %400, %cst_111 {dimension_numbers = #tpu.dot_dimension_numbers<[1], [0], [0], [1], [0, 0, 1, 1], [], []>} : vector<8x128xbf16>, vector<128x128xbf16>, vector<8x128xf32> -> vector<8x128xf32>
    %418 = arith.subf %329, %410 : vector<8x128xf32>
    %419 = arith.mulf %418, %394 : vector<8x128xf32>
    %420 = arith.truncf %419 : vector<8x128xf32> to vector<8x128xbf16>
    %cst_112 = arith.constant dense<0.000000e+00> : vector<8x128xf32>
    %421 = tpu.matmul %420, %400, %cst_112 {dimension_numbers = #tpu.dot_dimension_numbers<[1], [0], [0], [1], [0, 0, 1, 1], [], []>} : vector<8x128xbf16>, vector<128x128xbf16>, vector<8x128xf32> -> vector<8x128xf32>
    %422 = arith.subf %373, %410 : vector<8x128xf32>
    %423 = arith.mulf %422, %394 : vector<8x128xf32>
    %424 = arith.truncf %423 : vector<8x128xf32> to vector<8x128xbf16>
    %cst_113 = arith.constant dense<0.000000e+00> : vector<8x128xf32>
    %425 = tpu.matmul %424, %400, %cst_113 {dimension_numbers = #tpu.dot_dimension_numbers<[1], [0], [0], [1], [0, 0, 1, 1], [], []>} : vector<8x128xbf16>, vector<128x128xbf16>, vector<8x128xf32> -> vector<8x128xf32>
    %426 = arith.subf %296, %318 : vector<8x128xf32>
    %cst_114 = arith.constant 5.000000e-01 : f32
    %427 = vector.broadcast %cst_114 : f32 to vector<8x128xf32>
    %428 = arith.mulf %427, %426 : vector<8x128xf32>
    %429 = arith.mulf %428, %394 : vector<8x128xf32>
    %430 = arith.truncf %429 : vector<8x128xf32> to vector<8x128xbf16>
    %cst_115 = arith.constant dense<0.000000e+00> : vector<8x128xf32>
    %431 = tpu.matmul %430, %398, %cst_115 {dimension_numbers = #tpu.dot_dimension_numbers<[1], [0], [0], [1], [0, 0, 1, 1], [], []>} : vector<8x128xbf16>, vector<128x128xbf16>, vector<8x128xf32> -> vector<8x128xf32>
    %432 = arith.subf %307, %351 : vector<8x128xf32>
    %cst_116 = arith.constant 5.000000e-01 : f32
    %433 = vector.broadcast %cst_116 : f32 to vector<8x128xf32>
    %434 = arith.mulf %433, %432 : vector<8x128xf32>
    %435 = arith.mulf %434, %394 : vector<8x128xf32>
    %436 = arith.truncf %435 : vector<8x128xf32> to vector<8x128xbf16>
    %cst_117 = arith.constant dense<0.000000e+00> : vector<8x128xf32>
    %437 = tpu.matmul %436, %398, %cst_117 {dimension_numbers = #tpu.dot_dimension_numbers<[1], [0], [0], [1], [0, 0, 1, 1], [], []>} : vector<8x128xbf16>, vector<128x128xbf16>, vector<8x128xf32> -> vector<8x128xf32>
    %438 = arith.subf %340, %362 : vector<8x128xf32>
    %cst_118 = arith.constant 5.000000e-01 : f32
    %439 = vector.broadcast %cst_118 : f32 to vector<8x128xf32>
    %440 = arith.mulf %439, %438 : vector<8x128xf32>
    %441 = arith.mulf %440, %394 : vector<8x128xf32>
    %442 = arith.truncf %441 : vector<8x128xf32> to vector<8x128xbf16>
    %cst_119 = arith.constant dense<0.000000e+00> : vector<8x128xf32>
    %443 = tpu.matmul %442, %398, %cst_119 {dimension_numbers = #tpu.dot_dimension_numbers<[1], [0], [0], [1], [0, 0, 1, 1], [], []>} : vector<8x128xbf16>, vector<128x128xbf16>, vector<8x128xf32> -> vector<8x128xf32>
    %444 = arith.addf %296, %318 : vector<8x128xf32>
    %cst_120 = arith.constant 5.000000e-01 : f32
    %445 = vector.broadcast %cst_120 : f32 to vector<8x128xf32>
    %446 = arith.mulf %445, %444 : vector<8x128xf32>
    %447 = arith.mulf %446, %394 : vector<8x128xf32>
    %448 = arith.truncf %447 : vector<8x128xf32> to vector<8x128xbf16>
    %cst_121 = arith.constant dense<0.000000e+00> : vector<8x128xf32>
    %449 = tpu.matmul %448, %400, %cst_121 {dimension_numbers = #tpu.dot_dimension_numbers<[1], [0], [0], [1], [0, 0, 1, 1], [], []>} : vector<8x128xbf16>, vector<128x128xbf16>, vector<8x128xf32> -> vector<8x128xf32>
    %450 = arith.addf %307, %351 : vector<8x128xf32>
    %cst_122 = arith.constant 5.000000e-01 : f32
    %451 = vector.broadcast %cst_122 : f32 to vector<8x128xf32>
    %452 = arith.mulf %451, %450 : vector<8x128xf32>
    %453 = arith.mulf %452, %394 : vector<8x128xf32>
    %454 = arith.truncf %453 : vector<8x128xf32> to vector<8x128xbf16>
    %cst_123 = arith.constant dense<0.000000e+00> : vector<8x128xf32>
    %455 = tpu.matmul %454, %400, %cst_123 {dimension_numbers = #tpu.dot_dimension_numbers<[1], [0], [0], [1], [0, 0, 1, 1], [], []>} : vector<8x128xbf16>, vector<128x128xbf16>, vector<8x128xf32> -> vector<8x128xf32>
    %456 = arith.addf %340, %362 : vector<8x128xf32>
    %cst_124 = arith.constant 5.000000e-01 : f32
    %457 = vector.broadcast %cst_124 : f32 to vector<8x128xf32>
    %458 = arith.mulf %457, %456 : vector<8x128xf32>
    %459 = arith.mulf %458, %394 : vector<8x128xf32>
    %460 = arith.truncf %459 : vector<8x128xf32> to vector<8x128xbf16>
    %cst_125 = arith.constant dense<0.000000e+00> : vector<8x128xf32>
    %461 = tpu.matmul %460, %400, %cst_125 {dimension_numbers = #tpu.dot_dimension_numbers<[1], [0], [0], [1], [0, 0, 1, 1], [], []>} : vector<8x128xbf16>, vector<128x128xbf16>, vector<8x128xf32> -> vector<8x128xf32>
    %462 = arith.addf %402, %404 : vector<1x128xf32>
    %463 = arith.addf %462, %406 : vector<1x128xf32>
    %464 = arith.addf %413, %417 : vector<8x128xf32>
    %465 = vector.broadcast %463 : vector<1x128xf32> to vector<8x128xf32>
    %466 = arith.addf %464, %465 : vector<8x128xf32>
    %467 = arith.addf %413, %421 : vector<8x128xf32>
    %468 = vector.broadcast %463 : vector<1x128xf32> to vector<8x128xf32>
    %469 = arith.addf %467, %468 : vector<8x128xf32>
    %470 = arith.addf %413, %425 : vector<8x128xf32>
    %471 = vector.broadcast %463 : vector<1x128xf32> to vector<8x128xf32>
    %472 = arith.addf %470, %471 : vector<8x128xf32>
    %473 = arith.addf %431, %449 : vector<8x128xf32>
    %474 = vector.broadcast %463 : vector<1x128xf32> to vector<8x128xf32>
    %475 = arith.addf %473, %474 : vector<8x128xf32>
    %cst_126 = arith.constant 0.000000e+00 : f32
    %476 = vector.broadcast %cst_126 : f32 to vector<8x128xf32>
    %477 = arith.subf %476, %431 : vector<8x128xf32>
    %478 = arith.addf %477, %449 : vector<8x128xf32>
    %479 = vector.broadcast %463 : vector<1x128xf32> to vector<8x128xf32>
    %480 = arith.addf %478, %479 : vector<8x128xf32>
    %481 = arith.addf %437, %455 : vector<8x128xf32>
    %482 = vector.broadcast %463 : vector<1x128xf32> to vector<8x128xf32>
    %483 = arith.addf %481, %482 : vector<8x128xf32>
    %cst_127 = arith.constant 0.000000e+00 : f32
    %484 = vector.broadcast %cst_127 : f32 to vector<8x128xf32>
    %485 = arith.subf %484, %437 : vector<8x128xf32>
    %486 = arith.addf %485, %455 : vector<8x128xf32>
    %487 = vector.broadcast %463 : vector<1x128xf32> to vector<8x128xf32>
    %488 = arith.addf %486, %487 : vector<8x128xf32>
    %489 = arith.addf %443, %461 : vector<8x128xf32>
    %490 = vector.broadcast %463 : vector<1x128xf32> to vector<8x128xf32>
    %491 = arith.addf %489, %490 : vector<8x128xf32>
    %cst_128 = arith.constant 0.000000e+00 : f32
    %492 = vector.broadcast %cst_128 : f32 to vector<8x128xf32>
    %493 = arith.subf %492, %443 : vector<8x128xf32>
    %494 = arith.addf %493, %461 : vector<8x128xf32>
    %495 = vector.broadcast %463 : vector<1x128xf32> to vector<8x128xf32>
    %496 = arith.addf %494, %495 : vector<8x128xf32>
    %497 = arith.mulf %466, %466 : vector<8x128xf32>
    %498 = arith.mulf %475, %480 : vector<8x128xf32>
    %499 = arith.addf %497, %498 : vector<8x128xf32>
    %500 = arith.mulf %483, %488 : vector<8x128xf32>
    %501 = arith.addf %499, %500 : vector<8x128xf32>
    %502 = arith.addf %94, %466 : vector<8x128xf32>
    %503 = arith.addf %502, %501 : vector<8x128xf32>
    %c0_129 = arith.constant 0 : index
    %c0_130 = arith.constant 0 : index
    %504 = vector.load %arg15[%c0_129, %c0_130] : memref<8x1152xf32, #tpu.memory_space<vmem>>, vector<8x128xf32>
    tpu.vector_store %arg15[%c0_129, %c0_130], %503 {strides = array<i32>} : memref<8x1152xf32, #tpu.memory_space<vmem>>, vector<8x128xf32>,
    %505 = arith.mulf %466, %475 : vector<8x128xf32>
    %506 = arith.mulf %475, %469 : vector<8x128xf32>
    %507 = arith.addf %505, %506 : vector<8x128xf32>
    %508 = arith.mulf %483, %496 : vector<8x128xf32>
    %509 = arith.addf %507, %508 : vector<8x128xf32>
    %510 = arith.addf %95, %475 : vector<8x128xf32>
    %511 = arith.addf %510, %509 : vector<8x128xf32>
    %c0_131 = arith.constant 0 : index
    %c128 = arith.constant 128 : index
    %512 = vector.load %arg15[%c0_131, %c128] : memref<8x1152xf32, #tpu.memory_space<vmem>>, vector<8x128xf32>
    tpu.vector_store %arg15[%c0_131, %c128], %511 {strides = array<i32>} : memref<8x1152xf32, #tpu.memory_space<vmem>>, vector<8x128xf32>,
    %513 = arith.mulf %466, %483 : vector<8x128xf32>
    %514 = arith.mulf %475, %491 : vector<8x128xf32>
    %515 = arith.addf %513, %514 : vector<8x128xf32>
    %516 = arith.mulf %483, %472 : vector<8x128xf32>
    %517 = arith.addf %515, %516 : vector<8x128xf32>
    %518 = arith.addf %96, %483 : vector<8x128xf32>
    %519 = arith.addf %518, %517 : vector<8x128xf32>
    %c0_132 = arith.constant 0 : index
    %c256 = arith.constant 256 : index
    %520 = vector.load %arg15[%c0_132, %c256] : memref<8x1152xf32, #tpu.memory_space<vmem>>, vector<8x128xf32>
    tpu.vector_store %arg15[%c0_132, %c256], %519 {strides = array<i32>} : memref<8x1152xf32, #tpu.memory_space<vmem>>, vector<8x128xf32>,
    %521 = arith.mulf %480, %466 : vector<8x128xf32>
    %522 = arith.mulf %469, %480 : vector<8x128xf32>
    %523 = arith.addf %521, %522 : vector<8x128xf32>
    %524 = arith.mulf %491, %488 : vector<8x128xf32>
    %525 = arith.addf %523, %524 : vector<8x128xf32>
    %526 = arith.addf %97, %480 : vector<8x128xf32>
    %527 = arith.addf %526, %525 : vector<8x128xf32>
    %c0_133 = arith.constant 0 : index
    %c384 = arith.constant 384 : index
    %528 = vector.load %arg15[%c0_133, %c384] : memref<8x1152xf32, #tpu.memory_space<vmem>>, vector<8x128xf32>
    tpu.vector_store %arg15[%c0_133, %c384], %527 {strides = array<i32>} : memref<8x1152xf32, #tpu.memory_space<vmem>>, vector<8x128xf32>,
    %529 = arith.mulf %480, %475 : vector<8x128xf32>
    %530 = arith.mulf %469, %469 : vector<8x128xf32>
    %531 = arith.addf %529, %530 : vector<8x128xf32>
    %532 = arith.mulf %491, %496 : vector<8x128xf32>
    %533 = arith.addf %531, %532 : vector<8x128xf32>
    %534 = arith.addf %98, %469 : vector<8x128xf32>
    %535 = arith.addf %534, %533 : vector<8x128xf32>
    %c0_134 = arith.constant 0 : index
    %c512 = arith.constant 512 : index
    %536 = vector.load %arg15[%c0_134, %c512] : memref<8x1152xf32, #tpu.memory_space<vmem>>, vector<8x128xf32>
    tpu.vector_store %arg15[%c0_134, %c512], %535 {strides = array<i32>} : memref<8x1152xf32, #tpu.memory_space<vmem>>, vector<8x128xf32>,
    %537 = arith.mulf %480, %483 : vector<8x128xf32>
    %538 = arith.mulf %469, %491 : vector<8x128xf32>
    %539 = arith.addf %537, %538 : vector<8x128xf32>
    %540 = arith.mulf %491, %472 : vector<8x128xf32>
    %541 = arith.addf %539, %540 : vector<8x128xf32>
    %542 = arith.addf %99, %491 : vector<8x128xf32>
    %543 = arith.addf %542, %541 : vector<8x128xf32>
    %c0_135 = arith.constant 0 : index
    %c640 = arith.constant 640 : index
    %544 = vector.load %arg15[%c0_135, %c640] : memref<8x1152xf32, #tpu.memory_space<vmem>>, vector<8x128xf32>
    tpu.vector_store %arg15[%c0_135, %c640], %543 {strides = array<i32>} : memref<8x1152xf32, #tpu.memory_space<vmem>>, vector<8x128xf32>,
    %545 = arith.mulf %488, %466 : vector<8x128xf32>
    %546 = arith.mulf %496, %480 : vector<8x128xf32>
    %547 = arith.addf %545, %546 : vector<8x128xf32>
    %548 = arith.mulf %472, %488 : vector<8x128xf32>
    %549 = arith.addf %547, %548 : vector<8x128xf32>
    %550 = arith.addf %100, %488 : vector<8x128xf32>
    %551 = arith.addf %550, %549 : vector<8x128xf32>
    %c0_136 = arith.constant 0 : index
    %c768 = arith.constant 768 : index
    %552 = vector.load %arg15[%c0_136, %c768] : memref<8x1152xf32, #tpu.memory_space<vmem>>, vector<8x128xf32>
    tpu.vector_store %arg15[%c0_136, %c768], %551 {strides = array<i32>} : memref<8x1152xf32, #tpu.memory_space<vmem>>, vector<8x128xf32>,
    %553 = arith.mulf %488, %475 : vector<8x128xf32>
    %554 = arith.mulf %496, %469 : vector<8x128xf32>
    %555 = arith.addf %553, %554 : vector<8x128xf32>
    %556 = arith.mulf %472, %496 : vector<8x128xf32>
    %557 = arith.addf %555, %556 : vector<8x128xf32>
    %558 = arith.addf %101, %496 : vector<8x128xf32>
    %559 = arith.addf %558, %557 : vector<8x128xf32>
    %c0_137 = arith.constant 0 : index
    %c896 = arith.constant 896 : index
    %560 = vector.load %arg15[%c0_137, %c896] : memref<8x1152xf32, #tpu.memory_space<vmem>>, vector<8x128xf32>
    tpu.vector_store %arg15[%c0_137, %c896], %559 {strides = array<i32>} : memref<8x1152xf32, #tpu.memory_space<vmem>>, vector<8x128xf32>,
    %561 = arith.mulf %488, %483 : vector<8x128xf32>
    %562 = arith.mulf %496, %491 : vector<8x128xf32>
    %563 = arith.addf %561, %562 : vector<8x128xf32>
    %564 = arith.mulf %472, %472 : vector<8x128xf32>
    %565 = arith.addf %563, %564 : vector<8x128xf32>
    %566 = arith.addf %102, %472 : vector<8x128xf32>
    %567 = arith.addf %566, %565 : vector<8x128xf32>
    %c0_138 = arith.constant 0 : index
    %c1024 = arith.constant 1024 : index
    %568 = vector.load %arg15[%c0_138, %c1024] : memref<8x1152xf32, #tpu.memory_space<vmem>>, vector<8x128xf32>
    tpu.vector_store %arg15[%c0_138, %c1024], %567 {strides = array<i32>} : memref<8x1152xf32, #tpu.memory_space<vmem>>, vector<8x128xf32>,
    return
  }
}

</mosaic_0001>

<bundles_post_ra>
// kernel: tpu_custom_call.1
= control target key start
LH: loop header
LB: loop body
LE: loop exit
PB: predicated region body
PF: predicated region fallthrough
CT: control target
= control target key end

     0   :  { %20 = vsyncpa [#allocation3], 0  ;;  %s9233_s0 = inlined_call_operand.vmem [shape: f32[9,8,128], index: 0, kind: input, shape index: {}]   ;;  %s9234_s1 = inlined_call_operand.vmem [shape: bf16[64,128], index: 1, kind: input, shape index: {}]   ;;  %s9235_s2 = inlined_call_operand.vmem [shape: f32[64,1], index: 2, kind: input, shape index: {}]   ;;  %s9236_s3 = inlined_call_operand.vmem [shape: bf16[64,8], index: 3, kind: input, shape index: {}]   ;;  %s9237_s4 = inlined_call_operand.vmem [shape: bf16[8,64], index: 4, kind: input, shape index: {}]   ;;  %s9238_s5 = inlined_call_operand.hbm [shape: bf16[128,128], index: 5, kind: input, shape index: {}]   ;;  %s9239_s6 = inlined_call_operand.hbm [shape: f32[1,128], index: 6, kind: input, shape index: {}]   ;;  %s9240_s7 = inlined_call_operand.hbm [shape: bf16[128,256], index: 7, kind: input, shape index: {}]   ;;  %s9241_s8 = inlined_call_operand.vmem [shape: f32[1,256], index: 8, kind: input, shape index: {}]   ;;  %s9242_s9 = inlined_call_operand.hbm [shape: bf16[256,384], index: 9, kind: input, shape index: {}]   ;;  %s9243_s10 = inlined_call_operand.vmem [shape: f32[1,384], index: 10, kind: input, shape index: {}]   ;;  %s9244_s11 = inlined_call_operand.hbm [shape: bf16[3,128,128], index: 11, kind: input, shape index: {}]   ;;  %s9245_s12 = inlined_call_operand.vmem [shape: f32[3,1,128], index: 12, kind: input, shape index: {}]   ;;  %s9246_s13 = inlined_call_operand.hbm [shape: bf16[3,128,128], index: 13, kind: input, shape index: {}]   ;;  %s9247_s14 = inlined_call_operand.vmem [shape: f32[3,1,128], index: 14, kind: input, shape index: {}]   ;;  %s9248_s15 = inlined_call_operand.hbm [shape: f32[8,1152], index: 15, kind: output, shape index: {}]  }
   0x1   :  { %21 = vsyncpa [#allocation6], 0 }
   0x2   :  { %22 = vsyncpa [#allocation9], 0 }
   0x3   :  { %23 = vsyncpa [#allocation12], 0 }
   0x4   :  { %24 = vsyncpa [#allocation4], 0  ;;  %s6333_s18 = smov [#allocation5]   ;;  %s6334_s20 = smov [#allocation8]  }
   0x5   :  { %s53_s19 = sshll.u32 %s6333_s18, 4  ;;  %s76_s21 = sshll.u32 %s6334_s20, 4  ;;  %s54_s19 = int_to_ptr.vmem [resolvable:$true] %s53_s19  ;;  %s6435_s21 = int_to_ptr.vmem [resolvable:$true] %s76_s21 }
   0x6   :  { %s6169_s24 = scalar_lea.hbm %s9239_s6, 16 }
   0x7   :  { %p6170_p0 = scmp.ne.s32.totalorder %s9239_s6, %s6169_s24  ;;  %p6173_p1 = scmp.lt.u32.totalorder %s6169_s24, %s9239_s6 }
   0x9   :  { %p6175_p2 = pnand %p6173_p1, %p6170_p0 }
   0xb   :  { %6178 = shalt.err (!%p6175_p2)
}
   0xc   :  { %s6179_s29 = scalar_lea.vmem %s54_s19, 16  ;;  %s6183_s30 = scalar_lea.vmem %s54_s19, 32 }
   0xd   :  { %p6180_p3 = scmp.ne.s32.totalorder %s54_s19, %s6179_s29  ;;  %p6184_p4 = scmp.lt.s32.totalorder %s54_s19, %s54_s19 }
   0xe   :  { %p6185_p5 = scmp.lt.s32.totalorder %s6183_s30, %s6179_s29 }
  0x10   :  { %p6186_p6 = por %p6185_p5, %p6184_p4 }
  0x12   :  { %p6187_p7 = pnand %p6186_p6, %p6180_p3 }
  0x14   :  { %6190 = shalt.err (!%p6187_p7)
}
  0x15   :  { %56 = dma.hbm_to_vmem [thread:$0]  %s9239_s6, 16, %s54_s19, [#allocation6]  }
  0x16   :  { %s6191_s22 = scalar_lea.hbm %s9242_s9, 6144 }
  0x17   :  { %p6192_p8 = scmp.ne.s32.totalorder %s9242_s9, %s6191_s22  ;;  %p6195_p9 = scmp.lt.u32.totalorder %s6191_s22, %s9242_s9 }
  0x19   :  { %p6197_p10 = pnand %p6195_p9, %p6192_p8 }
  0x1b   :  { %6200 = shalt.err (!%p6197_p10)
}
  0x1c   :  { %s6201_s27 = scalar_lea.vmem %s6435_s21, 6144  ;;  %p6206_p12 = scmp.lt.s32.totalorder %s6435_s21, %s6435_s21 }
  0x1d   :  { %p6202_p11 = scmp.ne.s32.totalorder %s6435_s21, %s6201_s27  ;;  %p6207_p13 = scmp.lt.s32.totalorder %s6201_s27, %s6201_s27 }
  0x1f   :  { %p6208_p0 = por %p6207_p13, %p6206_p12 }
  0x21   :  { %p6209_p1 = pnand %p6208_p0, %p6202_p11 }
  0x23   :  { %6212 = shalt.err (!%p6209_p1)
}
  0x24   :  { %s6335_s6 = smov 192   ;;  %s6336_s19 = smov 12  }
  0x25   :  { %82 = dma.hbm_to_vmem [thread:$0]  %s9242_s9, 6144, %s6435_s21, [#allocation9], %s6335_s6, %s6335_s6, %s6336_s19  }
  0x26   :  { %s6337_s30 = smov [#allocation2]   ;;  %s6213_s20 = scalar_lea.hbm %s9238_s5, 1024 }
  0x27   :  { %s40_s16 = sshll.u32 %s6337_s30, 4  ;;  %p6214_p2 = scmp.ne.s32.totalorder %s9238_s5, %s6213_s20  ;;  %s41_s16 = int_to_ptr.vmem [resolvable:$true] %s40_s16 }
  0x28   :  { %p6217_p3 = scmp.lt.u32.totalorder %s6213_s20, %s9238_s5 }
  0x2a   :  { %p6219_p4 = pnand %p6217_p3, %p6214_p2 }
  0x2c   :  { %6222 = shalt.err (!%p6219_p4)
}
  0x2d   :  { %s6223_s26 = scalar_lea.vmem %s41_s16, 1024  ;;  %p6228_p6 = scmp.lt.s32.totalorder %s41_s16, %s41_s16 }
  0x2e   :  { %p6224_p5 = scmp.ne.s32.totalorder %s41_s16, %s6223_s26  ;;  %p6229_p7 = scmp.lt.s32.totalorder %s6223_s26, %s6223_s26 }
  0x30   :  { %p6230_p8 = por %p6229_p7, %p6228_p6 }
  0x32   :  { %p6231_p9 = pnand %p6230_p8, %p6224_p5 }
  0x34   :  { %6234 = shalt.err (!%p6231_p9)
}
  0x35   :  { %s6338_s9 = smov 64   ;;  %s6339_s21 = smov 4  }
  0x36   :  { %46 = dma.hbm_to_vmem [thread:$0]  %s9238_s5, 1024, %s41_s16, [#allocation3], %s6338_s9, %s6338_s9, %s6339_s21  }
  0x37   :  { %s6340_s19 = smov [#allocation7]   ;;  %s6235_s17 = scalar_lea.hbm %s9240_s7, 2048 }
  0x38   :  { %s62_s28 = sshll.u32 %s6340_s19, 4  ;;  %p6236_p10 = scmp.ne.s32.totalorder %s9240_s7, %s6235_s17  ;;  %s63_s28 = int_to_ptr.vmem [resolvable:$true] %s62_s28 }
  0x39   :  { %p6239_p11 = scmp.lt.u32.totalorder %s6235_s17, %s9240_s7 }
  0x3b   :  { %p6241_p12 = pnand %p6239_p11, %p6236_p10 }
  0x3d   :  { %6244 = shalt.err (!%p6241_p12)
}
  0x3e   :  { %s6245_s24 = scalar_lea.vmem %s63_s28, 2048  ;;  %p6250_p0 = scmp.lt.s32.totalorder %s63_s28, %s63_s28 }
  0x3f   :  { %p6246_p13 = scmp.ne.s32.totalorder %s63_s28, %s6245_s24  ;;  %p6251_p1 = scmp.lt.s32.totalorder %s6245_s24, %s6245_s24 }
  0x41   :  { %p6252_p2 = por %p6251_p1, %p6250_p0 }
  0x43   :  { %p6253_p3 = pnand %p6252_p2, %p6246_p13 }
  0x45   :  { %6256 = shalt.err (!%p6253_p3)
}
  0x46   :  { %s6341_s5 = smov 128   ;;  %s6342_s16 = smov 8  }
  0x47   :  { %68 = dma.hbm_to_vmem [thread:$0]  %s9240_s7, 2048, %s63_s28, [#allocation6], %s6341_s5, %s6341_s5, %s6342_s16  }
  0x48   :  { %s6343_s27 = smov [#allocation10]   ;;  %s6344_s19 = smov [#allocation11]  }
  0x49   :  { %s90_s6 = sshll.u32 %s6343_s27, 4  ;;  %s104_s29 = sshll.u32 %s6344_s19, 4  ;;  %s91_s6 = int_to_ptr.vmem [resolvable:$true] %s90_s6  ;;  %s6493_s29 = int_to_ptr.vmem [resolvable:$true] %s104_s29 }
  0x4a   :  { %s6257_s18 = scalar_lea.hbm %s9244_s11, 3072 }
  0x4b   :  { %p6258_p4 = scmp.ne.s32.totalorder %s9244_s11, %s6257_s18  ;;  %p6261_p5 = scmp.lt.u32.totalorder %s6257_s18, %s9244_s11 }
  0x4d   :  { %p6263_p6 = pnand %p6261_p5, %p6258_p4 }
  0x4f   :  { %6266 = shalt.err (!%p6263_p6)
}
  0x50   :  { %s6267_s7 = scalar_lea.vmem %s91_s6, 3072  ;;  %p6272_p8 = scmp.lt.s32.totalorder %s91_s6, %s91_s6 }
  0x51   :  { %p6268_p7 = scmp.ne.s32.totalorder %s91_s6, %s6267_s7  ;;  %p6273_p9 = scmp.lt.s32.totalorder %s6267_s7, %s6267_s7 }
  0x53   :  { %p6274_p10 = por %p6273_p9, %p6272_p8 }
  0x55   :  { %p6275_p11 = pnand %p6274_p10, %p6268_p7 }
  0x57   :  { %6278 = shalt.err (!%p6275_p11)
}
  0x58   :  { %96 = dma.hbm_to_vmem [thread:$0]  %s9244_s11, 3072, %s91_s6, [#allocation9], %s6338_s9, %s6338_s9, %s6339_s21  }
  0x59   :  { %s6279_s26 = scalar_lea.hbm %s9246_s13, 3072 }
  0x5a   :  { %p6280_p12 = scmp.ne.s32.totalorder %s9246_s13, %s6279_s26  ;;  %p6283_p13 = scmp.lt.u32.totalorder %s6279_s26, %s9246_s13 }
  0x5c   :  { %p6285_p0 = pnand %p6283_p13, %p6280_p12 }
  0x5e   :  { %6288 = shalt.err (!%p6285_p0)
}
  0x5f   :  { %s6289_s18 = scalar_lea.vmem %s6493_s29, 3072  ;;  %p6294_p2 = scmp.lt.s32.totalorder %s6493_s29, %s6493_s29 }
  0x60   :  { %p6290_p1 = scmp.ne.s32.totalorder %s6493_s29, %s6289_s18  ;;  %p6295_p3 = scmp.lt.s32.totalorder %s6289_s18, %s6289_s18 }
  0x62   :  { %p6296_p4 = por %p6295_p3, %p6294_p2 }
  0x64   :  { %p6297_p5 = pnand %p6296_p4, %p6290_p1 }
  0x66   :  { %6300 = shalt.err (!%p6297_p5)
}
  0x67   :  { %110 = dma.hbm_to_vmem [thread:$0]  %s9246_s13, 3072, %s6493_s29, [#allocation12], %s6338_s9, %s6338_s9, %s6339_s21  }
  0x68   :  { %6323 = dma.done.wait [#allocation3], 1024  }
  0x69   :  { %6324 = vsyncadd [#allocation3], 4294966272 }
  0x6a   :  { %6325 = dma.done.wait [#allocation6], 2064  }
  0x6b   :  { %6326 = vsyncadd [#allocation6], 4294965232 }
  0x6c   :  { %6327 = dma.done.wait [#allocation9], 9216  }
  0x6d   :  { %6328 = vsyncadd [#allocation9], 4294958080 }
  0x6e   :  { %6329 = dma.done.wait [#allocation12], 3072  }
  0x6f   :  { %6330 = vsyncadd [#allocation12], 4294964224  ;;  %v5766_v0 = vld [vmem:[#allocation2] sm:$0xff]   ;;  %v5767_v1 = vld [vmem:[#allocation2 + $0x8] sm:$0xff]   ;;  %v9250_v28 = vmov 0  }
  0x70   :  { %5272 = vmatprep.subr.bf16.mxu0 %v5766_v0  ;;  %v5768_v2 = vld [vmem:[#allocation2 + $0x10] sm:$0xff]   ;;  %v5769_v3 = vld [vmem:[#allocation2 + $0x18] sm:$0xff]   ;;  %v5774_v4 = vld [vmem:[%s9234_s1] sm:$0xff]   ;;  %500 = vmatprep.mubr.bf16.mxu1 %v9250_v28 }
  0x71   :  { %5273 = vmatpush3.bf16.msra.mxu0 %v5766_v0  ;;  %5288 = vmatprep.mubr.bf16.mxu0 %v5774_v4  ;;  %v5770_v5 = vld [vmem:[#allocation2 + $0x20] sm:$0xff]   ;;  %v5771_v6 = vld [vmem:[#allocation2 + $0x28] sm:$0xff]   ;;  %v5772_v7 = vld [vmem:[#allocation2 + $0x30] sm:$0xff]  }
  0x72   :  { %5274 = vmatprep.subr.bf16.mxu0 %v5767_v1  ;;  %v5773_v8 = vld [vmem:[#allocation2 + $0x38] sm:$0xff]   ;;  %v5775_v9 = vld [vmem:[%s9234_s1 + $0x8] sm:$0xff]   ;;  %v5776_v10 = vld [vmem:[%s9234_s1 + $0x10] sm:$0xff]   ;;  %5764 = vset.pattern.permute.xlu0 %v9250_v28 }
  0x73   :  { %v5777_v11 = vld [vmem:[%s9234_s1 + $0x18] sm:$0xff]   ;;  %v5778_v12 = vld [vmem:[#allocation7 + $0x4] ss:$8 sps:$4 sm:$0xff]   ;;  %v5780_v13 = vld [vmem:[#allocation7] ss:$8 sps:$4 sm:$0xff]   ;;  %5765 = vset.pattern.permute.xlu1 %v9250_v28 }
  0x74   :  { %468 = vmatprep.subr.bf16.mxu1 %v5778_v12  ;;  %v5781_v14 = vld [vmem:[#allocation7 + $0x14] ss:$8 sps:$4 sm:$0xff]   ;;  %v5783_v15 = vld [vmem:[#allocation7 + $0x10] ss:$8 sps:$4 sm:$0xff]   ;;  %v5784_v16 = vld [vmem:[#allocation7 + $0x24] ss:$8 sps:$4 sm:$0xff]  }
  0x75   :  { %5275 = vmatpush3.bf16.msra.mxu0 %v5767_v1  ;;  %469 = vmatpush1.bf16.msra.mxu1 %v5780_v13  ;;  %v5786_v17 = vld [vmem:[#allocation7 + $0x20] ss:$8 sps:$4 sm:$0xff]   ;;  %v5787_v18 = vld [vmem:[#allocation7 + $0x34] ss:$8 sps:$4 sm:$0xff]   ;;  %v5789_v19 = vld [vmem:[#allocation7 + $0x30] ss:$8 sps:$4 sm:$0xff]  }
  0x76   :  { %5276 = vmatprep.subr.bf16.mxu0 %v5768_v2  ;;  %470 = vmatprep.subr.bf16.mxu1 %v5781_v14  ;;  %v5790_v20 = vld [vmem:[#allocation7 + $0x44] ss:$8 sps:$4 sm:$0xff]   ;;  %v5792_v21 = vld [vmem:[#allocation7 + $0x40] ss:$8 sps:$4 sm:$0xff]   ;;  %v5793_v22 = vld [vmem:[#allocation7 + $0x54] ss:$8 sps:$4 sm:$0xff]  }
  0x77   :  { %v5795_v23 = vld [vmem:[#allocation7 + $0x50] ss:$8 sps:$4 sm:$0xff]   ;;  %v5796_v24 = vld [vmem:[#allocation7 + $0x64] ss:$8 sps:$4 sm:$0xff]   ;;  %v5798_v25 = vld [vmem:[#allocation7 + $0x60] ss:$8 sps:$4 sm:$0xff]  }
  0x78   :  { %v5799_v26 = vld [vmem:[#allocation7 + $0x74] ss:$8 sps:$4 sm:$0xff]   ;;  %v5801_v27 = vld [vmem:[#allocation7 + $0x70] ss:$8 sps:$4 sm:$0xff]   ;;  %v5802_v29 = vld [vmem:[#allocation8] ss:$12 sps:$4 sm:$0xff]  }
  0x79   :  { %5277 = vmatpush3.bf16.msra.mxu0 %v5768_v2  ;;  %471 = vmatpush1.bf16.msra.mxu1 %v5783_v15  ;;  %v5804_v30 = vld [vmem:[#allocation8 + $0x4] ss:$12 sps:$4 sm:$0xff]   ;;  %v5807_v31 = vld [vmem:[#allocation8 + $0x1c] ss:$12 sps:$4 sm:$0xff]   ;;  %v5810_v33 = vld [vmem:[#allocation8 + $0x34] ss:$12 sps:$4 sm:$0xff]  }
  0x7a   :  { %5278 = vmatprep.subr.bf16.mxu0 %v5769_v3  ;;  %472 = vmatprep.subr.bf16.mxu1 %v5784_v16  ;;  %v5805_v32 = vld [vmem:[#allocation8 + $0x18] ss:$12 sps:$4 sm:$0xff]   ;;  %v5808_v34 = vld [vmem:[#allocation8 + $0x30] ss:$12 sps:$4 sm:$0xff]   ;;  %v5811_v36 = vld [vmem:[#allocation8 + $0x48] ss:$12 sps:$4 sm:$0xff]  }
  0x7b   :  { %v5813_v35 = vld [vmem:[#allocation8 + $0x4c] ss:$12 sps:$4 sm:$0xff]   ;;  %v5816_v37 = vld [vmem:[#allocation8 + $0x64] ss:$12 sps:$4 sm:$0xff]   ;;  %v5819_v39 = vld [vmem:[#allocation8 + $0x7c] ss:$12 sps:$4 sm:$0xff]  }
  0x7c   :  { %v5814_v38 = vld [vmem:[#allocation8 + $0x60] ss:$12 sps:$4 sm:$0xff]   ;;  %v5817_v40 = vld [vmem:[#allocation8 + $0x78] ss:$12 sps:$4 sm:$0xff]   ;;  %v5820_v42 = vld [vmem:[#allocation8 + $0x90] ss:$12 sps:$4 sm:$0xff]  }
  0x7d   :  { %5279 = vmatpush3.bf16.msra.mxu0 %v5769_v3  ;;  %473 = vmatpush1.bf16.msra.mxu1 %v5786_v17  ;;  %v5822_v41 = vld [vmem:[#allocation8 + $0x94] ss:$12 sps:$4 sm:$0xff]   ;;  %v4784_v43 = vld [vmem:[#allocation5] ss:$0 sm:$0xff] }
  0x7e   :  { %5280 = vmatprep.subr.bf16.mxu0 %v5770_v5  ;;  %474 = vmatprep.subr.bf16.mxu1 %v5787_v18 }
  0x81   :  { %5281 = vmatpush3.bf16.msra.mxu0 %v5770_v5  ;;  %475 = vmatpush1.bf16.msra.mxu1 %v5789_v19 }
  0x82   :  { %5282 = vmatprep.subr.bf16.mxu0 %v5771_v6  ;;  %476 = vmatprep.subr.bf16.mxu1 %v5790_v20 }
  0x85   :  { %5283 = vmatpush3.bf16.msra.mxu0 %v5771_v6  ;;  %477 = vmatpush1.bf16.msra.mxu1 %v5792_v21 }
  0x86   :  { %5284 = vmatprep.subr.bf16.mxu0 %v5772_v7  ;;  %478 = vmatprep.subr.bf16.mxu1 %v5793_v22 }
  0x89   :  { %5285 = vmatpush3.bf16.msra.mxu0 %v5772_v7  ;;  %479 = vmatpush1.bf16.msra.mxu1 %v5795_v23 }
  0x8a   :  { %5286 = vmatprep.subr.bf16.mxu0 %v5773_v8  ;;  %480 = vmatprep.subr.bf16.mxu1 %v5796_v24 }
  0x8d   :  { %5287 = vmatpush3.bf16.msra.mxu0 %v5773_v8  ;;  %481 = vmatpush1.bf16.msra.mxu1 %v5798_v25 }
  0x8e   :  { %482 = vmatprep.subr.bf16.mxu1 %v5799_v26  ;;  %998 = vmatprep.subr.bf16.mxu0 %v5804_v30 }
  0x90   :  { %5289 = vmatmul.mubr.bf16.vlgmr.msra.gmra.mrb[0].mxu0 %v5775_v9 }
  0x91   :  { %5292 = vmatprep.mubr.bf16.mxu0 %v5776_v10  ;;  %483 = vmatpush1.bf16.msra.mxu1 %v5801_v27 }
  0x92   :  { %999 = vmatpush1.bf16.msra.mxu0 %v5802_v29 }
  0x93   :  { %1000 = vmatprep.subr.bf16.mxu0 %v5807_v31 }
  0x96   :  { %1001 = vmatpush1.bf16.msra.mxu0 %v5805_v32 }
  0x97   :  { %1002 = vmatprep.subr.bf16.mxu0 %v5810_v33 }
  0x98   :  { %5293 = vmatmul.mubr.bf16.gmra.mrb[4].mxu0 %v5777_v11 }
  0x9a   :  { %1003 = vmatpush1.bf16.msra.mxu0 %v5808_v34 }
  0x9b   :  { %1004 = vmatprep.subr.bf16.mxu0 %v5813_v35 }
  0x9e   :  { %1005 = vmatpush1.bf16.msra.mxu0 %v5811_v36 }
  0x9f   :  { %1006 = vmatprep.subr.bf16.mxu0 %v5816_v37 }
  0xa2   :  { %1007 = vmatpush1.bf16.msra.mxu0 %v5814_v38 }
  0xa3   :  { %1008 = vmatprep.subr.bf16.mxu0 %v5819_v39 }
  0xa6   :  { %1009 = vmatpush1.bf16.msra.mxu0 %v5817_v40 }
  0xa7   :  { %1010 = vmatprep.subr.bf16.mxu0 %v5822_v41  ;;  %v5825_v41 = vld [vmem:[#allocation8 + $0xac] ss:$12 sps:$4 sm:$0xff]  }
  0xaa   :  { %1011 = vmatpush1.bf16.msra.mxu0 %v5820_v42  ;;  %v5823_v42 = vld [vmem:[#allocation8 + $0xa8] ss:$12 sps:$4 sm:$0xff]  }
  0xab   :  { %1012 = vmatprep.subr.bf16.mxu0 %v5825_v41 }
  0xae   :  { %1013 = vmatpush1.bf16.msra.mxu0 %v5823_v42 }
 0x163   :  { %v5290_v44 = vpop.f32.mrb[0].mxu0 }
 0x164   :  { %v278_v45 = vadd.f32 %v5290_v44, %v4784_v43  ;;  %v269_v46 = vpop.f32.mrb[1].mxu0  ;;  %v5829_v44 = vld [vmem:[#allocation8 + $0xc8] ss:$12 sps:$4 sm:$0xff]  }
 0x165   :  { %v270_v47 = vadd.f32 %v4784_v43, %v269_v46  ;;  %v5291_v48 = vpop.f32.mrb[2].mxu0  ;;  %v5830_v46 = vld [vmem:[#allocation8 + $0x8] ss:$12 sps:$4 sm:$0xff]   ;;  %5047 = vmatprep.subr.bf16.mxu1 %v5829_v44 }
 0x166   :  { %v4799_v49 = vmul.f32 -1.442695, %v278_v45  ;;  %v281_v50 = vadd.f32 %v5291_v48, %v4784_v43  ;;  %v272_v51 = vpop.f32.mrb[3].mxu0  ;;  %v5834_v48 = vld [vmem:[#allocation8 + $0xe0] ss:$12 sps:$4 sm:$0xff]  }
 0x167   :  { %v4797_v52 = vmul.f32 -1.442695, %v270_v47  ;;  %v273_v53 = vadd.f32 %v4784_v43, %v272_v51  ;;  %v5838_v51 = vld [vmem:[#allocation8 + $0xf4] ss:$12 sps:$4 sm:$0xff]   ;;  %v1305_v44 = vld [vmem:[%s9235_s2 + $0x8] sm:$0xff] }
 0x168   :  { %5918 = vpow2.f32 %v4799_v49  ;;  %v4800_v54 = vmul.f32 -1.442695, %v281_v50  ;;  %v5831_v49 = vld [vmem:[#allocation8 + $0xd8] ss:$12 sps:$4 sm:$0xff]  }
 0x169   :  { %5920 = vpow2.f32 %v4797_v52  ;;  %v4798_v55 = vmul.f32 -1.442695, %v273_v53  ;;  %v5839_v52 = vld [vmem:[#allocation8 + $0xf8] ss:$12 sps:$4 sm:$0xff]  }
 0x16a   :  { %5922 = vpow2.f32 %v4800_v54  ;;  %v5840_v54 = vld [vmem:[#allocation8 + $0x38] ss:$12 sps:$4 sm:$0xff]  }
 0x16b   :  { %5924 = vpow2.f32 %v4798_v55  ;;  %v5294_v56 = vpop.f32.mrb[4].mxu0  ;;  %v6551_v55 = vld [vmem:[%s9233_s0] sm:$0xff] }
 0x16c   :  { %v294_v57 = vadd.f32 %v5294_v56, %v4784_v43  ;;  %v285_v58 = vpop.f32.mrb[5].mxu0  ;;  %v6556_v56 = vld [vmem:[%s9233_s0 + $0x8] sm:$0xff] }
 0x16d   :  { %v286_v59 = vadd.f32 %v4784_v43, %v285_v58  ;;  %v5295_v60 = vpop.f32.mrb[6].mxu0  ;;  %v5844_v58 = vld [vmem:[#allocation8 + $0x110] ss:$12 sps:$4 sm:$0xff]  }
 0x16e   :  { %v4803_v61 = vmul.f32 -1.442695, %v294_v57  ;;  %v297_v62 = vadd.f32 %v5295_v60, %v4784_v43  ;;  %v288_v63 = vpop.f32.mrb[7].mxu0  ;;  %v5845_v60 = vld [vmem:[#allocation8 + $0x50] ss:$12 sps:$4 sm:$0xff]  }
 0x16f   :  { %v4801_v0 = vmul.f32 -1.442695, %v286_v59  ;;  %v289_v1 = vadd.f32 %v4784_v43, %v288_v63  ;;  %v5828_v43 = vld [vmem:[#allocation8 + $0xc4] ss:$12 sps:$4 sm:$0xff]  }
 0x170   :  { %5926 = vpow2.f32 %v4803_v61  ;;  %v4804_v2 = vmul.f32 -1.442695, %v297_v62  ;;  %1014 = vmatprep.subr.bf16.mxu0 %v5828_v43  ;;  %v2266_v61 = vmul.f32 %v6551_v55, %v6551_v55  ;;  %v4942_v63 = vld [vmem:[%s9233_s0 + $0x10] sm:$0xff] }
 0x171   :  { %5928 = vpow2.f32 %v4801_v0  ;;  %v4802_v3 = vmul.f32 -1.442695, %v289_v1  ;;  %v5848_v0 = vld [vmem:[#allocation8 + $0x124] ss:$12 sps:$4 sm:$0xff]  }
 0x172   :  { %v5919_v4 = vpop.eup %5918  ;;  %5930 = vpow2.f32 %v4804_v2  ;;  %v5846_v2 = vld [vmem:[#allocation8 + $0x120] ss:$12 sps:$4 sm:$0xff]  }
 0x173   :  { %v5921_v5 = vpop.eup %5920  ;;  %v326_v6 = vadd.f32 1.0, %v5919_v4  ;;  %5932 = vpow2.f32 %v4802_v3  ;;  %v5850_v3 = vld [vmem:[#allocation8 + $0x68] ss:$12 sps:$4 sm:$0xff]  }
 0x174   :  { %v5923_v7 = vpop.eup %5922  ;;  %v324_v8 = vadd.f32 1.0, %v5921_v5  ;;  %v2269_v5 = vmul.f32 %v4942_v63, %v4942_v63 }
 0x175   :  { %v5925_v9 = vpop.eup %5924  ;;  %5934 = vrcp.f32 %v326_v6  ;;  %v327_v10 = vadd.f32 1.0, %v5923_v7  ;;  %v4943_v6 = vld [vmem:[%s9233_s0 + $0x18] sm:$0xff] }
 0x176   :  { %5936 = vrcp.f32 %v324_v8  ;;  %v325_v11 = vadd.f32 1.0, %v5925_v9  ;;  %v5853_v7 = vld [vmem:[#allocation8 + $0x13c] ss:$12 sps:$4 sm:$0xff]   ;;  %v5854_v8 = vld [vmem:[#allocation8 + $0x140] ss:$12 sps:$4 sm:$0xff]  }
 0x177   :  { %5938 = vrcp.f32 %v327_v10  ;;  %v5851_v9 = vld [vmem:[#allocation8 + $0x138] ss:$12 sps:$4 sm:$0xff]   ;;  %v5855_v10 = vld [vmem:[#allocation8 + $0x80] ss:$12 sps:$4 sm:$0xff]  }
 0x178   :  { %5940 = vrcp.f32 %v325_v11 }
 0x17a   :  { %v5927_v12 = vpop.eup %5926 }
 0x17b   :  { %v5929_v13 = vpop.eup %5928  ;;  %v330_v14 = vadd.f32 1.0, %v5927_v12  ;;  %v2271_v12 = vmul.f32 %v4943_v6, %v4943_v6 }
 0x17c   :  { %v5931_v15 = vpop.eup %5930  ;;  %v328_v16 = vadd.f32 1.0, %v5929_v13  ;;  %v6571_v13 = vld [vmem:[%s9233_s0 + $0x20] sm:$0xff] }
 0x17d   :  { %v5933_v17 = vpop.eup %5932  ;;  %5942 = vrcp.f32 %v330_v14  ;;  %v331_v18 = vadd.f32 1.0, %v5931_v15  ;;  %v5858_v14 = vld [vmem:[#allocation8 + $0x154] ss:$12 sps:$4 sm:$0xff]   ;;  %v5859_v15 = vld [vmem:[#allocation8 + $0x158] ss:$12 sps:$4 sm:$0xff]  }
 0x17e   :  { %5944 = vrcp.f32 %v328_v16  ;;  %v329_v19 = vadd.f32 1.0, %v5933_v17  ;;  %v5856_v16 = vld [vmem:[#allocation8 + $0x150] ss:$12 sps:$4 sm:$0xff]   ;;  %v5860_v17 = vld [vmem:[#allocation8 + $0x98] ss:$12 sps:$4 sm:$0xff]  }
 0x17f   :  { %v5935_v20 = vpop.eup %5934  ;;  %5946 = vrcp.f32 %v331_v18 }
 0x180   :  { %v5937_v21 = vpop.eup %5936  ;;  %5948 = vrcp.f32 %v329_v19  ;;  %v350_v24 = vmul.f32 %v5935_v20, %v278_v45  ;;  %v5826_v45 = vld [vmem:[#allocation8 + $0xc0] ss:$12 sps:$4 sm:$0xff]   ;;  %v2273_v19 = vmul.f32 %v6571_v13, %v6571_v13 }
 0x181   :  { %v5939_v22 = vpop.eup %5938  ;;  %v348_v26 = vmul.f32 %v5937_v21, %v270_v47  ;;  %1015 = vmatpush1.bf16.msra.mxu0 %v5826_v45  ;;  %v5833_v47 = vld [vmem:[#allocation8 + $0xdc] ss:$12 sps:$4 sm:$0xff]   ;;  %v5863_v21 = vld [vmem:[#allocation8 + $0x16c] ss:$12 sps:$4 sm:$0xff]  }
 0x182   :  { %v5941_v23 = vpop.eup %5940  ;;  %v351_v25 = vmul.f32 %v5939_v22, %v281_v50  ;;  %v5835_v50 = vld [vmem:[#allocation8 + $0x20] ss:$12 sps:$4 sm:$0xff]   ;;  %1016 = vmatprep.subr.bf16.mxu0 %v5833_v47  ;;  %v5864_v22 = vld [vmem:[#allocation8 + $0x170] ss:$12 sps:$4 sm:$0xff]  }
 0x183   :  { %v349_v27 = vmul.f32 %v5941_v23, %v273_v53  ;;  %v5836_v53 = vld [vmem:[#allocation8 + $0xf0] ss:$12 sps:$4 sm:$0xff]   ;;  %v4945_v20 = vld [vmem:[%s9233_s0 + $0x28] sm:$0xff] }
 0x184   :  { %v373_v29 = vpack.c.bf16 %v351_v25, %v350_v24  ;;  %v5861_v23 = vld [vmem:[#allocation8 + $0x168] ss:$12 sps:$4 sm:$0xff]   ;;  %v5865_v24 = vld [vmem:[#allocation8 + $0xb0] ss:$12 sps:$4 sm:$0xff]  }
 0x185   :  { %v372_v30 = vpack.c.bf16 %v349_v27, %v348_v26  ;;  %1017 = vmatpush1.bf16.msra.mxu0 %v5831_v49  ;;  %v2275_v26 = vmul.f32 %v4945_v20, %v4945_v20  ;;  %v4946_v27 = vld [vmem:[%s9233_s0 + $0x30] sm:$0xff]  ;;  %v9256_v20 = vmov 920167782  }
 0x186   :  { %1018 = vmatprep.subr.bf16.mxu0 %v5838_v51 }
 0x187   :  { %v5943_v31 = vpop.eup %5942  ;;  %501 = vmatmul.mubr.bf16.vlgmr.msra.gmra.mrb[0].mxu1 %v372_v30  ;;  %v2277_v30 = vmul.f32 %v4946_v27, %v4946_v27 }
 0x188   :  { %v5945_v32 = vpop.eup %5944  ;;  %510 = vmatprep.mubr.bf16.mxu1 %v9250_v28  ;;  %v354_v35 = vmul.f32 %v5943_v31, %v294_v57  ;;  %5048 = vmatpush3.bf16.msra.mxu1 %v5830_v46  ;;  %v5843_v57 = vld [vmem:[#allocation8 + $0x10c] ss:$12 sps:$4 sm:$0xff]   ;;  %v9265_v31 = vmov 0.0   ;;  %v1313_v46 = vmul.f32 3.1415927, %v1305_v44 }
 0x189   :  { %v5947_v33 = vpop.eup %5946  ;;  %v352_v37 = vmul.f32 %v5945_v32, %v286_v59  ;;  %5049 = vmatprep.subr.bf16.mxu1 %v5834_v48  ;;  %1019 = vmatpush1.bf16.msra.mxu0 %v5836_v53  ;;  %v5841_v59 = vld [vmem:[#allocation8 + $0x108] ss:$12 sps:$4 sm:$0xff]  }
 0x18a   :  { %v5949_v34 = vpop.eup %5948  ;;  %v355_v36 = vmul.f32 %v5947_v33, %v297_v62  ;;  %v2267_v62 = vmul.f32 %v6556_v56, %v6556_v56  ;;  %1020 = vmatprep.subr.bf16.mxu0 %v5843_v57  ;;  %v4947_v32 = vld [vmem:[%s9233_s0 + $0x38] sm:$0xff]  ;;  %v6605_v49 = vmul.f32 0.22222222, %v1313_v46  ;;  %v1306_v53 = vld [vmem:[%s9235_s2 + $0x10] sm:$0xff] }
 0x18b   :  { %v353_v38 = vmul.f32 %v5949_v34, %v289_v1  ;;  %v5849_v1 = vld [vmem:[#allocation8 + $0x128] ss:$12 sps:$4 sm:$0xff]   ;;  %v2279_v34 = vmul.f32 %v4947_v32, %v4947_v32 }
 0x18c   :  { %v375_v39 = vpack.c.bf16 %v355_v36, %v354_v35  ;;  %5050 = vmatpush3.bf16.msra.mxu1 %v5835_v50  ;;  %v2268_v4 = vadd.f32 %v2267_v62, %v2266_v61  ;;  %v6589_v35 = vld [vmem:[%s9233_s0 + $0x40] sm:$0xff] }
 0x18d   :  { %v374_v40 = vpack.c.bf16 %v353_v38, %v352_v37  ;;  %5051 = vmatprep.subr.bf16.mxu1 %v5839_v52  ;;  %1021 = vmatpush1.bf16.msra.mxu0 %v5841_v59  ;;  %v2281_v37 = vmul.f32 %v6589_v35, %v6589_v35  ;;  %v1435_v52 = vand.u32 2139095040, %v6605_v49 }
 0x18e   :  { %1022 = vmatprep.subr.bf16.mxu0 %v5848_v0  ;;  %v2270_v11 = vadd.f32 %v2269_v5, %v2268_v4  ;;  %v9263_v4 = vmov 2102212464  }
 0x18f   :  { %511 = vmatmul.mubr.bf16.gmra.mrb[4].mxu1 %v373_v29 }
 0x190   :  { %520 = vmatprep.mubr.bf16.mxu1 %v9250_v28  ;;  %5052 = vmatpush3.bf16.msra.mxu1 %v5840_v54  ;;  %v2272_v18 = vadd.f32 %v2271_v12, %v2270_v11 }
 0x191   :  { %5053 = vmatprep.subr.bf16.mxu1 %v5844_v58  ;;  %1023 = vmatpush1.bf16.msra.mxu0 %v5846_v2  ;;  %v1436_v58 = vshrl.u32 %v1435_v52, 23 }
 0x192   :  { %1024 = vmatprep.subr.bf16.mxu0 %v5853_v7  ;;  %v2274_v25 = vadd.f32 %v2273_v19, %v2272_v18 }
 0x193   :  { %v4913_v59 = vadd.s32 4294967169, %v1436_v58 }
 0x194   :  { %5054 = vmatpush3.bf16.msra.mxu1 %v5845_v60  ;;  %v2276_v29 = vadd.f32 %v2275_v26, %v2274_v25  ;;  %v1314_v60 = vmul.f32 3.1415927, %v1306_v53  ;;  %v9254_v26 = vmov 1326507024  }
 0x195   :  { %5055 = vmatprep.subr.bf16.mxu1 %v5849_v1  ;;  %1025 = vmatpush1.bf16.msra.mxu0 %v5851_v9  ;;  %v1442_v0 = vadd.s32 1, %v4913_v59 }
 0x196   :  { %1026 = vmatprep.subr.bf16.mxu0 %v5858_v14  ;;  %v2278_v33 = vadd.f32 %v2277_v30, %v2276_v29  ;;  %v6611_v2 = vmul.f32 0.22222222, %v1314_v60  ;;  %v9259_v14 = vmov 2131351028  }
 0x197   :  { %521 = vmatmul.mubr.bf16.gmra.mrb[8].mxu1 %v374_v40  ;;  %vm1443_vm3 = vcmp.gt.s32.totalorder %v1442_v0, 0 }
 0x198   :  { %530 = vmatprep.mubr.bf16.mxu1 %v9250_v28  ;;  %5056 = vmatpush3.bf16.msra.mxu1 %v5850_v3  ;;  %v2280_v36 = vadd.f32 %v2279_v34, %v2278_v33  ;;  %v1538_v29 = vand.u32 2139095040, %v6611_v2 }
 0x199   :  { %5057 = vmatprep.subr.bf16.mxu1 %v5854_v8  ;;  %1027 = vmatpush1.bf16.msra.mxu0 %v5856_v16  ;;  %v6348_v8 = vmov 683565275  }
 0x19a   :  { %1028 = vmatprep.subr.bf16.mxu0 %v5863_v21  ;;  %v2282_v38 = vadd.f32 %v2281_v37, %v2280_v36  ;;  %v1444_v37 = vsel %vm1443_vm3, %v1442_v0, 0 }
 0x19c   :  { %5058 = vmatpush3.bf16.msra.mxu1 %v5855_v10  ;;  %5950 = vrsqrt.f32 %v2282_v38  ;;  %vm2285_vm0 = vcmp.eq.f32.partialorder %v2282_v38, inf  ;;  %v2288_v47 = vand.u32 2147483648, %v2282_v38  ;;  %vm2287_vm1 = vcmp.eq.f32.partialorder %v2282_v38, 0.0 }
 0x19d   :  { %5059 = vmatprep.subr.bf16.mxu1 %v5859_v15  ;;  %1029 = vmatpush1.bf16.msra.mxu0 %v5861_v23  ;;  %v9261_v10 = vmov 2475754826  }
 0x19e   :  { %5316 = vmatprep.subr.bf16.mxu0 %v9265_v31 }
 0x19f   :  { %531 = vmatmul.mubr.bf16.gmra.mrb[12].mxu1 %v375_v39  ;;  %v6596_v39 = vld [vmem:[%s9235_s2] sm:$0xff] }
 0x1a0   :  { %5060 = vmatpush3.bf16.msra.mxu1 %v5860_v17  ;;  %v1312_v41 = vmul.f32 3.1415927, %v6596_v39 }
 0x1a1   :  { %5061 = vmatprep.subr.bf16.mxu1 %v5864_v22 }
 0x1a2   :  { %v6599_v42 = vmul.f32 0.22222222, %v1312_v41  ;;  %v1432_v41 = vand.u32 2147483647, %v6605_v49 }
 0x1a4   :  { %5062 = vmatpush3.bf16.msra.mxu1 %v5865_v24  ;;  %v1332_v45 = vand.u32 2139095040, %v6599_v42  ;;  %v1329_v3 = vand.u32 2147483647, %v6599_v42 }
 0x1a5   :  { %5296 = vmatprep.subr.bf16.mxu1 %v9265_v31 }
 0x1a6   :  { %v5951_v40 = vpop.eup %5950  ;;  %v1333_v48 = vshrl.u32 %v1332_v45, 23  ;;  %v1336_v6 = vand.u32 8388607, %v1329_v3 }
 0x1a7   :  { %v2284_v43 = vmul.f32 %v5951_v40, %v2282_v38 }
 0x1a8   :  { %v4909_v51 = vadd.s32 4294967169, %v1333_v48  ;;  %v1337_v18 = vor.u32 8388608, %v1336_v6  ;;  %v1539_v48 = vshrl.u32 %v1538_v29, 23 }
 0x1a9   :  { %v2286_v50 = vsel %vm2285_vm0, %v2282_v38, %v2284_v43  ;;  %v1446_v43 = vand.u32 31, %v1444_v37 }
 0x1aa   :  { %v2289_v54 = vsel %vm2287_vm1, %v2288_v47, %v2286_v50  ;;  %v1339_v57 = vadd.s32 1, %v4909_v51  ;;  %v1377_v36 = vshll.u32 %v1337_v18, 8 }
 0x1ab   :  { %v2290_v61 = vadd.f32 1.0, %v2289_v54  ;;  %v1447_v53 = vsub.s32 32, %v1446_v43  ;;  %v1452_v6 = vshll.u32 %v9261_v10, %v1446_v43  ;;  %v1461_v18 = vshll.u32 %v9256_v20, %v1446_v43 }
 0x1ac   :  { %vm1340_vm2 = vcmp.gt.s32.totalorder %v1339_v57, 0 }
 0x1ad   :  { %v1341_v62 = vsel %vm1340_vm2, %v1339_v57, 0  ;;  %5952 = vrcp.f32 %v2290_v61 }
 0x1ae   :  { %v1343_v63 = vand.u32 31, %v1341_v62  ;;  %v1342_v7 = vshrl.u32 %v1341_v62, 5  ;;  %v1439_v62 = vand.u32 8388607, %v1432_v41 }
 0x1b0   :  { %v1344_v1 = vsub.s32 32, %v1343_v63  ;;  %v1355_v5 = vshll.u32 %v9263_v4, %v1343_v63  ;;  %v1346_v9 = vshll.u32 %v6348_v8, %v1343_v63  ;;  %v1349_v12 = vshll.u32 %v9261_v10, %v1343_v63 }
 0x1b1   :  { %v1352_v16 = vshll.u32 %v9259_v14, %v1343_v63  ;;  %v1358_v22 = vshll.u32 %v9256_v20, %v1343_v63  ;;  %vm1361_vm4 = vcmp.lt.s32.totalorder %v1342_v7, 1  ;;  %vm1363_vm5 = vcmp.lt.s32.totalorder %v1342_v7, 3 }
 0x1b2   :  { %v1347_v11 = vshrl.u32 %v9261_v10, %v1344_v1  ;;  %v1350_v15 = vshrl.u32 %v9259_v14, %v1344_v1  ;;  %v1353_v17 = vshrl.u32 %v9263_v4, %v1344_v1  ;;  %v1356_v21 = vshrl.u32 %v9256_v20, %v1344_v1 }
 0x1b3   :  { %v1359_v27 = vshrl.u32 %v9254_v26, %v1344_v1  ;;  %vm1362_vm6 = vcmp.lt.s32.totalorder %v1342_v7, 2  ;;  %vm1364_vm7 = vcmp.lt.s32.totalorder %v1342_v7, 4  ;;  %v1345_v38 = vshrl.u32 %v6348_v8, %v1344_v1 }
 0x1b4   :  { %v1348_v19 = vor.u32 %v1347_v11, %v1346_v9  ;;  %v1351_v23 = vor.u32 %v1350_v15, %v1349_v12  ;;  %v1354_v24 = vor.u32 %v1353_v17, %v1352_v16  ;;  %v1357_v25 = vor.u32 %v1356_v21, %v1355_v5 }
 0x1b5   :  { %v1360_v33 = vor.u32 %v1359_v27, %v1358_v22  ;;  %v1445_v63 = vshrl.u32 %v1444_v37, 5  ;;  %v1449_v1 = vshll.u32 %v6348_v8, %v1446_v43  ;;  %v1450_v5 = vshrl.u32 %v9261_v10, %v1447_v53 }
 0x1b6   :  { %v1369_v30 = vsel %vm1361_vm4, %v1348_v19, %v1351_v23  ;;  %v1373_v32 = vsel %vm1361_vm4, %v1351_v23, %v1354_v24  ;;  %v1370_v34 = vsel %vm1364_vm7, %v1357_v25, 920167782  ;;  %v1366_v45 = vsel %vm1364_vm7, %v1354_v24, 2102212464 }
 0x1b7   :  { %v1371_v40 = vsel %vm1363_vm5, %v1354_v24, %v1370_v34  ;;  %v6633_v44 = vpop.eup %5952  ;;  %v1374_v47 = vsel %vm1364_vm7, %v1360_v33, 1326507024  ;;  %v1365_v50 = vsel %vm1361_vm4, %v1345_v38, %v1348_v19  ;;  %v1367_v51 = vsel %vm1363_vm5, %v1351_v23, %v1366_v45 }
 0x1b8   :  { %v1372_v46 = vsel %vm1362_vm6, %v1369_v30, %v1371_v40  ;;  %v1375_v52 = vsel %vm1363_vm5, %v1357_v25, %v1374_v47  ;;  %v1368_v54 = vsel %vm1362_vm6, %v1365_v50, %v1367_v51  ;;  %v1453_v7 = vshrl.u32 %v9259_v14, %v1447_v53  ;;  %v1307_v40 = vld [vmem:[%s9235_s2 + $0x18] sm:$0xff] }
 0x1b9   :  { %v1376_v57 = vsel %vm1362_vm6, %v1373_v32, %v1375_v52  ;;  %v6641_v58 = vmul.u32.u64.low %v1377_v36, %v1372_v46  ;;  %v6642_v59 = vmul.u32.u64.high %v1377_v36, %v1372_v46, %v6641_v58  ;;  %v1384_v0 = vmul.u32 %v1377_v36, %v1368_v54 }
 0x1ba   :  { %v6645_v60 = vmul.u32.u64.low %v1377_v36, %v1376_v57  ;;  %v6646_v61 = vmul.u32.u64.high %v1377_v36, %v1376_v57, %v6645_v60  ;;  %v1455_v9 = vshll.u32 %v9259_v14, %v1446_v43  ;;  %v1456_v11 = vshrl.u32 %v9263_v4, %v1447_v53 }
 0x1bb   :  { %v1458_v12 = vshll.u32 %v9263_v4, %v1446_v43  ;;  %v1387_v15 = vadd.s32 1, %v6642_v59  ;;  %v1448_v16 = vshrl.u32 %v6348_v8, %v1447_v53  ;;  %v1459_v17 = vshrl.u32 %v9256_v20, %v1447_v53 }
 0x1bc   :  { %vm1386_vm8 = vc.u32 %v6646_v61, %v6641_v58  ;;  %v1451_v19 = vor.u32 %v1450_v5, %v1449_v1  ;;  %v1454_v21 = vor.u32 %v1453_v7, %v1452_v6  ;;  %v1462_v22 = vshrl.u32 %v9254_v26, %v1447_v53 }
 0x1bd   :  { %v1388_v23 = vsel %vm1386_vm8, %v1387_v15, %v6642_v59  ;;  %v1457_v24 = vor.u32 %v1456_v11, %v1455_v9  ;;  %v1460_v25 = vor.u32 %v1459_v17, %v1458_v12  ;;  %vm1464_vm9 = vcmp.lt.s32.totalorder %v1445_v63, 1 }
 0x1be   :  { %v378_v27 = vlaneseq  ;;  %v1389_v29 = vadd.s32 %v1388_v23, %v1384_v0  ;;  %v1463_v30 = vor.u32 %v1462_v22, %v1461_v18  ;;  %v4917_v32 = vadd.s32 4294967169, %v1539_v48 }
 0x1bf   :  { %v1440_v33 = vor.u32 8388608, %v1439_v62  ;;  %vm1465_vm10 = vcmp.lt.s32.totalorder %v1445_v63, 2  ;;  %vm1466_vm11 = vcmp.lt.s32.totalorder %v1445_v63, 3  ;;  %vm1467_vm12 = vcmp.lt.s32.totalorder %v1445_v63, 4 }
 0x1c0   :  { %v1390_v34 = vadd.s32 536870912, %v1389_v29  ;;  %v1468_v36 = vsel %vm1464_vm9, %v1448_v16, %v1451_v19  ;;  %v1469_v37 = vsel %vm1467_vm12, %v1457_v24, 2102212464  ;;  %v1472_v38 = vsel %vm1464_vm9, %v1451_v19, %v1454_v21 }
 0x1c1   :  { %v1470_v43 = vsel %vm1466_vm11, %v1454_v21, %v1469_v37  ;;  %v1473_v45 = vsel %vm1467_vm12, %v1460_v25, 920167782  ;;  %v1476_v46 = vsel %vm1464_vm9, %v1454_v21, %v1457_v24  ;;  %v1477_v47 = vsel %vm1467_vm12, %v1463_v30, 1326507024  ;;  %v376_v21 = vld [vmem:[%s9241_s8] sm:$0x3] }
 0x1c2   :  { %v6671_v48 = vshrl.u32 %v1390_v34, 30  ;;  %v1474_v50 = vsel %vm1466_vm11, %v1457_v24, %v1473_v45  ;;  %v1478_v51 = vsel %vm1466_vm11, %v1460_v25, %v1477_v47  ;;  %v1480_v54 = vshll.u32 %v1440_v33, 8 }
 0x1c3   :  { %v1475_v52 = vsel %vm1465_vm10, %v1472_v38, %v1474_v50  ;;  %v1479_v53 = vsel %vm1465_vm10, %v1476_v46, %v1478_v51  ;;  %v1315_v57 = vmul.f32 3.1415927, %v1307_v40  ;;  %v6675_v59 = vshrl.u32 %v378_v27, 7 }
 0x1c4   :  { %v1392_v60 = vshll.u32 %v6671_v48, 30  ;;  %v1471_v62 = vsel %vm1465_vm10, %v1468_v36, %v1470_v43  ;;  %v1545_v0 = vadd.s32 1, %v4917_v32  ;;  %v6700_v22 = vmul.f32 %v6633_v44, %v6551_v55 }
 0x1c5   :  { %v6679_v1 = vmul.u32.u64.low %v1480_v54, %v1479_v53  ;;  %v6680_v5 = vmul.u32.u64.high %v1480_v54, %v1479_v53, %v6679_v1  ;;  %v6682_v6 = vmul.u32.u64.low %v1480_v54, %v1475_v52  ;;  %v6683_v7 = vmul.u32.u64.high %v1480_v54, %v1475_v52, %v6682_v6 }
 0x1c6   :  { %v1393_v9 = vsub.s32 %v1389_v29, %v1392_v60  ;;  %vm1546_vm13 = vcmp.gt.s32.totalorder %v1545_v0, 0  ;;  %v6686_v12 = vmul.f32 0.22222222, %v1315_v57  ;;  %v1487_v16 = vmul.u32 %v1480_v54, %v1471_v62  ;;  %9312 = vst [vmem:[#allocation20_spill] sm:$0xff] %v6700_v22 }
 0x1c7   :  { %v1547_v11 = vsel %vm1546_vm13, %v1545_v0, 0  ;;  %v6689_v18 = vsub.s32 0, %v6675_v59  ;;  %v9249_v63 = vsub.s32 1, %v6675_v59  ;;  %vm1489_vm14 = vc.u32 %v6680_v5, %v6682_v6 }
 0x1c8   :  { %v1395_v15 = vsub.s32 0, %v1393_v9  ;;  %v1549_v17 = vand.u32 31, %v1547_v11  ;;  %v1490_v19 = vadd.s32 1, %v6683_v7  ;;  %v6704_v23 = vmul.f32 %v6633_v44, %v6571_v13 }
 0x1c9   :  { %9311 = vst [vmem:[#allocation19_spill] sm:$0xff] %v6689_v18  ;;  %v1641_v27 = vand.u32 2139095040, %v6686_v12  ;;  %v6709_v33 = vrot.slane %v376_v21, %v6689_v18  ;;  %v6713_v34 = vrot.slane %v376_v21, %v9249_v63  ;;  %v6717_v55 = vmul.f32 %v6633_v44, %v6589_v35 }
 0x1ca   :  { %9313 = vst [vmem:[#allocation21_spill] sm:$0xff] %v6704_v23  ;;  %v4910_v24 = vmin.u32 %v1395_v15, %v1393_v9  ;;  %v1491_v25 = vsel %vm1489_vm14, %v1490_v19, %v6683_v7  ;;  %v1550_v32 = vsub.s32 32, %v1549_v17  ;;  %v2356_v13 = vadd.f32 %v6704_v23, %v6700_v22 }
 0x1cb   :  { %v1492_v30 = vadd.s32 %v1491_v25, %v1487_v16  ;;  %9314 = vst [vmem:[#allocation22_spill] sm:$0xff] %v6717_v55  ;;  %v9253_v38 = vand.u32 2147483647, %v6611_v2  ;;  %v6722_v40 = vshrl.u32 %v1547_v11, 5  ;;  %v1552_v43 = vshll.u32 %v6348_v8, %v1549_v17 }
 0x1cc   :  { %v1397_v29 = vclz %v4910_v24  ;;  %v1561_v45 = vshll.u32 %v9263_v4, %v1549_v17  ;;  %v1642_v46 = vshrl.u32 %v1641_v27, 23  ;;  %v1385_v47 = vadd.s32 %v6641_v58, %v6646_v61 }
 0x1cd   :  { %v1493_v37 = vadd.s32 536870912, %v1492_v30  ;;  %v1562_v50 = vshrl.u32 %v9256_v20, %v1550_v32  ;;  %v1553_v52 = vshrl.u32 %v9261_v10, %v1550_v32  ;;  %v1564_v53 = vshll.u32 %v9256_v20, %v1549_v17 }
 0x1ce   :  { %v4911_v36 = vadd.s32 4294967294, %v1397_v29  ;;  %v1565_v54 = vshrl.u32 %v9254_v26, %v1550_v32  ;;  %v1555_v1 = vshll.u32 %v9261_v10, %v1549_v17  ;;  %v1556_v58 = vshrl.u32 %v9259_v14, %v1550_v32 }
 0x1cf   :  { %v6728_v35 = vshrl.u32 %v1493_v37, 30  ;;  %v1558_v61 = vshll.u32 %v9259_v14, %v1549_v17  ;;  %v1559_v7 = vshrl.u32 %v9263_v4, %v1550_v32  ;;  %v1563_v19 = vor.u32 %v1562_v50, %v1561_v45 }
 0x1d0   :  { %vm4912_vm15 = vcmp.lt.s32.totalorder %v4911_v36, 0  ;;  %v1542_v21 = vand.u32 8388607, %v9253_v38  ;;  %v1554_v24 = vor.u32 %v1553_v52, %v1552_v43  ;;  %vm1570_vm0 = vcmp.lt.s32.totalorder %v6722_v40, 4 }
 0x1d1   :  { %v1400_v51 = vsel %vm4912_vm15, 0, %v4911_v36  ;;  %v1495_v0 = vshll.u32 %v6728_v35, 30  ;;  %v1566_v17 = vor.u32 %v1565_v54, %v1564_v53  ;;  %v1557_v36 = vor.u32 %v1556_v58, %v1555_v1 }
 0x1d2   :  { %v1401_v57 = vsub.s32 32, %v1400_v51  ;;  %v1402_v60 = vshll.u32 %v1393_v9, %v1400_v51  ;;  %v1405_v62 = vsub.s32 4294967266, %v1400_v51  ;;  %v1551_v9 = vshrl.u32 %v6348_v8, %v1550_v32 }
 0x1d3   :  { %v6739_v16 = vsub.s32 %v1492_v30, %v1495_v0  ;;  %v1560_v37 = vor.u32 %v1559_v7, %v1558_v61  ;;  %vm1567_vm1 = vcmp.lt.s32.totalorder %v6722_v40, 1  ;;  %vm1569_vm2 = vcmp.lt.s32.totalorder %v6722_v40, 3 }
 0x1d4   :  { %v1403_v11 = vshrl.u32 %v1385_v47, %v1401_v57  ;;  %v1406_v15 = vadd.s32 127, %v1405_v62  ;;  %v1576_v32 = vsel %vm1570_vm0, %v1563_v19, 920167782  ;;  %v6752_v43 = vadd.f32 %v2356_v13, %v6717_v55 }
 0x1d5   :  { %v1498_v29 = vsub.s32 0, %v6739_v16  ;;  %v1543_v50 = vor.u32 8388608, %v1542_v21  ;;  %v9252_v51 = vand.u32 2147483647, %v6686_v12  ;;  %v6755_v52 = vadd.s32 4294967169, %v1642_v46 }
 0x1d6   :  { %v1404_v25 = vor.u32 %v1403_v11, %v1402_v60  ;;  %v1407_v27 = vshll.u32 %v1406_v15, 23  ;;  %vm1568_vm3 = vcmp.lt.s32.totalorder %v6722_v40, 2  ;;  %v1580_v57 = vsel %vm1570_vm0, %v1566_v17, 1326507024 }
 0x1d7   :  { %v4914_v47 = vmin.u32 %v1498_v29, %v6739_v16  ;;  %v1571_v60 = vsel %vm1567_vm1, %v1551_v9, %v1554_v24  ;;  %v1572_v62 = vsel %vm1570_vm0, %v1560_v37, 2102212464  ;;  %v1575_v13 = vsel %vm1567_vm1, %v1554_v24, %v1557_v36 }
 0x1d8   :  { %v1408_v30 = vor.u32 4788187, %v1407_v27  ;;  %v1411_v45 = vcvt.s32.f32 %v1404_v25  ;;  %v1577_v46 = vsel %vm1569_vm2, %v1560_v37, %v1576_v32  ;;  %v1488_v58 = vadd.s32 %v6682_v6, %v6680_v5 }
 0x1d9   :  { %v1500_v54 = vclz %v4914_v47  ;;  %v1579_v7 = vsel %vm1567_vm1, %v1557_v36, %v1560_v37  ;;  %vm1331_vm4 = vcmp.lt.s32.totalorder %v6599_v42, 0  ;;  %v1581_v21 = vsel %vm1569_vm2, %v1563_v19, %v1580_v57 }
 0x1da   :  { %v1409_v53 = vand.u32 2147483647, %v1408_v30  ;;  %v6778_v9 = vshll.u32 %v1543_v50, 8  ;;  %v1573_v6 = vsel %vm1569_vm2, %v1557_v36, %v1572_v62  ;;  %v1578_v27 = vsel %vm1568_vm3, %v1575_v13, %v1577_v46 }
 0x1db   :  { %v4915_v61 = vadd.s32 4294967294, %v1500_v54  ;;  %vm6793_vm5 = vcmp.le.f32.partialorder %v1329_v3, 0.7853982  ;;  %v1582_v47 = vsel %vm1568_vm3, %v1579_v7, %v1581_v21  ;;  %v6853_v19 = vand.u32 8388607, %v9252_v51 }
 0x1dc   :  { %v1412_v1 = vmul.f32 %v1411_v45, %v1409_v53  ;;  %v6807_v3 = vmul.u32.u64.low %v6778_v9, %v1578_v27  ;;  %v6808_v50 = vmul.u32.u64.high %v6778_v9, %v1578_v27, %v6807_v3  ;;  %vm1434_vm10 = vcmp.lt.s32.totalorder %v6605_v49, 0 }
 0x1dd   :  { %vm4916_vm6 = vcmp.lt.s32.totalorder %v4915_v61, 0  ;;  %vm6885_vm12 = vcmp.le.f32.partialorder %v1432_v41, 0.7853982  ;;  %vm1421_vm13 = vweird.f32 %v6599_v42  ;;  %vm2169_vm14 = vcmp.lt.f32.partialorder %v6596_v39, 4.5 }
 0x1de   :  { %v1413_v5 = vxor.u32 2147483648, %v1412_v1  ;;  %v1503_v57 = vsel %vm4916_vm6, 0, %v4915_v61 }
 0x1df   :  { %v1504_v62 = vsub.s32 32, %v1503_v57  ;;  %v1505_v13 = vshll.u32 %v6739_v16, %v1503_v57  ;;  %v1508_v46 = vsub.s32 4294967266, %v1503_v57 }
 0x1e0   :  { %v1414_v45 = vsel %vm1331_vm4, %v1413_v5, %v1412_v1  ;;  %v1415_v1 = vsub.s32 4, %v6671_v48 }
 0x1e1   :  { %v1417_v54 = vsel %vm6793_vm5, %v6599_v42, %v1414_v45  ;;  %v1506_v5 = vshrl.u32 %v1488_v58, %v1504_v62  ;;  %v1509_v61 = vadd.s32 127, %v1508_v46  ;;  %v6856_v62 = vadd.s32 1, %v6755_v52 }
 0x1e3   :  { %v1510_v40 = vshll.u32 %v1509_v61, 23  ;;  %vm1649_vm15 = vcmp.gt.s32.totalorder %v6856_v62, 0 }
 0x1e5   :  { %v1511_v46 = vor.u32 4788187, %v1510_v40 }
 0x25a   :  { %v502_v0 = vpop.f32.mrb[0].mxu1 }
 0x25b   :  { %v6773_v11 = vadd.f32 %v502_v0, %v6709_v33  ;;  %v504_v15 = vpop.f32.mrb[1].mxu1 }
 0x25c   :  { %v6781_v24 = vadd.f32 %v504_v15, %v6713_v34  ;;  %v506_v25 = vpop.f32.mrb[2].mxu1  ;;  %v6818_v7 = vmul.u32.u64.low %v6778_v9, %v1582_v47  ;;  %v6819_v15 = vmul.u32.u64.high %v6778_v9, %v1582_v47, %v6818_v7 }
 0x25d   :  { %v4821_v29 = vmul.f32 -1.442695, %v6773_v11  ;;  %v6789_v17 = vadd.f32 %v506_v25, %v6709_v33  ;;  %v508_v37 = vpop.f32.mrb[3].mxu1 }
 0x25e   :  { %v4822_v30 = vmul.f32 -1.442695, %v6781_v24  ;;  %v6799_v36 = vadd.f32 %v508_v37, %v6713_v34  ;;  %v6832_v37 = vsel %vm1568_vm3, %v1571_v60, %v1573_v6  ;;  %v6848_v6 = vmul.f32 0.33333334, %v6752_v43 }
 0x25f   :  { %5954 = vpow2.f32 %v4821_v29  ;;  %v4823_v32 = vmul.f32 -1.442695, %v6789_v17  ;;  %v1416_v29 = vsel %vm1331_vm4, %v1415_v1, %v6671_v48  ;;  %v6861_v1 = vadd.s32 1, %v6808_v50 }
 0x260   :  { %5956 = vpow2.f32 %v4822_v30  ;;  %v4824_v53 = vmul.f32 -1.442695, %v6799_v36  ;;  %v1418_v47 = vsel %vm6793_vm5, 0, %v1416_v29  ;;  %vm1592_vm11 = vc.u32 %v6819_v15, %v6807_v3 }
 0x261   :  { %5958 = vpow2.f32 %v4823_v32  ;;  %v1507_v32 = vor.u32 %v1506_v5, %v1505_v13  ;;  %v6844_v48 = vand.u32 3, %v1418_v47  ;;  %vm1524_vm3 = vweird.f32 %v6605_v49 }
 0x262   :  { %5960 = vpow2.f32 %v4824_v53  ;;  %v512_v0 = vpop.f32.mrb[4].mxu1 }
 0x263   :  { %v6822_v21 = vadd.f32 %v512_v0, %v6709_v33  ;;  %v514_v25 = vpop.f32.mrb[5].mxu1  ;;  %5962 = vcosq.f32 %v1417_v54  ;;  %v1590_v0 = vmul.u32 %v6778_v9, %v6832_v37  ;;  %vm1424_vm7 = vcmp.eq.s32.totalorder %v6844_v48, 0 }
 0x264   :  { %v6825_v27 = vadd.f32 %v514_v25, %v6713_v34  ;;  %v516_v16 = vpop.f32.mrb[6].mxu1  ;;  %5964 = vsinq.f32 %v1417_v54  ;;  %v1514_v5 = vcvt.s32.f32 %v1507_v32  ;;  %vm1423_vm8 = vcmp.lt.s32.totalorder %v6844_v48, 2 }
 0x265   :  { %v4825_v30 = vmul.f32 -1.442695, %v6822_v21  ;;  %v6836_v45 = vadd.f32 %v516_v16, %v6709_v33  ;;  %v518_v58 = vpop.f32.mrb[7].mxu1  ;;  %vm1427_vm9 = vcmp.eq.s32.totalorder %v6844_v48, 2  ;;  %v1512_v32 = vand.u32 2147483647, %v1511_v46 }
 0x266   :  { %v4826_v53 = vmul.f32 -1.442695, %v6825_v27  ;;  %v6842_v57 = vadd.f32 %v518_v58, %v6713_v34 }
 0x267   :  { %5966 = vpow2.f32 %v4825_v30  ;;  %v4827_v60 = vmul.f32 -1.442695, %v6836_v45 }
 0x268   :  { %5968 = vpow2.f32 %v4826_v53  ;;  %v4828_v54 = vmul.f32 -1.442695, %v6842_v57 }
 0x269   :  { %v5955_v13 = vpop.eup %5954  ;;  %5970 = vpow2.f32 %v4827_v60 }
 0x26a   :  { %v5957_v43 = vpop.eup %5956  ;;  %v589_v7 = vadd.f32 1.0, %v5955_v13  ;;  %5972 = vpow2.f32 %v4828_v54  ;;  %v522_v25 = vpop.f32.mrb[8].mxu1 }
 0x26b   :  { %v5959_v61 = vpop.eup %5958  ;;  %v590_v16 = vadd.f32 1.0, %v5957_v43  ;;  %v6865_v52 = vadd.f32 %v522_v25, %v6709_v33  ;;  %v524_v29 = vpop.f32.mrb[9].mxu1 }
 0x26c   :  { %v5961_v30 = vpop.eup %5960  ;;  %5974 = vrcp.f32 %v589_v7  ;;  %v591_v58 = vadd.f32 1.0, %v5959_v61  ;;  %v6870_v47 = vadd.f32 %v524_v29, %v6713_v34  ;;  %v526_v53 = vpop.f32.mrb[10].mxu1 }
 0x26d   :  { %v5963_v40 = vpop.eup %5962  ;;  %5976 = vrcp.f32 %v590_v16  ;;  %v592_v60 = vadd.f32 1.0, %v5961_v30  ;;  %v4829_v54 = vmul.f32 -1.442695, %v6865_v52  ;;  %v6875_v13 = vadd.f32 %v526_v53, %v6709_v33  ;;  %v528_v43 = vpop.f32.mrb[11].mxu1 }
 0x26e   :  { %v5965_v7 = vpop.eup %5964  ;;  %5978 = vrcp.f32 %v591_v58  ;;  %v4830_v25 = vmul.f32 -1.442695, %v6870_v47  ;;  %v6881_v61 = vadd.f32 %v528_v43, %v6713_v34  ;;  %v1428_v46 = vxor.u32 2147483648, %v5963_v40 }
 0x26f   :  { %5980 = vrcp.f32 %v592_v60  ;;  %v4831_v29 = vmul.f32 -1.442695, %v6875_v13  ;;  %v1425_v30 = vxor.u32 2147483648, %v5965_v7  ;;  %v1515_v43 = vmul.f32 %v1514_v5, %v1512_v32 }
 0x270   :  { %5982 = vpow2.f32 %v4829_v54  ;;  %v4832_v58 = vmul.f32 -1.442695, %v6881_v61  ;;  %v1429_v53 = vsel %vm1427_vm9, %v1428_v46, %v5965_v7  ;;  %v1518_v60 = vsub.s32 4, %v6728_v35 }
 0x271   :  { %v5967_v63 = vpop.eup %5966  ;;  %5984 = vpow2.f32 %v4830_v25  ;;  %v1426_v41 = vsel %vm1424_vm7, %v5963_v40, %v1425_v30  ;;  %v1516_v26 = vxor.u32 2147483648, %v1515_v43 }
 0x272   :  { %v5969_v28 = vpop.eup %5968  ;;  %v593_v51 = vadd.f32 1.0, %v5967_v63  ;;  %5986 = vpow2.f32 %v4831_v29  ;;  %v532_v38 = vpop.f32.mrb[12].mxu1  ;;  %v1430_v54 = vsel %vm1423_vm8, %v1426_v41, %v1429_v53 }
 0x273   :  { %v5971_v20 = vpop.eup %5970  ;;  %v594_v7 = vadd.f32 1.0, %v5969_v28  ;;  %5988 = vpow2.f32 %v4832_v58  ;;  %v6901_v5 = vadd.f32 %v532_v38, %v6709_v33  ;;  %v534_v32 = vpop.f32.mrb[13].mxu1  ;;  %v1431_v40 = vsel %vm1421_vm13, nan, %v1430_v54 }
 0x274   :  { %v5973_v25 = vpop.eup %5972  ;;  %5990 = vrcp.f32 %v593_v51  ;;  %v595_v46 = vadd.f32 1.0, %v5971_v20  ;;  %v6906_v63 = vadd.f32 %v534_v32, %v6713_v34  ;;  %v536_v29 = vpop.f32.mrb[14].mxu1  ;;  %v2153_v48 = vadd.f32 1.0, %v1431_v40 }
 0x275   :  { %5992 = vrcp.f32 %v594_v7  ;;  %v596_v30 = vadd.f32 1.0, %v5973_v25  ;;  %v4833_v28 = vmul.f32 -1.442695, %v6901_v5  ;;  %v6910_v58 = vadd.f32 %v536_v29, %v6709_v33  ;;  %v538_v38 = vpop.f32.mrb[15].mxu1 }
 0x276   :  { %v5975_v53 = vpop.eup %5974  ;;  %5994 = vrcp.f32 %v595_v46  ;;  %v4834_v42 = vmul.f32 -1.442695, %v6906_v63  ;;  %v6914_v51 = vadd.f32 %v538_v38, %v6713_v34  ;;  %v2161_v20 = vmul.f32 0.5, %v2153_v48 }
 0x277   :  { %v5977_v41 = vpop.eup %5976  ;;  %5996 = vrcp.f32 %v596_v30  ;;  %v4835_v54 = vmul.f32 -1.442695, %v6910_v58  ;;  %v1517_v7 = vsel %vm1434_vm10, %v1516_v26, %v1515_v43  ;;  %v1594_v34 = vsel %vm1592_vm11, %v6861_v1, %v6808_v50 }
 0x278   :  { %v5979_v33 = vpop.eup %5978  ;;  %5998 = vpow2.f32 %v4833_v28  ;;  %v4836_v32 = vmul.f32 -1.442695, %v6914_v51  ;;  %v2177_v40 = vsel %vm2169_vm14, %v2161_v20, 0.0  ;;  %v637_v46 = vmul.f32 %v5975_v53, %v6773_v11 }
 0x279   :  { %v5981_v25 = vpop.eup %5980  ;;  %v639_v26 = vmul.f32 %v5979_v33, %v6789_v17  ;;  %6000 = vpow2.f32 %v4834_v42  ;;  %2187 = vperm.xlu0 %5764, %v2177_v40   ;;  %v1520_v43 = vsel %vm6885_vm12, %v6605_v49, %v1517_v7  ;;  %v638_v39 = vmul.f32 %v5977_v41, %v6781_v24  ;;  %v5866_v42 = vld [vmem:[#allocation10] sm:$0xff]   ;;  %v6962_v40 = vld [vmem:[#allocation10 + $0x88] sm:$0xff]  }
 0x27a   :  { %v5983_v29 = vpop.eup %5982  ;;  %v640_v48 = vmul.f32 %v5981_v25, %v6799_v36  ;;  %6002 = vpow2.f32 %v4835_v54  ;;  %v1519_v50 = vsel %vm1434_vm10, %v1518_v60, %v6728_v35  ;;  %v1595_v17 = vadd.s32 %v1594_v34, %v1590_v0  ;;  %v6941_v24 = vld [vmem:[#allocation10 + $0x80] sm:$0xff]  }
 0x27b   :  { %v5985_v1 = vpop.eup %5984  ;;  %v717_v11 = vpack.c.bf16 %v639_v26, %v637_v46  ;;  %v597_v30 = vadd.f32 1.0, %v5983_v29  ;;  %6004 = vpow2.f32 %v4836_v32  ;;  %v6946_v36 = vsel %vm1649_vm15, %v6856_v62, 0  ;;  %v1308_v35 = vld [vmem:[%s9235_s2 + $0x20] sm:$0xff]  ;;  %v5868_v32 = vld [vmem:[#allocation10 + $0x8] sm:$0xff]  }
 0x27c   :  { %v5987_v28 = vpop.eup %5986  ;;  %v598_v38 = vadd.f32 1.0, %v5985_v1  ;;  %v718_v53 = vpack.c.bf16 %v640_v48, %v638_v39  ;;  %6006 = vcosq.f32 %v1520_v43  ;;  %v1521_v37 = vsel %vm6885_vm12, 0, %v1519_v50 }
 0x27d   :  { %v5989_v60 = vpop.eup %5988  ;;  %6008 = vrcp.f32 %v597_v30  ;;  %v599_v9 = vadd.f32 1.0, %v5987_v28  ;;  %v1596_v0 = vadd.s32 536870912, %v1595_v17  ;;  %v6955_v62 = vsub.f32 %v6700_v22, %v6848_v6 }
 0x27e   :  { %v5991_v20 = vpop.eup %5990  ;;  %6010 = vrcp.f32 %v598_v38  ;;  %v600_v41 = vadd.f32 1.0, %v5989_v60  ;;  %1030 = vmatprep.mubr.bf16.mxu0 %v718_v53  ;;  %1103 = vmatprep.mubr.bf16.mxu1 %v718_v53  ;;  %v6959_v33 = vmul.f32 3.1415927, %v1308_v35  ;;  %v6964_v34 = vand.u32 3, %v1521_v37 }
 0x27f   :  { %v5993_v54 = vpop.eup %5992  ;;  %6012 = vrcp.f32 %v599_v9  ;;  %1031 = vmatmul.mubr.bf16.vlgmr.msra.gmra.mrb[8].mxu0 %v717_v11  ;;  %1104 = vmatmul.mubr.bf16.vlgmr.msra.gmra.mrb[16].mxu1 %v717_v11  ;;  %v6957_v7 = vshrl.u32 %v1596_v0, 30  ;;  %v1646_v25 = vor.u32 8388608, %v6853_v19  ;;  %v6968_v46 = vand.u32 31, %v6946_v36 }
 0x280   :  { %v5995_v16 = vpop.eup %5994  ;;  %6014 = vrcp.f32 %v600_v41  ;;  %5297 = vmatpush3.bf16.msra.mxu1 %v5866_v42  ;;  %5317 = vmatpush3.bf16.msra.mxu0 %v6941_v24  ;;  %v641_v29 = vmul.f32 %v5991_v20, %v6822_v21  ;;  %v642_v1 = vmul.f32 %v5993_v54, %v6825_v27  ;;  %v6979_v11 = vmul.f32 %v6633_v44, %v6556_v56  ;;  %v5870_v56 = vld [vmem:[#allocation10 + $0x10] sm:$0xff]  }
 0x281   :  { %v5997_v26 = vpop.eup %5996  ;;  %v643_v39 = vmul.f32 %v5995_v16, %v6836_v45  ;;  %5298 = vmatprep.subr.bf16.mxu1 %v9265_v31  ;;  %5318 = vmatprep.subr.bf16.mxu0 %v9265_v31  ;;  %6016 = vsinq.f32 %v1520_v43  ;;  %v1598_v48 = vshll.u32 %v6957_v7, 30  ;;  %v6982_v21 = vsub.s32 32, %v6968_v46  ;;  %v6991_v42 = vld [vmem:[#allocation10 + $0x90] sm:$0xff]  }
 0x282   :  { %v5999_v50 = vpop.eup %5998  ;;  %v644_v19 = vmul.f32 %v5997_v26, %v6842_v57  ;;  %9319 = vst [vmem:[#allocation23_spill] sm:$0xff] %v6979_v11  ;;  %v6986_v43 = vadd.s32 %v6807_v3, %v6819_v15  ;;  %vm1526_vm0 = vcmp.lt.s32.totalorder %v6964_v34, 2  ;;  %vm1527_vm1 = vcmp.eq.s32.totalorder %v6964_v34, 0  ;;  %v7013_v26 = vld [vmem:[#allocation10 + $0x98] sm:$0xff]  }
 0x283   :  { %v6001_v45 = vpop.eup %6000  ;;  %v601_v30 = vadd.f32 1.0, %v5999_v50  ;;  %v719_v28 = vpack.c.bf16 %v643_v39, %v641_v29  ;;  %v6988_v38 = vsub.s32 %v1595_v17, %v1598_v48  ;;  %vm1530_vm2 = vcmp.eq.s32.totalorder %v6964_v34, 2  ;;  %v5876_v34 = vld [vmem:[#allocation10 + $0x28] sm:$0xff]  }
 0x284   :  { %v6003_v53 = vpop.eup %6002  ;;  %v602_v27 = vadd.f32 1.0, %v6001_v45  ;;  %5299 = vmatpush3.bf16.msra.mxu1 %v5868_v32  ;;  %5319 = vmatpush3.bf16.msra.mxu0 %v6962_v40  ;;  %v720_v57 = vpack.c.bf16 %v644_v19, %v642_v1  ;;  %v1655_v17 = vshll.u32 %v6348_v8, %v6968_v46  ;;  %v7003_v37 = vshrl.u32 %v6946_v36, 5  ;;  %v5872_v36 = vld [vmem:[#allocation10 + $0x18] sm:$0xff]  }
 0x285   :  { %v6005_v35 = vpop.eup %6004  ;;  %6018 = vrcp.f32 %v601_v30  ;;  %v603_v3 = vadd.f32 1.0, %v6003_v53  ;;  %5300 = vmatprep.subr.bf16.mxu1 %v9265_v31  ;;  %5320 = vmatprep.subr.bf16.mxu0 %v9265_v31  ;;  %v1601_v15 = vsub.s32 0, %v6988_v38  ;;  %v1656_v0 = vshrl.u32 %v9261_v10, %v6982_v21 }
 0x286   :  { %v6007_v60 = vpop.eup %6006  ;;  %6020 = vrcp.f32 %v602_v27  ;;  %v604_v9 = vadd.f32 1.0, %v6005_v35  ;;  %1040 = vmatprep.mubr.bf16.mxu0 %v720_v57  ;;  %1111 = vmatprep.mubr.bf16.mxu1 %v720_v57  ;;  %v1658_v54 = vshll.u32 %v9261_v10, %v6968_v46  ;;  %v1659_v16 = vshrl.u32 %v9259_v14, %v6982_v21 }
 0x287   :  { %v6009_v20 = vpop.eup %6008  ;;  %6022 = vrcp.f32 %v603_v3  ;;  %1041 = vmatmul.mubr.bf16.gmra.mrb[12].mxu0 %v719_v28  ;;  %1112 = vmatmul.mubr.bf16.gmra.mrb[20].mxu1 %v719_v28  ;;  %v4918_v41 = vmin.u32 %v1601_v15, %v6988_v38  ;;  %v1531_v29 = vxor.u32 2147483648, %v6007_v60  ;;  %v7017_v39 = vshrl.u32 %v6348_v8, %v6982_v21 }
 0x288   :  { %v6011_v32 = vpop.eup %6010  ;;  %6024 = vrcp.f32 %v604_v9  ;;  %5301 = vmatpush3.bf16.msra.mxu1 %v5870_v56  ;;  %5321 = vmatpush3.bf16.msra.mxu0 %v6991_v42  ;;  %v7019_v48 = vshll.u32 %v1646_v25, 8  ;;  %v645_v1 = vmul.f32 %v6009_v20, %v6865_v52  ;;  %v7025_v30 = vor.u32 %v1656_v0, %v1655_v17 }
 0x289   :  { %v6013_v50 = vpop.eup %6012  ;;  %v646_v19 = vmul.f32 %v6011_v32, %v6870_v47  ;;  %5302 = vmatprep.subr.bf16.mxu1 %v9265_v31  ;;  %5322 = vmatprep.subr.bf16.mxu0 %v9265_v31  ;;  %v1603_v45 = vclz %v4918_v41  ;;  %v1661_v27 = vshll.u32 %v9259_v14, %v6968_v46  ;;  %v1662_v25 = vshrl.u32 %v9263_v4, %v6982_v21  ;;  %v7048_v41 = vld [vmem:[#allocation10 + $0xa0] sm:$0xff]  }
 0x28a   :  { %v6015_v28 = vpop.eup %6014  ;;  %v647_v53 = vmul.f32 %v6013_v50, %v6875_v13  ;;  %v1664_v52 = vshll.u32 %v9263_v4, %v6968_v46  ;;  %v7035_v35 = vor.u32 %v1659_v16, %v1658_v54  ;;  %v9320_v3 = vmov 920167782  }
 0x28b   :  { %v6017_v47 = vpop.eup %6016  ;;  %v648_v57 = vmul.f32 %v6015_v28, %v6881_v61  ;;  %v4919_v56 = vadd.s32 4294967294, %v1603_v45  ;;  %v1665_v15 = vshrl.u32 %v9320_v3, %v6982_v21  ;;  %v7044_v0 = vshll.u32 %v9320_v3, %v6968_v46  ;;  %v5874_v61 = vld [vmem:[#allocation10 + $0x20] sm:$0xff]  }
 0x28c   :  { %5303 = vmatpush3.bf16.msra.mxu1 %v5872_v36  ;;  %5323 = vmatpush3.bf16.msra.mxu0 %v7013_v26  ;;  %v721_v13 = vpack.c.bf16 %v647_v53, %v645_v1  ;;  %v1528_v17 = vxor.u32 2147483648, %v6017_v47  ;;  %v1532_v9 = vsel %vm1530_vm2, %v1531_v29, %v6017_v47  ;;  %v1663_v54 = vor.u32 %v1662_v25, %v1661_v27 }
 0x28d   :  { %v722_v20 = vpack.c.bf16 %v648_v57, %v646_v19  ;;  %5304 = vmatprep.subr.bf16.mxu1 %v9265_v31  ;;  %5324 = vmatprep.subr.bf16.mxu0 %v9265_v31  ;;  %vm4920_vm4 = vcmp.lt.s32.totalorder %v4919_v56, 0  ;;  %v9321_v16 = vmov 1326507024   ;;  %v1666_v50 = vor.u32 %v1665_v15, %v1664_v52  ;;  %v7064_v52 = vld [vmem:[#allocation10 + $0xa8] sm:$0xff]  }
 0x28e   :  { %v1668_v32 = vshrl.u32 %v9321_v16, %v6982_v21  ;;  %v1529_v36 = vsel %vm1527_vm1, %v6007_v60, %v1528_v17  ;;  %v1606_v29 = vsel %vm4920_vm4, 0, %v4919_v56  ;;  %vm1670_vm5 = vcmp.lt.s32.totalorder %v7003_v37, 1 }
 0x28f   :  { %v6019_v46 = vpop.eup %6018  ;;  %1050 = vmatprep.mubr.bf16.mxu0 %v722_v20  ;;  %1119 = vmatprep.mubr.bf16.mxu1 %v722_v20  ;;  %v1533_v1 = vsel %vm1526_vm0, %v1529_v36, %v1532_v9  ;;  %v1607_v19 = vsub.s32 32, %v1606_v29  ;;  %v1608_v45 = vshll.u32 %v6988_v38, %v1606_v29  ;;  %v1611_v28 = vsub.s32 4294967266, %v1606_v29  ;;  %v6150_v29 = vld [vmem:[%s9235_s2 + $0x8] sm:$0xff] }
 0x290   :  { %v6021_v53 = vpop.eup %6020  ;;  %v649_v21 = vmul.f32 %v6019_v46, %v6901_v5  ;;  %1051 = vmatmul.mubr.bf16.gmra.mrb[16].mxu0 %v721_v13  ;;  %1120 = vmatmul.mubr.bf16.gmra.mrb[24].mxu1 %v721_v13  ;;  %v1534_v60 = vsel %vm1524_vm3, nan, %v1533_v1  ;;  %v1669_v27 = vor.u32 %v1668_v32, %v7044_v0  ;;  %vm1671_vm6 = vcmp.lt.s32.totalorder %v7003_v37, 2 }
 0x291   :  { %v6023_v25 = vpop.eup %6022  ;;  %5305 = vmatpush3.bf16.msra.mxu1 %v5874_v61  ;;  %5325 = vmatpush3.bf16.msra.mxu0 %v7048_v41  ;;  %v2154_v38 = vadd.f32 1.0, %v1534_v60  ;;  %v1609_v47 = vshrl.u32 %v6986_v43, %v1607_v19  ;;  %v1612_v5 = vadd.s32 127, %v1611_v28  ;;  %vm1672_vm7 = vcmp.lt.s32.totalorder %v7003_v37, 3  ;;  %v7087_v61 = vld [vmem:[#allocation10 + $0xb0] sm:$0xff]  }
 0x292   :  { %v6025_v57 = vpop.eup %6024  ;;  %v650_v49 = vmul.f32 %v6021_v53, %v6906_v63  ;;  %v651_v56 = vmul.f32 %v6023_v25, %v6910_v58  ;;  %5306 = vmatprep.subr.bf16.mxu1 %v9265_v31  ;;  %5326 = vmatprep.subr.bf16.mxu0 %v9265_v31  ;;  %vm1673_vm8 = vcmp.lt.s32.totalorder %v7003_v37, 4  ;;  %v1674_v15 = vsel %vm1670_vm5, %v7017_v39, %v7025_v30 }
 0x293   :  { %v652_v43 = vmul.f32 %v6025_v57, %v6914_v51  ;;  %v1610_v13 = vor.u32 %v1609_v47, %v1608_v45  ;;  %v1613_v17 = vshll.u32 %v1612_v5, 23  ;;  %v1678_v63 = vsel %vm1670_vm5, %v7025_v30, %v7035_v35  ;;  %v5878_v51 = vld [vmem:[#allocation10 + $0x30] sm:$0xff]  }
 0x294   :  { %v723_v58 = vpack.c.bf16 %v651_v56, %v649_v21  ;;  %v2162_v9 = vmul.f32 0.5, %v2154_v38  ;;  %v1675_v0 = vsel %vm1673_vm8, %v1663_v54, 2102212464  ;;  %v1679_v20 = vsel %vm1673_vm8, %v1666_v50, 920167782  ;;  %v6151_v45 = vld [vmem:[%s9233_s0 + $0x18] sm:$0xff] }
 0x295   :  { %5307 = vmatpush3.bf16.msra.mxu1 %v5876_v34  ;;  %5327 = vmatpush3.bf16.msra.mxu0 %v7064_v52  ;;  %v724_v39 = vpack.c.bf16 %v652_v43, %v650_v49  ;;  %v1614_v32 = vor.u32 4788187, %v1613_v17  ;;  %v1617_v36 = vcvt.s32.f32 %v1610_v13  ;;  %v1682_v30 = vsel %vm1670_vm5, %v7035_v35, %v1663_v54  ;;  %v5880_v34 = vld [vmem:[#allocation10 + $0x38] sm:$0xff]   ;;  %v1309_v56 = vld [vmem:[%s9235_s2 + $0x28] sm:$0xff] }
 0x296   :  { %5308 = vmatprep.subr.bf16.mxu1 %v9265_v31  ;;  %5328 = vmatprep.subr.bf16.mxu0 %v9265_v31  ;;  %vm2170_vm9 = vcmp.lt.f32.partialorder %v6150_v29, 4.5  ;;  %v1676_v46 = vsel %vm1672_vm7, %v7035_v35, %v1675_v0  ;;  %v1680_v1 = vsel %vm1672_vm7, %v1663_v54, %v1679_v20  ;;  %v1683_v19 = vsel %vm1673_vm8, %v1669_v27, 1326507024  ;;  %v7124_v38 = vld [vmem:[#allocation10 + $0xb8] sm:$0xff]   ;;  %v6153_v20 = vld [vmem:[%s9233_s0 + $0x30] sm:$0xff] }
 0x297   :  { %1060 = vmatprep.mubr.bf16.mxu0 %v724_v39  ;;  %1127 = vmatprep.mubr.bf16.mxu1 %v724_v39  ;;  %v7108_v28 = vmul.f32 %v6151_v45, %v6633_v44  ;;  %v1615_v53 = vand.u32 2147483647, %v1614_v32  ;;  %v1681_v21 = vsel %vm1671_vm6, %v1678_v63, %v1680_v1  ;;  %v1684_v35 = vsel %vm1672_vm7, %v1666_v50, %v1683_v19 }
 0x298   :  { %1061 = vmatmul.mubr.bf16.gmra.mrb[20].mxu0 %v723_v58  ;;  %1128 = vmatmul.mubr.bf16.gmra.mrb[28].mxu1 %v723_v58  ;;  %v1677_v54 = vsel %vm1671_vm6, %v1674_v15, %v1676_v46  ;;  %v1685_v60 = vsel %vm1671_vm6, %v1682_v30, %v1684_v35  ;;  %v7119_v27 = vmul.u32.u64.low %v7019_v48, %v1681_v21  ;;  %v7120_v25 = vmul.u32.u64.high %v7019_v48, %v1681_v21, %v7119_v27 }
 0x299   :  { %9322 = vst [vmem:[#allocation24_spill] sm:$0xff] %v7108_v28  ;;  %5309 = vmatpush3.bf16.msra.mxu1 %v5878_v51  ;;  %5329 = vmatpush3.bf16.msra.mxu0 %v7087_v61  ;;  %v2178_v50 = vsel %vm2170_vm9, %v2162_v9, 0.0  ;;  %v1618_v47 = vmul.f32 %v1617_v36, %v1615_v53  ;;  %v7128_v5 = vmul.u32.u64.low %v7019_v48, %v1685_v60  ;;  %v7129_v57 = vmul.u32.u64.high %v7019_v48, %v1685_v60, %v7128_v5  ;;  %v6152_v9 = vld [vmem:[%s9233_s0 + $0x10] sm:$0xff] }
 0x29a   :  { %5310 = vmatprep.subr.bf16.mxu1 %v9265_v31  ;;  %5330 = vmatprep.subr.bf16.mxu0 %v9265_v31  ;;  %v2359_v37 = vpack.c.bf16 %v6848_v6, %v6848_v6  ;;  %vm1537_vm10 = vcmp.lt.s32.totalorder %v6611_v2, 0  ;;  %v1621_v49 = vsub.s32 4, %v6957_v7  ;;  %vm6353_vm11 = vmmov 0  }
 0x29b   :  { %5312 = vmatprep.mubr.msk.bf16.mxu1 %vm6353_vm11, %v9265_v31  ;;  %5332 = vmatprep.mubr.msk.bf16.mxu0 %vm6353_vm11, %v9265_v31  ;;  %v9323_v15 = vand.u32 2147483647, %v6611_v2  ;;  %v1619_v13 = vxor.u32 2147483648, %v1618_v47  ;;  %v1693_v17 = vmul.u32 %v7019_v48, %v1677_v54  ;;  %v7152_v63 = vmul.f32 0.22222222, %v6959_v33 }
 0x29c   :  { %v2449_v58 = vpack.c.bf16 %v6955_v62, %v6955_v62  ;;  %v7160_v0 = vmul.f32 %v6152_v9, %v6633_v44  ;;  %v7166_v39 = vmul.f32 %v6153_v20, %v6633_v44  ;;  %2192 = vperm.xlu0 %5764, %v2178_v50   ;;  %v1696_v33 = vadd.s32 1, %v7120_v25 }
 0x29d   :  { %vm7146_vm12 = vcmp.le.f32.partialorder %v9323_v15, 0.7853982  ;;  %5311 = vmatpush3.bf16.msra.mxu1 %v5880_v34  ;;  %5331 = vmatpush3.bf16.msra.mxu0 %v7124_v38  ;;  %v2622_v62 = vsub.f32 %v6979_v11, %v7108_v28  ;;  %v1620_v48 = vsel %vm1537_vm10, %v1619_v13, %v1618_v47  ;;  %vm1695_vm13 = vc.u32 %v7129_v57, %v7119_v27  ;;  %v1310_v34 = vld [vmem:[%s9235_s2 + $0x30] sm:$0xff] }
 0x29e   :  { %9326 = vst [vmem:[#allocation25_spill] sm:$0xff] %v7160_v0  ;;  %9327 = vst [vmem:[#allocation26_spill] sm:$0xff] %v7166_v39  ;;  %v1317_v51 = vmul.f32 3.1415927, %v1309_v56  ;;  %5336 = vmatprep.subr.bf16.mxu1 %v9265_v31  ;;  %5356 = vmatprep.subr.bf16.mxu0 %v9265_v31  ;;  %v1622_v32 = vsel %vm1537_vm10, %v1621_v49, %v6957_v7  ;;  %v1623_v36 = vsel %vm7146_vm12, %v6611_v2, %v1620_v48  ;;  %v6154_v48 = vld [vmem:[%s9235_s2 + $0x10] sm:$0xff] }
 0x29f   :  { %v1697_v30 = vsel %vm1695_vm13, %v1696_v33, %v7120_v25  ;;  %v1741_v29 = vand.u32 2147483647, %v7152_v63  ;;  %6026 = vcosq.f32 %v1623_v36  ;;  %v1744_v1 = vand.u32 2139095040, %v7152_v63 }
 0x2a0   :  { %v1698_v46 = vadd.s32 %v1697_v30, %v1693_v17  ;;  %5313 = vmatmul.mubr.bf16.vlgmr.msra.gmra.mrb[32].mxu1 %v2359_v37  ;;  %5333 = vmatmul.mubr.bf16.vlgmr.msra.gmra.mrb[24].mxu0 %v2449_v58  ;;  %v7189_v19 = vsub.f32 %v6704_v23, %v6848_v6  ;;  %v7193_v7 = vsub.f32 %v6717_v55, %v6848_v6  ;;  %6028 = vsinq.f32 %v1623_v36 }
 0x2a1   :  { %v2713_v45 = vsub.f32 %v7160_v0, %v7166_v39  ;;  %5337 = vmatpush3.bf16.msra.mxu1 %v6941_v24  ;;  %5357 = vmatpush3.bf16.msra.mxu0 %v6941_v24  ;;  %v1624_v53 = vsel %vm7146_vm12, 0, %v1622_v32  ;;  %v1745_v35 = vshrl.u32 %v1744_v1, 23  ;;  %v7201_v54 = vmul.f32 0.22222222, %v1317_v51 }
 0x2a2   :  { %v1699_v21 = vadd.s32 536870912, %v1698_v46  ;;  %5338 = vmatprep.subr.bf16.mxu1 %v9265_v31  ;;  %5358 = vmatprep.subr.bf16.mxu0 %v9265_v31  ;;  %v7205_v6 = vmul.f32 0.5, %v2622_v62  ;;  %v1748_v60 = vand.u32 8388607, %v1741_v29  ;;  %v2539_v50 = vpack.c.bf16 %v7189_v19, %v7189_v19 }
 0x2a3   :  { %5352 = vmatprep.mubr.msk.bf16.mxu1 %vm6353_vm11, %v9265_v31  ;;  %5372 = vmatprep.mubr.msk.bf16.mxu0 %vm6353_vm11, %v9265_v31  ;;  %v4925_v25 = vadd.s32 4294967169, %v1745_v35  ;;  %v1628_v47 = vand.u32 3, %v1624_v53  ;;  %v1847_v5 = vand.u32 2139095040, %v7201_v54  ;;  %v2581_v37 = vpack.c.bf16 %v7193_v7, %v7193_v7 }
 0x2a4   :  { %v7213_v24 = vshrl.u32 %v1699_v21, 30  ;;  %v7225_v49 = vmul.f32 0.5, %v2713_v45  ;;  %v2624_v43 = vpack.c.bf16 %v7205_v6, %v7205_v6  ;;  %v1749_v13 = vor.u32 8388608, %v1748_v60 }
 0x2a5   :  { %5339 = vmatpush3.bf16.msra.mxu1 %v6962_v40  ;;  %5359 = vmatpush3.bf16.msra.mxu0 %v6962_v40  ;;  %v1751_v15 = vadd.s32 1, %v4925_v25  ;;  %v1848_v17 = vshrl.u32 %v1847_v5, 23  ;;  %v1318_v58 = vmul.f32 3.1415927, %v1310_v34  ;;  %vm1627_vm14 = vweird.f32 %v6611_v2 }
 0x2a6   :  { %v1701_v56 = vshll.u32 %v7213_v24, 30  ;;  %5340 = vmatprep.subr.bf16.mxu1 %v9265_v31  ;;  %5360 = vmatprep.subr.bf16.mxu0 %v9265_v31  ;;  %v1844_v9 = vand.u32 2147483647, %v7201_v54  ;;  %vm1629_vm0 = vcmp.lt.s32.totalorder %v1628_v47, 2  ;;  %vm1630_vm1 = vcmp.eq.s32.totalorder %v1628_v47, 0 }
 0x2a7   :  { %vm1752_vm15 = vcmp.gt.s32.totalorder %v1751_v15, 0  ;;  %v4929_v33 = vadd.s32 4294967169, %v1848_v17  ;;  %vm1633_vm2 = vcmp.eq.s32.totalorder %v1628_v47, 2  ;;  %vm2171_vm3 = vcmp.lt.f32.partialorder %v6154_v48, 4.5 }
 0x2a8   :  { %v7233_v40 = vsub.s32 %v1698_v46, %v1701_v56  ;;  %v1753_v20 = vsel %vm1752_vm15, %v1751_v15, 0  ;;  %v1694_v51 = vadd.s32 %v7119_v27, %v7129_v57  ;;  %v7250_v45 = vmul.f32 0.22222222, %v1318_v58 }
 0x2a9   :  { %v6027_v62 = vpop.eup %6026  ;;  %5341 = vmatpush3.bf16.msra.mxu1 %v6991_v42  ;;  %5361 = vmatpush3.bf16.msra.mxu0 %v6991_v42  ;;  %v1755_v36 = vand.u32 31, %v1753_v20  ;;  %v7246_v1 = vshrl.u32 %v1753_v20, 5  ;;  %v7248_v42 = vshll.u32 %v1749_v13, 8  ;;  %v1724_v27 = vsub.s32 4, %v7213_v24 }
 0x2aa   :  { %v1704_v32 = vsub.s32 0, %v7233_v40  ;;  %v6029_v30 = vpop.eup %6028  ;;  %5342 = vmatprep.subr.bf16.mxu1 %v9265_v31  ;;  %5362 = vmatprep.subr.bf16.mxu0 %v9265_v31  ;;  %v1634_v46 = vxor.u32 2147483648, %v6027_v62  ;;  %v7256_v57 = vand.u32 8388607, %v1844_v9  ;;  %v7260_v34 = vadd.s32 1, %v4929_v33 }
 0x2ab   :  { %v1631_v53 = vxor.u32 2147483648, %v6029_v30  ;;  %v1756_v60 = vsub.s32 32, %v1755_v36  ;;  %v1758_v25 = vshll.u32 %v6348_v8, %v1755_v36  ;;  %vm1640_vm4 = vcmp.lt.s32.totalorder %v6686_v12, 0 }
 0x2ac   :  { %v4922_v21 = vmin.u32 %v1704_v32, %v7233_v40  ;;  %v1635_v35 = vsel %vm1633_vm2, %v1634_v46, %v6029_v30  ;;  %v1761_v15 = vshll.u32 %v9261_v10, %v1755_v36  ;;  %v1764_v13 = vshll.u32 %v9259_v14, %v1755_v36 }
 0x2ad   :  { %5343 = vmatpush3.bf16.msra.mxu1 %v7013_v26  ;;  %5363 = vmatpush3.bf16.msra.mxu0 %v7013_v26  ;;  %v1632_v5 = vsel %vm1630_vm1, %v6027_v62, %v1631_v53  ;;  %v1757_v58 = vshrl.u32 %v6348_v8, %v1756_v60  ;;  %v1759_v20 = vshrl.u32 %v9261_v10, %v1756_v60  ;;  %vm1773_vm5 = vcmp.lt.s32.totalorder %v7246_v1, 1 }
 0x2ae   :  { %v1706_v56 = vclz %v4922_v21  ;;  %5344 = vmatprep.subr.bf16.mxu1 %v9265_v31  ;;  %5364 = vmatprep.subr.bf16.mxu0 %v9265_v31  ;;  %v1636_v17 = vsel %vm1629_vm0, %v1632_v5, %v1635_v35  ;;  %v1762_v62 = vshrl.u32 %v9259_v14, %v1756_v60  ;;  %v1765_v32 = vshrl.u32 %v9263_v4, %v1756_v60 }
 0x2af   :  { %v1637_v26 = vsel %vm1627_vm14, nan, %v1636_v17  ;;  %v1760_v46 = vor.u32 %v1759_v20, %v1758_v25  ;;  %v1767_v53 = vshll.u32 %v9263_v4, %v1755_v36  ;;  %v1768_v47 = vshrl.u32 %v9320_v3, %v1756_v60 }
 0x2b0   :  { %v4923_v33 = vadd.s32 4294967294, %v1706_v56  ;;  %v2155_v30 = vadd.f32 1.0, %v1637_v26  ;;  %v1763_v21 = vor.u32 %v1762_v62, %v1761_v15  ;;  %v1766_v35 = vor.u32 %v1765_v32, %v1764_v13 }
 0x2b1   :  { %5345 = vmatpush3.bf16.msra.mxu1 %v7048_v41  ;;  %5365 = vmatpush3.bf16.msra.mxu0 %v7048_v41  ;;  %v1770_v2 = vshll.u32 %v9320_v3, %v1755_v36  ;;  %v1769_v25 = vor.u32 %v1768_v47, %v1767_v53  ;;  %v1771_v17 = vshrl.u32 %v9321_v16, %v1756_v60  ;;  %v9328_v20 = vand.u32 2147483647, %v6686_v12 }
 0x2b2   :  { %vm4924_vm6 = vcmp.lt.s32.totalorder %v4923_v33, 0  ;;  %5346 = vmatprep.subr.bf16.mxu1 %v9265_v31  ;;  %5366 = vmatprep.subr.bf16.mxu0 %v9265_v31  ;;  %v2163_v5 = vmul.f32 0.5, %v2155_v30  ;;  %vm1774_vm8 = vcmp.lt.s32.totalorder %v7246_v1, 2  ;;  %vm1775_vm9 = vcmp.lt.s32.totalorder %v7246_v1, 3 }
 0x2b3   :  { %v1709_v56 = vsel %vm4924_vm6, 0, %v4923_v33  ;;  %vm7288_vm7 = vcmp.le.f32.partialorder %v9328_v20, 0.7853982  ;;  %v1772_v62 = vor.u32 %v1771_v17, %v1770_v2  ;;  %vm1776_vm10 = vcmp.lt.s32.totalorder %v7246_v1, 4 }
 0x2b4   :  { %v1710_v41 = vsub.s32 32, %v1709_v56  ;;  %v1711_v15 = vshll.u32 %v7233_v40, %v1709_v56  ;;  %v1714_v13 = vsub.s32 4294967266, %v1709_v56  ;;  %v2179_v36 = vsel %vm2171_vm3, %v2163_v5, 0.0 }
 0x2b5   :  { %5347 = vmatpush3.bf16.msra.mxu1 %v7064_v52  ;;  %5367 = vmatpush3.bf16.msra.mxu0 %v7064_v52  ;;  %v1777_v32 = vsel %vm1773_vm5, %v1757_v58, %v1760_v46  ;;  %v1778_v40 = vsel %vm1776_vm10, %v1766_v35, 2102212464  ;;  %v7308_v48 = vsel %vm1640_vm4, %v1724_v27, %v7213_v24  ;;  %v1782_v58 = vsel %vm1776_vm10, %v1769_v25, 920167782 }
 0x2b6   :  { %v1712_v60 = vshrl.u32 %v1694_v51, %v1710_v41  ;;  %v1715_v33 = vadd.s32 127, %v1714_v13  ;;  %5348 = vmatprep.subr.bf16.mxu1 %v9265_v31  ;;  %5368 = vmatprep.subr.bf16.mxu0 %v9265_v31  ;;  %v1779_v52 = vsel %vm1775_vm9, %v1763_v21, %v1778_v40  ;;  %v1781_v51 = vsel %vm1773_vm5, %v1760_v46, %v1763_v21 }
 0x2b7   :  { %2197 = vperm.xlu1 %5765, %v2179_v36   ;;  %v1783_v47 = vsel %vm1775_vm9, %v1766_v35, %v1782_v58  ;;  %v1785_v2 = vsel %vm1773_vm5, %v1763_v21, %v1766_v35  ;;  %v1780_v24 = vsel %vm1774_vm8, %v1777_v32, %v1779_v52  ;;  %v1786_v46 = vsel %vm1776_vm10, %v1772_v62, 1326507024 }
 0x2b8   :  { %v1713_v30 = vor.u32 %v1712_v60, %v1711_v15  ;;  %v1716_v53 = vshll.u32 %v1715_v33, 23  ;;  %v1784_v27 = vsel %vm1774_vm8, %v1781_v51, %v1783_v47  ;;  %vm1855_vm12 = vcmp.gt.s32.totalorder %v7260_v34, 0  ;;  %v7354_v33 = vld [vmem:[#allocation10 + $0x40] sm:$0xff]  }
 0x2b9   :  { %5349 = vmatpush3.bf16.msra.mxu1 %v7087_v61  ;;  %5369 = vmatpush3.bf16.msra.mxu0 %v7087_v61  ;;  %v1787_v21 = vsel %vm1775_vm9, %v1769_v25, %v1786_v46  ;;  %v1856_v35 = vsel %vm1855_vm12, %v7260_v34, 0  ;;  %v7337_v20 = vmul.u32.u64.low %v7248_v42, %v1784_v27  ;;  %v7338_v41 = vmul.u32.u64.high %v7248_v42, %v1784_v27, %v7337_v20 }
 0x2ba   :  { %v1717_v5 = vor.u32 4788187, %v1716_v53  ;;  %v1720_v56 = vcvt.s32.f32 %v1713_v30  ;;  %5350 = vmatprep.subr.bf16.mxu1 %v9265_v31  ;;  %5370 = vmatprep.subr.bf16.mxu0 %v9265_v31  ;;  %v1788_v17 = vsel %vm1774_vm8, %v1785_v2, %v1787_v21  ;;  %v9258_v61 = vand.u32 2147483647, %v7250_v45 }
 0x2bb   :  { %v7343_v13 = vmul.u32.u64.low %v7248_v42, %v1788_v17  ;;  %v7344_v25 = vmul.u32.u64.high %v7248_v42, %v1788_v17, %v7343_v13  ;;  %v1858_v34 = vand.u32 31, %v1856_v35  ;;  %v1727_v36 = vsel %vm7288_vm7, 0, %v7308_v48 }
 0x2bc   :  { %v1718_v15 = vand.u32 2147483647, %v1717_v5  ;;  %v1796_v1 = vmul.u32 %v7248_v42, %v1780_v24  ;;  %v1852_v62 = vor.u32 8388608, %v7256_v57  ;;  %v1950_v60 = vand.u32 2139095040, %v7250_v45  ;;  %v7380_v5 = vld [vmem:[#allocation10 + $0x48] sm:$0xff]  }
 0x2bd   :  { %5351 = vmatpush3.bf16.msra.mxu1 %v7124_v38  ;;  %5371 = vmatpush3.bf16.msra.mxu0 %v7124_v38  ;;  %v7356_v40 = vshrl.u32 %v1856_v35, 5  ;;  %v1859_v52 = vsub.s32 32, %v1858_v34  ;;  %v1861_v51 = vshll.u32 %v6348_v8, %v1858_v34  ;;  %v1799_v42 = vadd.s32 1, %v7338_v41 }
 0x2be   :  { %v1721_v32 = vmul.f32 %v1720_v56, %v1718_v15  ;;  %5376 = vmatprep.subr.bf16.mxu1 %v9265_v31  ;;  %5396 = vmatprep.subr.bf16.mxu0 %v9265_v31  ;;  %v1864_v57 = vshll.u32 %v9261_v10, %v1858_v34  ;;  %v1867_v58 = vshll.u32 %v9259_v14, %v1858_v34  ;;  %v1951_v46 = vshrl.u32 %v1950_v60, 23 }
 0x2bf   :  { %v1870_v38 = vshll.u32 %v9263_v4, %v1858_v34  ;;  %vm1798_vm13 = vc.u32 %v7344_v25, %v7337_v20  ;;  %v1860_v53 = vshrl.u32 %v6348_v8, %v1859_v52  ;;  %v1873_v47 = vshll.u32 %v9320_v3, %v1858_v34 }
 0x2c0   :  { %v1722_v30 = vxor.u32 2147483648, %v1721_v32  ;;  %5353 = vmatmul.mubr.bf16.vlgmr.msra.gmra.mrb[36].mxu1 %v2539_v50  ;;  %5373 = vmatmul.mubr.bf16.vlgmr.msra.gmra.mrb[28].mxu0 %v2581_v37  ;;  %v1800_v2 = vsel %vm1798_vm13, %v1799_v42, %v7338_v41  ;;  %v1862_v24 = vshrl.u32 %v9261_v10, %v1859_v52  ;;  %v1865_v27 = vshrl.u32 %v9259_v14, %v1859_v52 }
 0x2c1   :  { %5377 = vmatpush3.bf16.msra.mxu1 %v7354_v33  ;;  %5397 = vmatpush3.bf16.msra.mxu0 %v7354_v33  ;;  %v1801_v50 = vadd.s32 %v1800_v2, %v1796_v1  ;;  %v1868_v7 = vshrl.u32 %v9263_v4, %v1859_v52  ;;  %vm1876_vm14 = vcmp.lt.s32.totalorder %v7356_v40, 1  ;;  %v4933_v35 = vadd.s32 4294967169, %v1951_v46  ;;  %v7402_v1 = vld [vmem:[#allocation10 + $0x50] sm:$0xff]  }
 0x2c2   :  { %v1723_v19 = vsel %vm1640_vm4, %v1722_v30, %v1721_v32  ;;  %5378 = vmatprep.subr.bf16.mxu1 %v9265_v31  ;;  %5398 = vmatprep.subr.bf16.mxu0 %v9265_v31  ;;  %v1863_v56 = vor.u32 %v1862_v24, %v1861_v51  ;;  %v1866_v21 = vor.u32 %v1865_v27, %v1864_v57  ;;  %vm1879_vm15 = vcmp.lt.s32.totalorder %v7356_v40, 4 }
 0x2c3   :  { %v1726_v37 = vsel %vm7288_vm7, %v6686_v12, %v1723_v19  ;;  %5392 = vmatprep.mubr.msk.bf16.mxu1 %vm6353_vm11, %v9265_v31  ;;  %5412 = vmatprep.mubr.msk.bf16.mxu0 %vm6353_vm11, %v9265_v31  ;;  %v1802_v17 = vadd.s32 536870912, %v1801_v50  ;;  %v1869_v41 = vor.u32 %v1868_v7, %v1867_v58  ;;  %v1871_v15 = vshrl.u32 %v9320_v3, %v1859_v52 }
 0x2c4   :  { %6030 = vcosq.f32 %v1726_v37  ;;  %v1874_v13 = vshrl.u32 %v9321_v16, %v1859_v52  ;;  %v7398_v34 = vshll.u32 %v1852_v62, 8  ;;  %vm1878_vm0 = vcmp.lt.s32.totalorder %v7356_v40, 3 }
 0x2c5   :  { %6032 = vsinq.f32 %v1726_v37  ;;  %5379 = vmatpush3.bf16.msra.mxu1 %v7380_v5  ;;  %5399 = vmatpush3.bf16.msra.mxu0 %v7380_v5  ;;  %v7404_v60 = vshrl.u32 %v1802_v17, 30  ;;  %v1872_v32 = vor.u32 %v1871_v15, %v1870_v38  ;;  %v1881_v51 = vsel %vm1879_vm15, %v1869_v41, 2102212464 }
 0x2c6   :  { %5380 = vmatprep.subr.bf16.mxu1 %v9265_v31  ;;  %5400 = vmatprep.subr.bf16.mxu0 %v9265_v31  ;;  %v1875_v62 = vor.u32 %v1874_v13, %v1873_v47  ;;  %vm1877_vm1 = vcmp.lt.s32.totalorder %v7356_v40, 2  ;;  %v1884_v52 = vsel %vm1876_vm14, %v1863_v56, %v1866_v21  ;;  %v1957_v42 = vadd.s32 1, %v4933_v35  ;;  %v6155_v40 = vld [vmem:[%s9235_s2 + $0x18] sm:$0xff] }
 0x2c7   :  { %v1804_v57 = vshll.u32 %v7404_v60, 30  ;;  %v1880_v58 = vsel %vm1876_vm14, %v1860_v53, %v1863_v56  ;;  %v1885_v38 = vsel %vm1879_vm15, %v1872_v32, 920167782  ;;  %v1888_v30 = vsel %vm1876_vm14, %v1866_v21, %v1869_v41  ;;  %v7429_v53 = vld [vmem:[#allocation10 + $0x58] sm:$0xff]  }
 0x2c8   :  { %v1882_v47 = vsel %vm1878_vm0, %v1866_v21, %v1881_v51  ;;  %v1886_v2 = vsel %vm1878_vm0, %v1869_v41, %v1885_v38  ;;  %v1889_v24 = vsel %vm1879_vm15, %v1875_v62, 1326507024  ;;  %vm1958_vm2 = vcmp.gt.s32.totalorder %v1957_v42, 0  ;;  %v6156_v51 = vld [vmem:[%s9233_s0 + $0x28] sm:$0xff] }
 0x2c9   :  { %5381 = vmatpush3.bf16.msra.mxu1 %v7402_v1  ;;  %5401 = vmatpush3.bf16.msra.mxu0 %v7402_v1  ;;  %v1731_v27 = vand.u32 3, %v1727_v36  ;;  %v7435_v46 = vsub.s32 %v1801_v50, %v1804_v57  ;;  %v1887_v19 = vsel %vm1877_vm1, %v1884_v52, %v1886_v2  ;;  %v1959_v7 = vsel %vm1958_vm2, %v1957_v42, 0 }
 0x2ca   :  { %5382 = vmatprep.subr.bf16.mxu1 %v9265_v31  ;;  %5402 = vmatprep.subr.bf16.mxu0 %v9265_v31  ;;  %v2715_v37 = vpack.c.bf16 %v7225_v49, %v7225_v49  ;;  %v1890_v56 = vsel %vm1878_vm0, %v1872_v32, %v1889_v24  ;;  %v7446_v26 = vmul.u32.u64.low %v7398_v34, %v1887_v19  ;;  %v7447_v48 = vmul.u32.u64.high %v7398_v34, %v1887_v19, %v7446_v26  ;;  %v7468_v32 = vld [vmem:[#allocation10 + $0x60] sm:$0xff]  }
 0x2cb   :  { %vm1730_vm3 = vweird.f32 %v6686_v12  ;;  %v1807_v36 = vsub.s32 0, %v7435_v46  ;;  %v1883_v50 = vsel %vm1877_vm1, %v1880_v58, %v1882_v47  ;;  %v1891_v21 = vsel %vm1877_vm1, %v1888_v30, %v1890_v56 }
 0x2cc   :  { %v7457_v35 = vmul.u32.u64.low %v7398_v34, %v1891_v21  ;;  %v7458_v17 = vmul.u32.u64.high %v7398_v34, %v1891_v21, %v7457_v35  ;;  %v7462_v41 = vand.u32 8388607, %v9258_v61  ;;  %v7464_v15 = vand.u32 31, %v1959_v7 }
 0x2cd   :  { %5383 = vmatpush3.bf16.msra.mxu1 %v7429_v53  ;;  %5403 = vmatpush3.bf16.msra.mxu0 %v7429_v53  ;;  %vm1736_vm4 = vcmp.eq.s32.totalorder %v1731_v27, 2  ;;  %vm2172_vm5 = vcmp.lt.f32.partialorder %v6155_v40, 4.5  ;;  %v7477_v62 = vmul.f32 %v6156_v51, %v6633_v44  ;;  %v4926_v52 = vmin.u32 %v1807_v36, %v7435_v46 }
 0x2ce   :  { %v6031_v13 = vpop.eup %6030  ;;  %5384 = vmatprep.subr.bf16.mxu1 %v9265_v31  ;;  %5404 = vmatprep.subr.bf16.mxu0 %v9265_v31  ;;  %vm1733_vm6 = vcmp.eq.s32.totalorder %v1731_v27, 0  ;;  %v1899_v58 = vmul.u32 %v7398_v34, %v1883_v50  ;;  %v1902_v38 = vadd.s32 1, %v7447_v48  ;;  %vm1732_vm7 = vcmp.lt.s32.totalorder %v1731_v27, 2  ;;  %v7493_v34 = vld [vmem:[#allocation10 + $0x68] sm:$0xff]  }
 0x2cf   :  { %9331 = vst [vmem:[#allocation27_spill] sm:$0xff] %v7477_v62  ;;  %v6033_v42 = vpop.eup %6032  ;;  %v1737_v57 = vxor.u32 2147483648, %v6031_v13  ;;  %v1809_v47 = vclz %v4926_v52  ;;  %v1962_v2 = vsub.s32 32, %v7464_v15  ;;  %v1797_v19 = vadd.s32 %v7337_v20, %v7344_v25 }
 0x2d0   :  { %v1734_v30 = vxor.u32 2147483648, %v6033_v42  ;;  %vm1901_vm8 = vc.u32 %v7458_v17, %v7446_v26  ;;  %v1955_v56 = vor.u32 8388608, %v7462_v41  ;;  %v1964_v35 = vshll.u32 %v6348_v8, %v7464_v15 }
 0x2d1   :  { %v1738_v24 = vsel %vm1736_vm4, %v1737_v57, %v6033_v42  ;;  %5385 = vmatpush3.bf16.msra.mxu1 %v7468_v32  ;;  %5405 = vmatpush3.bf16.msra.mxu0 %v7468_v32  ;;  %v4927_v50 = vadd.s32 4294967294, %v1809_v47  ;;  %v1903_v21 = vsel %vm1901_vm8, %v1902_v38, %v7447_v48  ;;  %v7502_v51 = vshrl.u32 %v1959_v7, 5  ;;  %v7514_v7 = vld [vmem:[#allocation10 + $0x70] sm:$0xff]  }
 0x2d2   :  { %v1735_v36 = vsel %vm1733_vm6, %v6031_v13, %v1734_v30  ;;  %5386 = vmatprep.subr.bf16.mxu1 %v9265_v31  ;;  %5406 = vmatprep.subr.bf16.mxu0 %v9265_v31  ;;  %v1904_v25 = vadd.s32 %v1903_v21, %v1899_v58  ;;  %v1967_v52 = vshll.u32 %v9261_v10, %v7464_v15  ;;  %vm1743_vm10 = vcmp.lt.s32.totalorder %v7152_v63, 0 }
 0x2d3   :  { %v1739_v20 = vsel %vm1732_vm7, %v1735_v36, %v1738_v24  ;;  %vm4928_vm9 = vcmp.lt.s32.totalorder %v4927_v50, 0  ;;  %v1965_v48 = vshrl.u32 %v9261_v10, %v1962_v2  ;;  %v1970_v42 = vshll.u32 %v9259_v14, %v7464_v15 }
 0x2d4   :  { %v1740_v13 = vsel %vm1730_vm3, nan, %v1739_v20  ;;  %v1812_v38 = vsel %vm4928_vm9, 0, %v4927_v50  ;;  %v1905_v30 = vadd.s32 536870912, %v1904_v25  ;;  %v1968_v27 = vshrl.u32 %v9259_v14, %v1962_v2 }
 0x2d5   :  { %v2156_v57 = vadd.f32 1.0, %v1740_v13  ;;  %5387 = vmatpush3.bf16.msra.mxu1 %v7493_v34  ;;  %5407 = vmatpush3.bf16.msra.mxu0 %v7493_v34  ;;  %v1813_v58 = vsub.s32 32, %v1812_v38  ;;  %v1814_v12 = vshll.u32 %v7435_v46, %v1812_v38  ;;  %v1817_v47 = vsub.s32 4294967266, %v1812_v38 }
 0x2d6   :  { %v1971_v24 = vshrl.u32 %v9263_v4, %v1962_v2  ;;  %5388 = vmatprep.subr.bf16.mxu1 %v9265_v31  ;;  %5408 = vmatprep.subr.bf16.mxu0 %v9265_v31  ;;  %v7520_v50 = vshrl.u32 %v1905_v30, 30  ;;  %v1973_v21 = vshll.u32 %v9263_v4, %v7464_v15  ;;  %v1974_v20 = vshrl.u32 %v9320_v3, %v1962_v2 }
 0x2d7   :  { %v2164_v36 = vmul.f32 0.5, %v2156_v57  ;;  %v1815_v13 = vshrl.u32 %v1797_v19, %v1813_v58  ;;  %v1818_v61 = vadd.s32 127, %v1817_v47  ;;  %v1976_v46 = vshll.u32 %v9320_v3, %v7464_v15  ;;  %v7534_v19 = vld [vmem:[#allocation10 + $0x78] sm:$0xff]  }
 0x2d8   :  { %v1977_v38 = vshrl.u32 %v9321_v16, %v1962_v2  ;;  %v1907_v57 = vshll.u32 %v7520_v50, 30  ;;  %v1963_v30 = vshrl.u32 %v6348_v8, %v1962_v2  ;;  %v1966_v10 = vor.u32 %v1965_v48, %v1964_v35 }
 0x2d9   :  { %v2180_v14 = vsel %vm2172_vm5, %v2164_v36, 0.0  ;;  %5389 = vmatpush3.bf16.msra.mxu1 %v7514_v7  ;;  %5409 = vmatpush3.bf16.msra.mxu0 %v7514_v7  ;;  %v1816_v58 = vor.u32 %v1815_v13, %v1814_v12  ;;  %v1819_v47 = vshll.u32 %v1818_v61, 23  ;;  %v1969_v15 = vor.u32 %v1968_v27, %v1967_v52  ;;  %v7566_v12 = vld [vmem:[%s9235_s2 + $0x38] sm:$0xff] }
 0x2da   :  { %v1975_v4 = vor.u32 %v1974_v20, %v1973_v21  ;;  %5390 = vmatprep.subr.bf16.mxu1 %v9265_v31  ;;  %5410 = vmatprep.subr.bf16.mxu0 %v9265_v31  ;;  %v7538_v40 = vsub.s32 %v1904_v25, %v1907_v57  ;;  %v1972_v36 = vor.u32 %v1971_v24, %v1970_v42  ;;  %vm1979_vm12 = vcmp.lt.s32.totalorder %v7502_v51, 1 }
 0x2db   :  { %vm1982_vm13 = vcmp.lt.s32.totalorder %v7502_v51, 4  ;;  %2202 = vperm.xlu1 %5765, %v2180_v14   ;;  %vm7544_vm14 = vcmp.le.f32.partialorder %v1741_v29, 0.7853982  ;;  %v1820_v61 = vor.u32 4788187, %v1819_v47  ;;  %v1823_v35 = vcvt.s32.f32 %v1816_v58  ;;  %v7594_v47 = vld [vmem:[#allocation10 + $0x80] sm:$0xff]  }
 0x2dc   :  { %v1978_v52 = vor.u32 %v1977_v38, %v1976_v46  ;;  %v1910_v48 = vsub.s32 0, %v7538_v40  ;;  %vm1981_vm15 = vcmp.lt.s32.totalorder %v7502_v51, 3  ;;  %v1984_v25 = vsel %vm1982_vm13, %v1972_v36, 2102212464 }
 0x2dd   :  { %v7554_v42 = vshll.u32 %v1955_v56, 8  ;;  %5391 = vmatpush3.bf16.msra.mxu1 %v7534_v19  ;;  %5411 = vmatpush3.bf16.msra.mxu0 %v7534_v19  ;;  %v1821_v14 = vand.u32 2147483647, %v1820_v61  ;;  %vm1980_vm0 = vcmp.lt.s32.totalorder %v7502_v51, 2  ;;  %v1987_v29 = vsel %vm1979_vm12, %v1966_v10, %v1969_v15  ;;  %v6158_v61 = vld [vmem:[%s9233_s0 + $0x38] sm:$0xff] }
 0x2de   :  { %v1988_v27 = vsel %vm1982_vm13, %v1975_v4, 920167782  ;;  %5416 = vmatprep.subr.bf16.mxu1 %v9265_v31  ;;  %5436 = vmatprep.subr.bf16.mxu0 %v9265_v31  ;;  %v1827_v41 = vsub.s32 4, %v7404_v60  ;;  %v4930_v56 = vmin.u32 %v1910_v48, %v7538_v40  ;;  %v1983_v24 = vsel %vm1979_vm12, %v1963_v30, %v1966_v10 }
 0x2df   :  { %v1991_v21 = vsel %vm1979_vm12, %v1969_v15, %v1972_v36  ;;  %v1824_v20 = vmul.f32 %v1823_v35, %v1821_v14  ;;  %v1985_v13 = vsel %vm1981_vm15, %v1969_v15, %v1984_v25  ;;  %v1989_v46 = vsel %vm1981_vm15, %v1972_v36, %v1988_v27 }
 0x2e0   :  { %v1992_v38 = vsel %vm1982_vm13, %v1978_v52, 1326507024  ;;  %5393 = vmatmul.mubr.bf16.vlgmr.msra.gmra.mrb[40].mxu1 %v2624_v43  ;;  %5413 = vmatmul.mubr.bf16.vlgmr.msra.gmra.mrb[32].mxu0 %v2715_v37  ;;  %v1912_v10 = vclz %v4930_v56  ;;  %v1990_v57 = vsel %vm1980_vm0, %v1987_v29, %v1989_v46  ;;  %v1319_v58 = vmul.f32 3.1415927, %v7566_v12 }
 0x2e1   :  { %v1993_v30 = vsel %vm1981_vm15, %v1975_v4, %v1992_v38  ;;  %5417 = vmatpush3.bf16.msra.mxu1 %v7354_v33  ;;  %5437 = vmatpush3.bf16.msra.mxu0 %v7594_v47  ;;  %v1825_v6 = vxor.u32 2147483648, %v1824_v20  ;;  %v7600_v43 = vmul.u32.u64.low %v7554_v42, %v1990_v57  ;;  %v7601_v37 = vmul.u32.u64.high %v7554_v42, %v1990_v57, %v7600_v43 }
 0x2e2   :  { %v1994_v49 = vsel %vm1980_vm0, %v1991_v21, %v1993_v30  ;;  %5418 = vmatprep.subr.bf16.mxu1 %v9265_v31  ;;  %5438 = vmatprep.subr.bf16.mxu0 %v9265_v31  ;;  %v4931_v4 = vadd.s32 4294967294, %v1912_v10  ;;  %v1986_v33 = vsel %vm1980_vm0, %v1983_v24, %v1985_v13  ;;  %v7620_v35 = vmul.f32 %v6158_v61, %v6633_v44  ;;  %v7635_v44 = vld [vmem:[#allocation10 + $0x88] sm:$0xff]   ;;  %v7652_v13 = vld [vmem:[#allocation10 + $0x90] sm:$0xff]  }
 0x2e3   :  { %v7609_v15 = vmul.u32.u64.low %v7554_v42, %v1994_v49  ;;  %v7610_v36 = vmul.u32.u64.high %v7554_v42, %v1994_v49, %v7609_v15  ;;  %5432 = vmatprep.mubr.msk.bf16.mxu1 %vm6353_vm11, %v9265_v31  ;;  %5452 = vmatprep.mubr.msk.bf16.mxu0 %vm6353_vm11, %v9265_v31  ;;  %v1826_v51 = vsel %vm1743_vm10, %v1825_v6, %v1824_v20  ;;  %v1828_v52 = vsel %vm1743_vm10, %v1827_v41, %v7404_v60 }
 0x2e4   :  { %9334 = vst [vmem:[#allocation28_spill] sm:$0xff] %v7620_v35  ;;  %v1829_v48 = vsel %vm7544_vm14, %v7152_v63, %v1826_v51  ;;  %v1900_v25 = vadd.s32 %v7446_v26, %v7458_v17  ;;  %vm4932_vm1 = vcmp.lt.s32.totalorder %v4931_v4, 0  ;;  %v7632_v14 = vmul.f32 0.22222222, %v1319_v58 }
 0x2e5   :  { %5419 = vmatpush3.bf16.msra.mxu1 %v7380_v5  ;;  %5439 = vmatpush3.bf16.msra.mxu0 %v7635_v44  ;;  %6034 = vcosq.f32 %v1829_v48  ;;  %v1915_v29 = vsel %vm4932_vm1, 0, %v4931_v4  ;;  %v2002_v60 = vmul.u32 %v7554_v42, %v1986_v33  ;;  %v2005_v27 = vadd.s32 1, %v7601_v37  ;;  %v7663_v4 = vld [vmem:[#allocation10 + $0x98] sm:$0xff]  }
 0x2e6   :  { %5420 = vmatprep.subr.bf16.mxu1 %v9265_v31  ;;  %5440 = vmatprep.subr.bf16.mxu0 %v9265_v31  ;;  %6036 = vsinq.f32 %v1829_v48  ;;  %v1916_v26 = vsub.s32 32, %v1915_v29  ;;  %v1917_v17 = vshll.u32 %v7538_v40, %v1915_v29  ;;  %v1920_v41 = vsub.s32 4294967266, %v1915_v29 }
 0x2e7   :  { %v2799_v5 = vadd.f32 %v7108_v28, %v6979_v11  ;;  %v1830_v56 = vsel %vm7544_vm14, 0, %v1828_v52  ;;  %vm2004_vm2 = vc.u32 %v7610_v36, %v7600_v43  ;;  %v2053_v20 = vand.u32 2139095040, %v7632_v14 }
 0x2e8   :  { %v1918_v42 = vshrl.u32 %v1900_v25, %v1916_v26  ;;  %v1921_v24 = vadd.s32 127, %v1920_v41  ;;  %v2006_v21 = vsel %vm2004_vm2, %v2005_v27, %v7601_v37  ;;  %v2756_v40 = vsub.f32 %v7477_v62, %v7620_v35  ;;  %v7681_v25 = vld [vmem:[%s9235_s2 + $0x20] sm:$0xff] }
 0x2e9   :  { %5421 = vmatpush3.bf16.msra.mxu1 %v7402_v1  ;;  %5441 = vmatpush3.bf16.msra.mxu0 %v7652_v13  ;;  %v2007_v2 = vadd.s32 %v2006_v21, %v2002_v60  ;;  %v1930_v10 = vsub.s32 4, %v7520_v50  ;;  %v2054_v57 = vshrl.u32 %v2053_v20, 23  ;;  %v1834_v30 = vand.u32 3, %v1830_v56 }
 0x2ea   :  { %5422 = vmatprep.subr.bf16.mxu1 %v9265_v31  ;;  %5442 = vmatprep.subr.bf16.mxu0 %v9265_v31  ;;  %v1919_v46 = vor.u32 %v1918_v42, %v1917_v17  ;;  %v1922_v38 = vshll.u32 %v1921_v24, 23  ;;  %v7660_v1 = vmul.f32 0.5, %v2799_v5  ;;  %v7666_v33 = vmul.f32 0.5, %v2756_v40  ;;  %v7692_v17 = vld [vmem:[#allocation10 + $0xa0] sm:$0xff]  }
 0x2eb   :  { %v2008_v58 = vadd.s32 536870912, %v2007_v2  ;;  %v4937_v37 = vadd.s32 4294967169, %v2054_v57  ;;  %vm1833_vm3 = vweird.f32 %v7152_v63  ;;  %vm1846_vm4 = vcmp.lt.s32.totalorder %v7201_v54, 0 }
 0x2ec   :  { %v1923_v6 = vor.u32 4788187, %v1922_v38  ;;  %v1926_v49 = vcvt.s32.f32 %v1919_v46  ;;  %v2050_v51 = vand.u32 2147483647, %v7632_v14  ;;  %vm1835_vm5 = vcmp.lt.s32.totalorder %v1834_v30, 2 }
 0x2ed   :  { %5423 = vmatpush3.bf16.msra.mxu1 %v7429_v53  ;;  %5443 = vmatpush3.bf16.msra.mxu0 %v7663_v4  ;;  %v7670_v15 = vshrl.u32 %v2008_v58, 30  ;;  %v1931_v53 = vsel %vm1846_vm4, %v1930_v10, %v7520_v50  ;;  %v2060_v52 = vadd.s32 1, %v4937_v37  ;;  %vm1839_vm6 = vcmp.eq.s32.totalorder %v1834_v30, 2 }
 0x2ee   :  { %5424 = vmatprep.subr.bf16.mxu1 %v9265_v31  ;;  %5444 = vmatprep.subr.bf16.mxu0 %v9265_v31  ;;  %v1924_v61 = vand.u32 2147483647, %v1923_v6  ;;  %vm2173_vm7 = vcmp.lt.f32.partialorder %v7681_v25, 4.5  ;;  %vm7686_vm8 = vcmp.le.f32.partialorder %v1844_v9, 0.7853982  ;;  %vm1836_vm9 = vcmp.eq.s32.totalorder %v1834_v30, 0 }
 0x2ef   :  { %v6035_v48 = vpop.eup %6034  ;;  %v2010_v50 = vshll.u32 %v7670_v15, 30  ;;  %vm2061_vm10 = vcmp.gt.s32.totalorder %v2060_v52, 0  ;;  %v1933_v9 = vsel %vm7686_vm8, 0, %v1931_v53  ;;  %v2801_v20 = vpack.c.bf16 %v7660_v1, %v7660_v1  ;;  %v7720_v6 = vld [vmem:[#allocation10 + $0xa8] sm:$0xff]   ;;  %v7759_v25 = vld [vmem:[#allocation10 + $0xb8] sm:$0xff]  }
 0x2f0   :  { %v6037_v60 = vpop.eup %6036  ;;  %v1840_v27 = vxor.u32 2147483648, %v6035_v48  ;;  %v1927_v26 = vmul.f32 %v1926_v49, %v1924_v61  ;;  %v2062_v56 = vsel %vm2061_vm10, %v2060_v52, 0  ;;  %v2758_v38 = vpack.c.bf16 %v7666_v33, %v7666_v33 }
 0x2f1   :  { %5425 = vmatpush3.bf16.msra.mxu1 %v7468_v32  ;;  %5445 = vmatpush3.bf16.msra.mxu0 %v7692_v17  ;;  %v1837_v41 = vxor.u32 2147483648, %v6037_v60  ;;  %v7697_v5 = vsub.s32 %v2007_v2, %v2010_v50  ;;  %v7704_v32 = vand.u32 8388607, %v2050_v51  ;;  %v7706_v21 = vshrl.u32 %v2062_v56, 5 }
 0x2f2   :  { %5426 = vmatprep.subr.bf16.mxu1 %v9265_v31  ;;  %5446 = vmatprep.subr.bf16.mxu0 %v9265_v31  ;;  %v1841_v42 = vsel %vm1839_vm6, %v1840_v27, %v6037_v60  ;;  %v1928_v24 = vxor.u32 2147483648, %v1927_v26  ;;  %v2064_v46 = vand.u32 31, %v2062_v56  ;;  %v7717_v58 = vand.u32 3, %v1933_v9 }
 0x2f3   :  { %v1838_v40 = vsel %vm1836_vm9, %v6035_v48, %v1837_v41  ;;  %v2013_v2 = vsub.s32 0, %v7697_v5  ;;  %v2003_v30 = vadd.s32 %v7600_v43, %v7610_v36  ;;  %v2058_v53 = vor.u32 8388608, %v7704_v32  ;;  %v7741_v41 = vld [vmem:[#allocation10 + $0xb0] sm:$0xff]  }
 0x2f4   :  { %v1842_v10 = vsel %vm1835_vm5, %v1838_v40, %v1841_v42  ;;  %v1929_v57 = vsel %vm1846_vm4, %v1928_v24, %v1927_v26  ;;  %vm2082_vm12 = vcmp.lt.s32.totalorder %v7706_v21, 1  ;;  %v2065_v52 = vsub.s32 32, %v2064_v46 }
 0x2f5   :  { %5427 = vmatpush3.bf16.msra.mxu1 %v7493_v34  ;;  %5447 = vmatpush3.bf16.msra.mxu0 %v7720_v6  ;;  %v1843_v49 = vsel %vm1833_vm3, nan, %v1842_v10  ;;  %v1932_v37 = vsel %vm7686_vm8, %v7201_v54, %v1929_v57  ;;  %v4934_v61 = vmin.u32 %v2013_v2, %v7697_v5  ;;  %v2067_v48 = vshll.u32 %v6348_v8, %v2064_v46 }
 0x2f6   :  { %5428 = vmatprep.subr.bf16.mxu1 %v9265_v31  ;;  %5448 = vmatprep.subr.bf16.mxu0 %v9265_v31  ;;  %v2157_v34 = vadd.f32 1.0, %v1843_v49  ;;  %6038 = vcosq.f32 %v1932_v37  ;;  %vm1942_vm13 = vcmp.eq.s32.totalorder %v7717_v58, 2  ;;  %v9337_v43 = vmov 2475754826  }
 0x2f7   :  { %6040 = vsinq.f32 %v1932_v37  ;;  %v2015_v63 = vclz %v4934_v61  ;;  %v2070_v36 = vshll.u32 %v9337_v43, %v2064_v46  ;;  %v9338_v50 = vmov 2131351028  }
 0x2f8   :  { %v2165_v29 = vmul.f32 0.5, %v2157_v34  ;;  %v2073_v60 = vshll.u32 %v9338_v50, %v2064_v46  ;;  %v9339_v27 = vmov 2102212464   ;;  %vm1939_vm14 = vcmp.eq.s32.totalorder %v7717_v58, 0 }
 0x2f9   :  { %v2076_v26 = vshll.u32 %v9339_v27, %v2064_v46  ;;  %5429 = vmatpush3.bf16.msra.mxu1 %v7514_v7  ;;  %5449 = vmatpush3.bf16.msra.mxu0 %v7741_v41  ;;  %v4935_v9 = vadd.s32 4294967294, %v2015_v63  ;;  %v2066_v56 = vshrl.u32 %v6348_v8, %v2065_v52  ;;  %v2068_v42 = vshrl.u32 %v9337_v43, %v2065_v52 }
 0x2fa   :  { %v2071_v24 = vshrl.u32 %v9338_v50, %v2065_v52  ;;  %5430 = vmatprep.subr.bf16.mxu1 %v9265_v31  ;;  %5450 = vmatprep.subr.bf16.mxu0 %v9265_v31  ;;  %v2181_v7 = vsel %vm2173_vm7, %v2165_v29, 0.0  ;;  %v2074_v32 = vshrl.u32 %v9339_v27, %v2065_v52  ;;  %v2077_v40 = vshrl.u32 %v9320_v3, %v2065_v52 }
 0x2fb   :  { %v2079_v2 = vshll.u32 %v9320_v3, %v2064_v46  ;;  %2207 = vperm.xlu0 %5764, %v2181_v7   ;;  %vm1936_vm15 = vweird.f32 %v7201_v54  ;;  %vm4936_vm0 = vcmp.lt.s32.totalorder %v4935_v9, 0  ;;  %v2069_v8 = vor.u32 %v2068_v42, %v2067_v48 }
 0x2fc   :  { %v2072_v10 = vor.u32 %v2071_v24, %v2070_v36  ;;  %v2080_v57 = vshrl.u32 %v9321_v16, %v2065_v52  ;;  %v2018_v49 = vsel %vm4936_vm0, 0, %v4935_v9  ;;  %v2075_v37 = vor.u32 %v2074_v32, %v2073_v60 }
 0x2fd   :  { %v2078_v61 = vor.u32 %v2077_v40, %v2076_v26  ;;  %vm2084_vm1 = vcmp.lt.s32.totalorder %v7706_v21, 3  ;;  %5431 = vmatpush3.bf16.msra.mxu1 %v7534_v19  ;;  %5451 = vmatpush3.bf16.msra.mxu0 %v7759_v25  ;;  %v2019_v3 = vsub.s32 32, %v2018_v49  ;;  %v2020_v46 = vshll.u32 %v7697_v5, %v2018_v49 }
 0x2fe   :  { %v2023_v34 = vsub.s32 4294967266, %v2018_v49  ;;  %v2081_v63 = vor.u32 %v2080_v57, %v2079_v2  ;;  %5456 = vmatprep.subr.bf16.mxu1 %v9265_v31  ;;  %5476 = vmatprep.subr.bf16.mxu0 %v9265_v31  ;;  %vm2083_vm2 = vcmp.lt.s32.totalorder %v7706_v21, 2  ;;  %vm2085_vm3 = vcmp.lt.s32.totalorder %v7706_v21, 4 }
 0x2ff   :  { %v2090_v16 = vsel %vm2082_vm12, %v2069_v8, %v2072_v10  ;;  %v7769_v19 = vshll.u32 %v2058_v53, 8  ;;  %v2021_v52 = vshrl.u32 %v2003_v30, %v2019_v3  ;;  %v2087_v29 = vsel %vm2085_vm3, %v2075_v37, 2102212464 }
 0x300   :  { %v2024_v48 = vadd.s32 127, %v2023_v34  ;;  %v2091_v43 = vsel %vm2085_vm3, %v2078_v61, 920167782  ;;  %v6039_v5 = vpop.eup %6038  ;;  %5433 = vmatmul.mubr.bf16.vlgmr.msra.gmra.mrb[44].mxu1 %v2758_v38  ;;  %5453 = vmatmul.mubr.bf16.vlgmr.msra.gmra.mrb[36].mxu0 %v2801_v20  ;;  %v2086_v36 = vsel %vm2082_vm12, %v2066_v56, %v2069_v8  ;;  %v2094_v30 = vsel %vm2082_vm12, %v2072_v10, %v2075_v37 }
 0x301   :  { %v2092_v53 = vsel %vm2084_vm1, %v2075_v37, %v2091_v43  ;;  %v2095_v50 = vsel %vm2085_vm3, %v2081_v63, 1326507024  ;;  %v6041_v60 = vpop.eup %6040  ;;  %5457 = vmatpush3.bf16.msra.mxu1 %v7594_v47  ;;  %5477 = vmatpush3.bf16.msra.mxu0 %v7594_v47  ;;  %v1943_v33 = vxor.u32 2147483648, %v6039_v5  ;;  %v2022_v38 = vor.u32 %v2021_v52, %v2020_v46  ;;  %v6167_v37 = vld [vmem:[%s9235_s2 + $0x28] sm:$0xff] }
 0x302   :  { %v2025_v27 = vshll.u32 %v2024_v48, 23  ;;  %v2088_v1 = vsel %vm2084_vm1, %v2072_v10, %v2087_v29  ;;  %5458 = vmatprep.subr.bf16.mxu1 %v9265_v31  ;;  %5478 = vmatprep.subr.bf16.mxu0 %v9265_v31  ;;  %vm1938_vm4 = vcmp.lt.s32.totalorder %v7717_v58, 2  ;;  %v1940_v20 = vxor.u32 2147483648, %v6041_v60 }
 0x303   :  { %v2093_v26 = vsel %vm2083_vm2, %v2090_v16, %v2092_v53  ;;  %v2096_v9 = vsel %vm2084_vm1, %v2078_v61, %v2095_v50  ;;  %v1944_v47 = vsel %vm1942_vm13, %v1943_v33, %v6041_v60  ;;  %v2029_v42 = vcvt.s32.f32 %v2022_v38  ;;  %5472 = vmatprep.mubr.msk.bf16.mxu1 %vm6353_vm11, %v9265_v31  ;;  %5492 = vmatprep.mubr.msk.bf16.mxu0 %vm6353_vm11, %v9265_v31  ;;  %v7869_v33 = vld [vmem:[%s9245_s12] sm:$0x1]  ;;  %v7879_v38 = vld [vmem:[%s9245_s12 + $0x2] sm:$0x1] }
 0x304   :  { %v2026_v56 = vor.u32 4788187, %v2025_v27  ;;  %v2097_v24 = vsel %vm2083_vm2, %v2094_v30, %v2096_v9  ;;  %v1941_v7 = vsel %vm1939_vm14, %v6039_v5, %v1940_v20  ;;  %v2089_v32 = vsel %vm2083_vm2, %v2086_v36, %v2088_v1 }
 0x305   :  { %v7807_v40 = vmul.u32.u64.low %v7769_v19, %v2097_v24  ;;  %v7808_v2 = vmul.u32.u64.high %v7769_v19, %v2097_v24, %v7807_v40  ;;  %v1945_v8 = vsel %vm1938_vm4, %v1941_v7, %v1944_v47  ;;  %5459 = vmatpush3.bf16.msra.mxu1 %v7635_v44  ;;  %5479 = vmatpush3.bf16.msra.mxu0 %v7635_v44  ;;  %vm2174_vm5 = vcmp.lt.f32.partialorder %v6167_v37, 4.5 }
 0x306   :  { %v2027_v10 = vand.u32 2147483647, %v2026_v56  ;;  %v7813_v57 = vmul.u32.u64.low %v7769_v19, %v2093_v26  ;;  %v7814_v49 = vmul.u32.u64.high %v7769_v19, %v2093_v26, %v7813_v57  ;;  %v1946_v58 = vsel %vm1936_vm15, nan, %v1945_v8  ;;  %5460 = vmatprep.subr.bf16.mxu1 %v9265_v31  ;;  %5480 = vmatprep.subr.bf16.mxu0 %v9265_v31 }
 0x307   :  { %v2158_v21 = vadd.f32 1.0, %v1946_v58  ;;  %v9340_v61 = vand.u32 2147483647, %v7250_v45  ;;  %vm1949_vm7 = vcmp.lt.s32.totalorder %v7250_v45, 0  ;;  %v2105_v54 = vmul.u32 %v7769_v19, %v2089_v32 }
 0x308   :  { %v2030_v44 = vmul.f32 %v2029_v42, %v2027_v10  ;;  %vm2107_vm8 = vc.u32 %v7808_v2, %v7813_v57  ;;  %v2033_v63 = vsub.s32 4, %v7670_v15  ;;  %v2108_v16 = vadd.s32 1, %v7814_v49 }
 0x309   :  { %vm7826_vm6 = vcmp.le.f32.partialorder %v9340_v61, 0.7853982  ;;  %v2166_v46 = vmul.f32 0.5, %v2158_v21  ;;  %5461 = vmatpush3.bf16.msra.mxu1 %v7652_v13  ;;  %5481 = vmatpush3.bf16.msra.mxu0 %v7652_v13  ;;  %v2842_v30 = vadd.f32 %v7166_v39, %v7160_v0  ;;  %v2885_v60 = vadd.f32 %v7620_v35, %v7477_v62 }
 0x30a   :  { %v2031_v34 = vxor.u32 2147483648, %v2030_v44  ;;  %5462 = vmatprep.subr.bf16.mxu1 %v9265_v31  ;;  %5482 = vmatprep.subr.bf16.mxu0 %v9265_v31  ;;  %v2109_v48 = vsel %vm2107_vm8, %v2108_v16, %v7814_v49  ;;  %v2034_v43 = vsel %vm1949_vm7, %v2033_v63, %v7670_v15  ;;  %vm2039_vm13 = vweird.f32 %v7250_v45 }
 0x30b   :  { %v2182_v52 = vsel %vm2174_vm5, %v2166_v46, 0.0  ;;  %v2110_v29 = vadd.s32 %v2109_v48, %v2105_v54  ;;  %v2036_v36 = vsel %vm7826_vm6, 0, %v2034_v43  ;;  %v2843_v26 = vmul.f32 0.5, %v2842_v30 }
 0x30c   :  { %v2032_v19 = vsel %vm1949_vm7, %v2031_v34, %v2030_v44  ;;  %2212 = vperm.xlu1 %5765, %v2182_v52   ;;  %v2886_v24 = vmul.f32 0.5, %v2885_v60  ;;  %v9343_v34 = vmov 0   ;;  %vm2052_vm0 = vcmp.lt.s32.totalorder %v7632_v14, 0 }
 0x30d   :  { %v2035_v13 = vsel %vm7826_vm6, %v7250_v45, %v2032_v19  ;;  %5463 = vmatpush3.bf16.msra.mxu1 %v7663_v4  ;;  %5483 = vmatpush3.bf16.msra.mxu0 %v7663_v4  ;;  %v2111_v5 = vadd.s32 536870912, %v2110_v29  ;;  %v2040_v4 = vand.u32 3, %v2036_v36  ;;  %v2844_v49 = vpack.c.bf16 %v2843_v26, %v2843_v26 }
 0x30e   :  { %6042 = vcosq.f32 %v2035_v13  ;;  %5464 = vmatprep.subr.bf16.mxu1 %v9265_v31  ;;  %5484 = vmatprep.subr.bf16.mxu0 %v9265_v31  ;;  %v2887_v58 = vpack.c.bf16 %v2886_v24, %v2886_v24  ;;  %v2106_v45 = vadd.s32 %v7813_v57, %v7808_v2  ;;  %vm2051_vm1 = vcmp.le.f32.partialorder %v2050_v51, 0.7853982  ;;  %v725_v24 = vld [vmem:[%s9243_s10] sm:$0x7] }
 0x30f   :  { %6044 = vsinq.f32 %v2035_v13  ;;  %v7855_v53 = vshrl.u32 %v2111_v5, 30  ;;  %vm2045_vm9 = vcmp.eq.s32.totalorder %v2040_v4, 2  ;;  %vm2042_vm10 = vcmp.eq.s32.totalorder %v2040_v4, 0 }
 0x310   :  { %vm2041_vm12 = vcmp.lt.s32.totalorder %v2040_v4, 2  ;;  %vm2142_vm5 = vweird.f32 %v7632_v14  ;;  %vm2176_vm6 = vcmp.lt.f32.partialorder %v7566_v12, 4.5  ;;  %vm3008_vm7 = vcmask 1043456  }
 0x311   :  { %5465 = vmatpush3.bf16.msra.mxu1 %v7692_v17  ;;  %5485 = vmatpush3.bf16.msra.mxu0 %v7692_v17  ;;  %v2113_v15 = vshll.u32 %v7855_v53, 30  ;;  %v7874_v17 = vld [vmem:[%s9245_s12 + $0x1] sm:$0x1]  ;;  %v2136_v43 = vsub.s32 4, %v7855_v53  ;;  %vm2995_vm8 = vcmask 64512  }
 0x312   :  { %5466 = vmatprep.subr.bf16.mxu1 %v9265_v31  ;;  %5486 = vmatprep.subr.bf16.mxu0 %v9265_v31  ;;  %v2928_v27 = vadd.f32 %v7874_v17, %v7869_v33 }
 0x313   :  { %v2114_v50 = vsub.s32 %v2110_v29, %v2113_v15  ;;  %v2137_v15 = vsel %vm2052_vm0, %v2136_v43, %v7855_v53 }
 0x314   :  { %v7888_v9 = vadd.f32 %v7879_v38, %v2928_v27  ;;  %v2139_v4 = vsel %vm2051_vm1, 0, %v2137_v15 }
 0x315   :  { %5467 = vmatpush3.bf16.msra.mxu1 %v7720_v6  ;;  %5487 = vmatpush3.bf16.msra.mxu0 %v7720_v6  ;;  %v2116_v1 = vsub.s32 0, %v2114_v50  ;;  %v2143_v30 = vand.u32 3, %v2139_v4 }
 0x316   :  { %5468 = vmatprep.subr.bf16.mxu1 %v9265_v31  ;;  %5488 = vmatprep.subr.bf16.mxu0 %v9265_v31 }
 0x317   :  { %v4938_v42 = vmin.u32 %v2116_v1, %v2114_v50  ;;  %vm2148_vm2 = vcmp.eq.s32.totalorder %v2143_v30, 2  ;;  %vm2145_vm3 = vcmp.eq.s32.totalorder %v2143_v30, 0  ;;  %vm2144_vm4 = vcmp.lt.s32.totalorder %v2143_v30, 2 }
 0x318   :  { %v6043_v20 = vpop.eup %6042 }
 0x319   :  { %v6045_v47 = vpop.eup %6044  ;;  %v2046_v56 = vxor.u32 2147483648, %v6043_v20  ;;  %5469 = vmatpush3.bf16.msra.mxu1 %v7741_v41  ;;  %5489 = vmatpush3.bf16.msra.mxu0 %v7741_v41  ;;  %v2118_v32 = vclz %v4938_v42  ;;  %v6168_v41 = vld [vmem:[%s9235_s2 + $0x30] sm:$0xff] }
 0x31a   :  { %v2043_v6 = vxor.u32 2147483648, %v6045_v47  ;;  %5470 = vmatprep.subr.bf16.mxu1 %v9265_v31  ;;  %5490 = vmatprep.subr.bf16.mxu0 %v9265_v31  ;;  %vm2175_vm15 = vcmp.lt.f32.partialorder %v6168_v41, 4.5 }
 0x31b   :  { %v2047_v7 = vsel %vm2045_vm9, %v2046_v56, %v6045_v47  ;;  %v4939_v10 = vadd.s32 4294967294, %v2118_v32  ;;  %vm3707_vm9 = vcmask 523264  }
 0x31c   :  { %v2044_v40 = vsel %vm2042_vm10, %v6043_v20, %v2043_v6  ;;  %v737_v6 = vsub.s32 2, %v6675_v59 }
 0x31d   :  { %v2048_v8 = vsel %vm2041_vm12, %v2044_v40, %v2047_v7  ;;  %5471 = vmatpush3.bf16.msra.mxu1 %v7759_v25  ;;  %5491 = vmatpush3.bf16.msra.mxu0 %v7759_v25  ;;  %vm4940_vm14 = vcmp.lt.s32.totalorder %v4939_v10, 0  ;;  %v7917_v7 = vrot.slane %v725_v24, %v6689_v18 }
 0x31e   :  { %v2049_v21 = vsel %vm2039_vm13, nan, %v2048_v8  ;;  %v2121_v44 = vsel %vm4940_vm14, 0, %v4939_v10  ;;  %v7923_v10 = vrot.slane %v725_v24, %v737_v6 }
 0x31f   :  { %v2159_v37 = vadd.f32 1.0, %v2049_v21  ;;  %v2122_v3 = vsub.s32 32, %v2121_v44  ;;  %v2123_v54 = vshll.u32 %v2114_v50, %v2121_v44  ;;  %v2126_v46 = vsub.s32 4294967266, %v2121_v44 }
 0x320   :  { %5473 = vmatmul.mubr.bf16.vlgmr.msra.gmra.mrb[48].mxu1 %v2844_v49  ;;  %5493 = vmatmul.mubr.bf16.vlgmr.msra.gmra.mrb[40].mxu0 %v2887_v58 }
 0x321   :  { %v2167_v61 = vmul.f32 0.5, %v2159_v37  ;;  %3071 = vmatprep.mubr.bf16.mxu1 %v9343_v34  ;;  %3144 = vmatprep.mubr.bf16.mxu0 %v9343_v34  ;;  %v2124_v63 = vshrl.u32 %v2106_v45, %v2122_v3  ;;  %v2127_v2 = vadd.s32 127, %v2126_v46 }
 0x323   :  { %v2183_v25 = vsel %vm2175_vm15, %v2167_v61, 0.0  ;;  %v2125_v57 = vor.u32 %v2124_v63, %v2123_v54  ;;  %v2128_v16 = vshll.u32 %v2127_v2, 23 }
 0x324   :  { %2217 = vperm.xlu0 %5764, %v2183_v25  }
 0x325   :  { %v2129_v52 = vor.u32 4788187, %v2128_v16  ;;  %v2132_v19 = vcvt.s32.f32 %v2125_v57 }
 0x327   :  { %v2130_v48 = vand.u32 2147483647, %v2129_v52 }
 0x329   :  { %v2133_v13 = vmul.f32 %v2132_v19, %v2130_v48 }
 0x32b   :  { %v2134_v29 = vxor.u32 2147483648, %v2133_v13 }
 0x32d   :  { %v2135_v5 = vsel %vm2052_vm0, %v2134_v29, %v2133_v13 }
 0x32e   :  { %v2138_v36 = vsel %vm2051_vm1, %v7632_v14, %v2135_v5  ;;  %v9344_v14 = vsub.s32 1, %v6675_v59 }
 0x32f   :  { %6046 = vcosq.f32 %v2138_v36 }
 0x330   :  { %6048 = vsinq.f32 %v2138_v36  ;;  %v7921_v32 = vrot.slane %v725_v24, %v9344_v14 }
 0x339   :  { %v6047_v50 = vpop.eup %6046 }
 0x33a   :  { %v6049_v60 = vpop.eup %6048  ;;  %v2149_v27 = vxor.u32 2147483648, %v6047_v50 }
 0x33b   :  { %v2146_v1 = vxor.u32 2147483648, %v6049_v60 }
 0x33c   :  { %v2150_v51 = vsel %vm2148_vm2, %v2149_v27, %v6049_v60 }
 0x33d   :  { %v2147_v20 = vsel %vm2145_vm3, %v6047_v50, %v2146_v1 }
 0x33e   :  { %v2151_v26 = vsel %vm2144_vm4, %v2147_v20, %v2150_v51 }
 0x33f   :  { %v2152_v47 = vsel %vm2142_vm5, nan, %v2151_v26 }
 0x340   :  { %v2160_v56 = vadd.f32 1.0, %v2152_v47 }
 0x342   :  { %v2168_v53 = vmul.f32 0.5, %v2160_v56 }
 0x344   :  { %v2184_v42 = vsel %vm2176_vm6, %v2168_v53, 0.0 }
 0x345   :  { %2222 = vperm.xlu1 %5765, %v2184_v42  }
 0x352   :  { %v1032_v40 = vpop.f32.mrb[8].mxu0  ;;  %v5063_v8 = vpop.f32.mrb[16].mxu1 }
 0x353   :  { %v7926_v12 = vadd.f32 %v1032_v40, %v7917_v7  ;;  %v1034_v49 = vpop.f32.mrb[9].mxu0  ;;  %v5064_v58 = vpop.f32.mrb[17].mxu1 }
 0x354   :  { %v7929_v21 = vadd.f32 %v1034_v49, %v7921_v32  ;;  %v5065_v37 = vadd.f32 %v5064_v58, %v5063_v8  ;;  %v1036_v45 = vpop.f32.mrb[10].mxu0  ;;  %v5066_v41 = vpop.f32.mrb[18].mxu1 }
 0x355   :  { %v4885_v44 = vmul.f32 -1.442695, %v7926_v12  ;;  %v7933_v59 = vadd.f32 %v1036_v45, %v7917_v7  ;;  %v1038_v61 = vpop.f32.mrb[11].mxu0  ;;  %v5067_v3 = vpop.f32.mrb[19].mxu1 }
 0x356   :  { %v4886_v54 = vmul.f32 -1.442695, %v7929_v21  ;;  %v7937_v46 = vadd.f32 %v5065_v37, %v7923_v10  ;;  %v7940_v25 = vadd.f32 %v1038_v61, %v7921_v32  ;;  %v5068_v63 = vadd.f32 %v5067_v3, %v5066_v41 }
 0x357   :  { %6050 = vpow2.f32 %v4885_v44  ;;  %v4888_v2 = vmul.f32 -1.442695, %v7933_v59 }
 0x358   :  { %6052 = vpow2.f32 %v4886_v54  ;;  %v4887_v57 = vmul.f32 -1.442695, %v7937_v46  ;;  %v4889_v16 = vmul.f32 -1.442695, %v7940_v25  ;;  %v7946_v52 = vadd.f32 %v5068_v63, %v7923_v10 }
 0x359   :  { %6054 = vpow2.f32 %v4888_v2 }
 0x35a   :  { %6056 = vpow2.f32 %v4887_v57  ;;  %v4890_v19 = vmul.f32 -1.442695, %v7946_v52  ;;  %v1042_v48 = vpop.f32.mrb[12].mxu0  ;;  %v5069_v13 = vpop.f32.mrb[20].mxu1 }
 0x35b   :  { %6058 = vpow2.f32 %v4889_v16  ;;  %v7950_v29 = vadd.f32 %v1042_v48, %v7917_v7  ;;  %v1044_v43 = vpop.f32.mrb[13].mxu0  ;;  %v5070_v5 = vpop.f32.mrb[21].mxu1 }
 0x35c   :  { %6060 = vpow2.f32 %v4890_v19  ;;  %v7953_v36 = vadd.f32 %v1044_v43, %v7921_v32  ;;  %v5071_v15 = vadd.f32 %v5070_v5, %v5069_v13  ;;  %v1046_v4 = vpop.f32.mrb[14].mxu0  ;;  %v5072_v30 = vpop.f32.mrb[22].mxu1 }
 0x35d   :  { %v4891_v50 = vmul.f32 -1.442695, %v7950_v29  ;;  %v7957_v60 = vadd.f32 %v1046_v4, %v7917_v7  ;;  %v1048_v27 = vpop.f32.mrb[15].mxu0  ;;  %v5073_v1 = vpop.f32.mrb[23].mxu1 }
 0x35e   :  { %v4892_v51 = vmul.f32 -1.442695, %v7953_v36  ;;  %v7961_v20 = vadd.f32 %v5071_v15, %v7923_v10  ;;  %v7964_v26 = vadd.f32 %v1048_v27, %v7921_v32  ;;  %v5074_v47 = vadd.f32 %v5073_v1, %v5072_v30 }
 0x35f   :  { %6062 = vpow2.f32 %v4891_v50  ;;  %v4894_v56 = vmul.f32 -1.442695, %v7957_v60 }
 0x360   :  { %6064 = vpow2.f32 %v4892_v51  ;;  %v4893_v53 = vmul.f32 -1.442695, %v7961_v20  ;;  %v4895_v42 = vmul.f32 -1.442695, %v7964_v26  ;;  %v7970_v40 = vadd.f32 %v5074_v47, %v7923_v10 }
 0x361   :  { %v6051_v24 = vpop.eup %6050  ;;  %6066 = vpow2.f32 %v4894_v56  ;;  %v7983_v56 = vpop.permute.xlu0 %2187 }
 0x362   :  { %v6053_v6 = vpop.eup %6052  ;;  %v1208_v14 = vadd.f32 1.0, %v6051_v24  ;;  %6068 = vpow2.f32 %v4893_v53  ;;  %v4896_v13 = vmul.f32 -1.442695, %v7970_v40 }
 0x363   :  { %v6055_v8 = vpop.eup %6054  ;;  %v1209_v49 = vadd.f32 1.0, %v6053_v6  ;;  %6070 = vpow2.f32 %v4895_v42  ;;  %v1052_v58 = vpop.f32.mrb[16].mxu0 }
 0x364   :  { %v5075_v37 = vpop.f32.mrb[24].mxu1  ;;  %v6057_v45 = vpop.eup %6056  ;;  %6072 = vrcp.f32 %v1208_v14  ;;  %v1211_v41 = vadd.f32 1.0, %v6055_v8  ;;  %v7973_v44 = vadd.f32 %v1052_v58, %v7917_v7 }
 0x365   :  { %v1054_v61 = vpop.f32.mrb[17].mxu0  ;;  %v5076_v3 = vpop.f32.mrb[25].mxu1  ;;  %6074 = vrcp.f32 %v1209_v49  ;;  %v1210_v63 = vadd.f32 1.0, %v6057_v45 }
 0x366   :  { %v6059_v54 = vpop.eup %6058  ;;  %v5077_v2 = vadd.f32 %v5076_v3, %v5075_v37  ;;  %v1056_v57 = vpop.f32.mrb[18].mxu0  ;;  %6076 = vrcp.f32 %v1211_v41  ;;  %v4897_v4 = vmul.f32 -1.442695, %v7973_v44  ;;  %v7978_v30 = vadd.f32 %v1054_v61, %v7921_v32 }
 0x367   :  { %v5078_v16 = vpop.f32.mrb[26].mxu1  ;;  %v6061_v19 = vpop.eup %6060  ;;  %v1212_v48 = vadd.f32 1.0, %v6059_v54  ;;  %6078 = vrcp.f32 %v1210_v63  ;;  %v7986_v24 = vadd.f32 %v1056_v57, %v7917_v7 }
 0x368   :  { %v1058_v43 = vpop.f32.mrb[19].mxu0  ;;  %v5079_v5 = vpop.f32.mrb[27].mxu1  ;;  %v1213_v15 = vadd.f32 1.0, %v6061_v19  ;;  %v7981_v47 = vadd.f32 %v5077_v2, %v7923_v10  ;;  %v4898_v58 = vmul.f32 -1.442695, %v7978_v30 }
 0x369   :  { %6080 = vrcp.f32 %v1212_v48  ;;  %v5080_v50 = vadd.f32 %v5079_v5, %v5078_v16  ;;  %v6063_v27 = vpop.eup %6062  ;;  %v7990_v37 = vadd.f32 %v1058_v43, %v7921_v32 }
 0x36a   :  { %6082 = vrcp.f32 %v1213_v15  ;;  %v6065_v1 = vpop.eup %6064  ;;  %v1214_v51 = vadd.f32 1.0, %v6063_v27  ;;  %v4899_v48 = vmul.f32 -1.442695, %v7981_v47  ;;  %v4900_v15 = vmul.f32 -1.442695, %v7986_v24 }
 0x36b   :  { %6084 = vpow2.f32 %v4896_v13  ;;  %v6067_v53 = vpop.eup %6066  ;;  %v1215_v42 = vadd.f32 1.0, %v6065_v1  ;;  %v1062_v6 = vpop.f32.mrb[20].mxu0  ;;  %v7993_v54 = vadd.f32 %v5080_v50, %v7923_v10  ;;  %v8007_v50 = vrot.slane %v7874_v17, %v6689_v18 }
 0x36c   :  { %6086 = vpow2.f32 %v4897_v4  ;;  %v5081_v14 = vpop.f32.mrb[28].mxu1  ;;  %v6069_v8 = vpop.eup %6068  ;;  %v1217_v49 = vadd.f32 1.0, %v6067_v53  ;;  %v8003_v4 = vrot.slane %v7869_v33, %v6689_v18  ;;  %v4901_v53 = vmul.f32 -1.442695, %v7990_v37 }
 0x36d   :  { %6088 = vrcp.f32 %v1214_v51  ;;  %v1064_v45 = vpop.f32.mrb[21].mxu0  ;;  %v5082_v41 = vpop.f32.mrb[29].mxu1  ;;  %v1216_v3 = vadd.f32 1.0, %v6069_v8  ;;  %v8014_v8 = vadd.f32 %v1062_v6, %v7917_v7 }
 0x36e   :  { %v6071_v61 = vpop.eup %6070  ;;  %6090 = vrcp.f32 %v1215_v42  ;;  %v5083_v63 = vadd.f32 %v5082_v41, %v5081_v14  ;;  %v7995_v2 = vpop.f32.mrb[22].mxu0  ;;  %v4902_v14 = vmul.f32 -1.442695, %v7993_v54  ;;  %v8019_v17 = vadd.f32 %v1064_v45, %v7921_v32 }
 0x36f   :  { %v5084_v57 = vpop.f32.mrb[30].mxu1  ;;  %v6073_v16 = vpop.eup %6072  ;;  %6092 = vrcp.f32 %v1217_v49  ;;  %v1218_v19 = vadd.f32 1.0, %v6071_v61 }
 0x370   :  { %v7998_v13 = vpop.f32.mrb[23].mxu0  ;;  %v5085_v43 = vpop.f32.mrb[31].mxu1  ;;  %6094 = vrcp.f32 %v1216_v3  ;;  %v1280_v1 = vmul.f32 %v6073_v16, %v7926_v12  ;;  %v8034_v45 = vadd.f32 %v5083_v63, %v7923_v10  ;;  %v4904_v35 = vmul.f32 -1.442695, %v8019_v17 }
 0x371   :  { %v6075_v5 = vpop.eup %6074  ;;  %6096 = vrcp.f32 %v1218_v19  ;;  %v8016_v33 = vadd.f32 %v5085_v43, %v5084_v57  ;;  %v2193_v12 = vpop.permute.xlu0 %2192 }
 0x372   :  { %v6077_v27 = vpop.eup %6076  ;;  %v1281_v51 = vmul.f32 %v6075_v5, %v7929_v21  ;;  %6098 = vpow2.f32 %v4898_v58  ;;  %v8023_v21 = vrot.slane %v7888_v9, %v6689_v18  ;;  %v8025_v41 = vpop.permute.xlu1 %2197  ;;  %v8029_v58 = vrot.slane %v7879_v38, %v6689_v18 }
 0x373   :  { %v6079_v42 = vpop.eup %6078  ;;  %6100 = vpow2.f32 %v4899_v48  ;;  %v8036_v57 = vpop.f32.mrb[32].mxu1 }
 0x374   :  { %v6081_v49 = vpop.eup %6080  ;;  %v1282_v61 = vmul.f32 %v6079_v42, %v7937_v46  ;;  %6102 = vpow2.f32 %v4900_v15  ;;  %v8038_v16 = vpop.f32.mrb[24].mxu0  ;;  %v8041_v19 = vmul.f32 %v7983_v56, %v1281_v51  ;;  %v4903_v15 = vmul.f32 -1.442695, %v8014_v8 }
 0x375   :  { %v6083_v6 = vpop.eup %6082  ;;  %v1284_v3 = vmul.f32 %v6081_v49, %v7940_v25  ;;  %6104 = vpow2.f32 %v4901_v53  ;;  %v2930_v38 = vadd.f32 %v8038_v16, %v8036_v57  ;;  %v5314_v48 = vpop.f32.mrb[33].mxu1  ;;  %v8046_v25 = vmul.f32 %v7983_v56, %v1280_v1 }
 0x376   :  { %v6085_v9 = vpop.eup %6084  ;;  %v5334_v46 = vpop.f32.mrb[25].mxu0  ;;  %v1285_v63 = vmul.f32 %v6083_v6, %v7946_v52  ;;  %6106 = vpow2.f32 %v4902_v14  ;;  %v1283_v51 = vmul.f32 %v6077_v27, %v7933_v59  ;;  %v4905_v52 = vmul.f32 -1.442695, %v8034_v45 }
 0x377   :  { %v6087_v43 = vpop.eup %6086  ;;  %v1219_v5 = vadd.f32 1.0, %v6085_v9  ;;  %v2445_v42 = vpop.f32.mrb[34].mxu1  ;;  %v8053_v48 = vadd.f32 %v8023_v21, %v2930_v38  ;;  %v8057_v14 = vmul.f32 %v7983_v56, %v1282_v61  ;;  %v8059_v6 = vmul.f32 %v2193_v12, %v1284_v3 }
 0x378   :  { %v2535_v53 = vpop.f32.mrb[26].mxu0  ;;  %v6089_v49 = vpop.eup %6088  ;;  %v1220_v31 = vadd.f32 1.0, %v6087_v43  ;;  %v3410_v27 = vmul.f32 %v8003_v4, %v8046_v25  ;;  %v3424_v38 = vmul.f32 %v8007_v50, %v8041_v19 }
 0x379   :  { %9345 = vst [vmem:[#allocation29_spill] sm:$0xff] %v8053_v48  ;;  %v5315_v1 = vpop.f32.mrb[35].mxu1  ;;  %v5335_v46 = vpop.f32.mrb[27].mxu0  ;;  %6108 = vrcp.f32 %v1219_v5  ;;  %v8066_v5 = vmul.f32 %v2193_v12, %v1285_v63  ;;  %v1286_v56 = vmul.f32 %v6089_v49, %v7950_v29 }
 0x37a   :  { %v6091_v55 = vpop.eup %6090  ;;  %6110 = vrcp.f32 %v1220_v31  ;;  %v2203_v3 = vpop.permute.xlu1 %2202  ;;  %v3432_v53 = vadd.f32 %v3424_v38, %v3410_v27  ;;  %v3446_v1 = vmul.f32 %v8029_v58, %v8057_v14 }
 0x37b   :  { %v6093_v9 = vpop.eup %6092  ;;  %v1287_v59 = vmul.f32 %v6091_v55, %v7953_v36  ;;  %6112 = vpow2.f32 %v4903_v15  ;;  %v8076_v15 = vmul.f32 %v2193_v12, %v1283_v51  ;;  %v3447_v51 = vmul.f32 %v8029_v58, %v8066_v5 }
 0x37c   :  { %v6095_v43 = vpop.eup %6094  ;;  %6114 = vpow2.f32 %v4904_v35  ;;  %v1289_v46 = vmul.f32 %v6093_v9, %v7957_v60  ;;  %v3425_v35 = vmul.f32 %v8007_v50, %v8059_v6  ;;  %v8086_v27 = vadd.f32 %v3446_v1, %v3432_v53 }
 0x37d   :  { %v6097_v42 = vpop.eup %6096  ;;  %v1288_v61 = vmul.f32 %v6095_v43, %v7961_v20  ;;  %v8072_v36 = vmul.f32 %v8025_v41, %v1287_v59  ;;  %6116 = vpow2.f32 %v4905_v52  ;;  %v3411_v60 = vmul.f32 %v8003_v4, %v8076_v15 }
 0x37e   :  { %v6099_v55 = vpop.eup %6098  ;;  %v1290_v31 = vmul.f32 %v6097_v42, %v7964_v26  ;;  %v8093_v43 = vmul.f32 %v8025_v41, %v1286_v56 }
 0x37f   :  { %v6101_v63 = vpop.eup %6100  ;;  %v1221_v29 = vadd.f32 1.0, %v6099_v55  ;;  %v8082_v26 = vmul.f32 %v8025_v41, %v1288_v61  ;;  %v3426_v42 = vmul.f32 %v8007_v50, %v8072_v36  ;;  %v3433_v53 = vadd.f32 %v3425_v35, %v3411_v60 }
 0x380   :  { %v6103_v20 = vpop.eup %6102  ;;  %v1222_v49 = vadd.f32 1.0, %v6101_v63  ;;  %v8084_v59 = vmul.f32 %v2203_v3, %v1290_v31  ;;  %v3412_v31 = vmul.f32 %v8003_v4, %v8093_v43  ;;  %v8101_v63 = vmul.f32 %v2203_v3, %v1289_v46  ;;  %v2208_v46 = vpop.permute.xlu0 %2207 }
 0x381   :  { %v6105_v38 = vpop.eup %6104  ;;  %6118 = vrcp.f32 %v1221_v29  ;;  %v1223_v12 = vadd.f32 1.0, %v6103_v20  ;;  %v3448_v1 = vmul.f32 %v8029_v58, %v8082_v26  ;;  %v8104_v56 = vadd.f32 %v3447_v51, %v3433_v53 }
 0x382   :  { %v6107_v52 = vpop.eup %6106  ;;  %6120 = vrcp.f32 %v1222_v49  ;;  %v1224_v9 = vadd.f32 1.0, %v6105_v38  ;;  %v3427_v20 = vmul.f32 %v8007_v50, %v8084_v59  ;;  %v3434_v38 = vadd.f32 %v3426_v42, %v3412_v31 }
 0x383   :  { %6122 = vrcp.f32 %v1223_v12  ;;  %v1225_v61 = vadd.f32 1.0, %v6107_v52  ;;  %v6109_v55 = vpop.eup %6108  ;;  %v3413_v12 = vmul.f32 %v8003_v4, %v8101_v63 }
 0x384   :  { %6124 = vrcp.f32 %v1224_v9  ;;  %v6111_v29 = vpop.eup %6110  ;;  %v1291_v41 = vmul.f32 %v6109_v55, %v7970_v40  ;;  %v8113_v9 = vadd.f32 %v3448_v1, %v3434_v38 }
 0x385   :  { %6126 = vrcp.f32 %v1225_v61  ;;  %v6113_v35 = vpop.eup %6112  ;;  %v1292_v49 = vmul.f32 %v6111_v29, %v7973_v44  ;;  %v3435_v40 = vadd.f32 %v3427_v20, %v3413_v12 }
 0x386   :  { %v6115_v60 = vpop.eup %6114  ;;  %v8111_v52 = vmul.f32 %v2203_v3, %v1291_v41 }
 0x387   :  { %v6117_v61 = vpop.eup %6116  ;;  %v8117_v53 = vmul.f32 %v2208_v46, %v1292_v49 }
 0x388   :  { %v3449_v51 = vmul.f32 %v8029_v58, %v8111_v52 }
 0x389   :  { %v3414_v38 = vmul.f32 %v8003_v4, %v8117_v53 }
 0x38a   :  { %v8119_v39 = vadd.f32 %v3449_v51, %v3435_v40  ;;  %v1226_v40 = vadd.f32 1.0, %v6113_v35 }
 0x38b   :  { %v6119_v55 = vpop.eup %6118  ;;  %v2213_v20 = vpop.permute.xlu1 %2212 }
 0x38c   :  { %v6121_v44 = vpop.eup %6120  ;;  %v1293_v42 = vmul.f32 %v6119_v55, %v7978_v30  ;;  %v1227_v55 = vadd.f32 1.0, %v6115_v60  ;;  %6128 = vrcp.f32 %v1226_v40 }
 0x38d   :  { %v6123_v31 = vpop.eup %6122  ;;  %v1294_v3 = vmul.f32 %v6121_v44, %v7981_v47 }
 0x38e   :  { %v6125_v29 = vpop.eup %6124  ;;  %v1295_v1 = vmul.f32 %v6123_v31, %v7986_v24  ;;  %v8124_v41 = vmul.f32 %v2208_v46, %v1293_v42  ;;  %v1228_v24 = vadd.f32 1.0, %v6117_v61  ;;  %6130 = vrcp.f32 %v1227_v55 }
 0x38f   :  { %v6127_v49 = vpop.eup %6126  ;;  %v1296_v12 = vmul.f32 %v6125_v29, %v7990_v37  ;;  %v8129_v51 = vmul.f32 %v2208_v46, %v1294_v3 }
 0x390   :  { %v1297_v30 = vmul.f32 %v6127_v49, %v7993_v54  ;;  %v3428_v47 = vmul.f32 %v8007_v50, %v8124_v41  ;;  %v8134_v44 = vmul.f32 %v2213_v20, %v1295_v1  ;;  %6132 = vrcp.f32 %v1228_v24 }
 0x391   :  { %v8136_v42 = vmul.f32 %v2213_v20, %v1296_v12  ;;  %v3450_v31 = vmul.f32 %v8029_v58, %v8129_v51 }
 0x392   :  { %v8140_v62 = vmul.f32 %v2213_v20, %v1297_v30  ;;  %v3436_v37 = vadd.f32 %v3428_v47, %v3414_v38  ;;  %v3415_v35 = vmul.f32 %v8003_v4, %v8134_v44 }
 0x393   :  { %v3429_v54 = vmul.f32 %v8007_v50, %v8136_v42  ;;  %v8150_v3 = vpop.f32.mrb[36].mxu1  ;;  %v8152_v29 = vpop.f32.mrb[28].mxu0 }
 0x394   :  { %v8146_v60 = vadd.f32 %v3450_v31, %v3436_v37  ;;  %v3451_v46 = vmul.f32 %v8029_v58, %v8140_v62  ;;  %v2938_v1 = vadd.f32 %v8150_v3, %v8036_v57  ;;  %v2940_v20 = vadd.f32 %v8152_v29, %v8036_v57  ;;  %v5354_v38 = vpop.f32.mrb[37].mxu1  ;;  %v5374_v49 = vpop.f32.mrb[29].mxu0 }
 0x395   :  { %v3437_v61 = vadd.f32 %v3429_v54, %v3415_v35  ;;  %v2577_v12 = vpop.f32.mrb[38].mxu1  ;;  %v2619_v40 = vpop.f32.mrb[30].mxu0  ;;  %v1067_v35 = vadd.f32 %v7995_v2, %v7917_v7  ;;  %v1069_v38 = vadd.f32 %v7998_v13, %v7921_v32  ;;  %v2963_v11 = vpack.c.bf16 %v8152_v29, %v8152_v29 }
 0x396   :  { %v8161_v55 = vadd.f32 %v2938_v1, %v8023_v21  ;;  %v8164_v47 = vadd.f32 %v2940_v20, %v8023_v21  ;;  %v5355_v24 = vpop.f32.mrb[39].mxu1  ;;  %v5375_v31 = vpop.f32.mrb[31].mxu0 }
 0x397   :  { %v8158_v30 = vadd.f32 %v3451_v46, %v3437_v61  ;;  %v6129_v37 = vpop.eup %6128  ;;  %v1133_v46 = vadd.f32 %v8016_v33, %v7923_v10  ;;  %v4906_v61 = vmul.f32 -1.442695, %v1067_v35  ;;  %v4907_v12 = vmul.f32 -1.442695, %v1069_v38 }
 0x398   :  { %9346 = vst [vmem:[#allocation30_spill] sm:$0xff] %v8161_v55  ;;  %9347 = vst [vmem:[#allocation31_spill] sm:$0xff] %v8164_v47  ;;  %v6131_v54 = vpop.eup %6130  ;;  %v1298_v1 = vmul.f32 %v6129_v37, %v8014_v8 }
 0x399   :  { %v1299_v20 = vmul.f32 %v6131_v54, %v8019_v17  ;;  %v4908_v24 = vmul.f32 -1.442695, %v1133_v46  ;;  %6134 = vpow2.f32 %v4906_v61 }
 0x39a   :  { %v6133_v49 = vpop.eup %6132  ;;  %6136 = vpow2.f32 %v4907_v12 }
 0x39b   :  { %v1300_v40 = vmul.f32 %v6133_v49, %v8034_v45  ;;  %6138 = vpow2.f32 %v4908_v24 }
 0x3a3   :  { %v2218_v31 = vpop.permute.xlu0 %2217  ;;  %v6135_v45 = vpop.eup %6134 }
 0x3a4   :  { %v8175_v7 = vmul.f32 %v2218_v31, %v1298_v1  ;;  %v8177_v2 = vmul.f32 %v2218_v31, %v1299_v20  ;;  %v8179_v32 = vmul.f32 %v2218_v31, %v1300_v40  ;;  %v6137_v37 = vpop.eup %6136  ;;  %v1229_v49 = vadd.f32 1.0, %v6135_v45 }
 0x3a5   :  { %v6139_v54 = vpop.eup %6138  ;;  %v1230_v61 = vadd.f32 1.0, %v6137_v37  ;;  %v2957_v20 = vpack.c.bf16 %v8036_v57, %v8036_v57  ;;  %v8198_v57 = vld [vmem:[%s9236_s3] sm:$0xff]  }
 0x3a6   :  { %v3416_v10 = vmul.f32 %v8003_v4, %v8175_v7  ;;  %v3430_v13 = vmul.f32 %v8007_v50, %v8177_v2  ;;  %v3452_v8 = vmul.f32 %v8029_v58, %v8179_v32  ;;  %v1231_v1 = vadd.f32 1.0, %v6139_v54 }
 0x3a7   :  { %6140 = vrcp.f32 %v1229_v49  ;;  %v3010_v45 = vsel %vm3008_vm7, %v2957_v20, 0 }
 0x3a8   :  { %v3438_v33 = vadd.f32 %v3430_v13, %v3416_v10  ;;  %6142 = vrcp.f32 %v1230_v61  ;;  %v8206_v61 = vld [vmem:[%s9236_s3 + $0x8] sm:$0xff]  }
 0x3a9   :  { %6144 = vrcp.f32 %v1231_v1 }
 0x3aa   :  { %v8187_v17 = vadd.f32 %v3452_v8, %v3438_v33 }
 0x3ac   :  { %9348 = vst [vmem:[#allocation32_spill] sm:$0xff] %v8187_v17 }
 0x3b1   :  { %v6141_v54 = vpop.eup %6140 }
 0x3b2   :  { %v6143_v49 = vpop.eup %6142  ;;  %v1301_v20 = vmul.f32 %v6141_v54, %v1067_v35 }
 0x3b3   :  { %v2707_v12 = vpop.f32.mrb[40].mxu1  ;;  %v8191_v40 = vpop.f32.mrb[32].mxu0 }
 0x3b4   :  { %v2958_v24 = vpack.c.bf16 %v2707_v12, %v2707_v12  ;;  %v5394_v31 = vpop.f32.mrb[41].mxu1  ;;  %v5414_v10 = vpop.f32.mrb[33].mxu0 }
 0x3b5   :  { %v2710_v13 = vpop.f32.mrb[42].mxu1  ;;  %v2753_v8 = vpop.f32.mrb[34].mxu0 }
 0x3b6   :  { %v5395_v33 = vpop.f32.mrb[43].mxu1  ;;  %4979 = vmatprep.subr.msk.bf16.mxu1 %vm3008_vm7, %v2958_v24  ;;  %v5415_v37 = vpop.f32.mrb[35].mxu0  ;;  %v1302_v24 = vmul.f32 %v6143_v49, %v1069_v38  ;;  %v8236_v49 = vld [vmem:[%s9236_s3 + $0x18] sm:$0xff]  }
 0x3b7   :  { %3040 = vmatpush1.bf16.msra.mxu1 %v3010_v45  ;;  %v6145_v1 = vpop.eup %6144  ;;  %v8220_v45 = vld [vmem:[%s9236_s3 + $0x10] sm:$0xff]  }
 0x3b8   :  { %v1303_v31 = vmul.f32 %v6145_v1, %v1133_v46 }
 0x3ba   :  { %4980 = vmatmul.mubr.msk.bf16.vlgmr.msra.gmra.mrb[52].mxu1 %vm2995_vm8, %v8198_v57 }
 0x3bb   :  { %3081 = vmatprep.mubr.bf16.mxu1 %v9343_v34 }
 0x3c2   :  { %4981 = vmatmul.mubr.msk.bf16.gmra.mrb[56].mxu1 %vm2995_vm8, %v8206_v61 }
 0x3c3   :  { %3091 = vmatprep.mubr.bf16.mxu1 %v9343_v34 }
 0x3c4   :  { %v2223_v10 = vpop.permute.xlu1 %2222 }
 0x3c5   :  { %v8211_v13 = vmul.f32 %v2223_v10, %v1301_v20  ;;  %v8213_v8 = vmul.f32 %v2223_v10, %v1302_v24  ;;  %v8215_v33 = vmul.f32 %v2223_v10, %v1303_v31 }
 0x3c7   :  { %v3417_v35 = vmul.f32 %v8003_v4, %v8211_v13  ;;  %v3431_v38 = vmul.f32 %v8007_v50, %v8213_v8  ;;  %v3453_v46 = vmul.f32 %v8029_v58, %v8215_v33  ;;  %v2944_v4 = vsub.f32 0.0, %v2707_v12 }
 0x3c8   :  { %v2959_v50 = vpack.c.bf16 %v8191_v40, %v8191_v40 }
 0x3c9   :  { %v3439_v37 = vadd.f32 %v3431_v38, %v3417_v35  ;;  %v2961_v38 = vpack.c.bf16 %v8038_v16, %v8038_v16 }
 0x3ca   :  { %4982 = vmatmul.mubr.msk.bf16.gmra.mrb[60].mxu1 %vm2995_vm8, %v8220_v45  ;;  %v3016_v16 = vsel %vm3008_vm7, %v2959_v50, 0 }
 0x3cb   :  { %3101 = vmatprep.mubr.bf16.mxu1 %v9343_v34  ;;  %v8231_v54 = vadd.f32 %v3453_v46, %v3439_v37  ;;  %v2962_v46 = vpack.c.bf16 %v8150_v3, %v8150_v3 }
 0x3cd   :  { %9349 = vst [vmem:[#allocation33_spill] sm:$0xff] %v8231_v54 }
 0x3d2   :  { %4983 = vmatmul.mubr.msk.bf16.gmra.mrb[64].mxu1 %vm2995_vm8, %v8236_v49 }
 0x3d3   :  { %v2793_v58 = vpop.f32.mrb[44].mxu1  ;;  %v2836_v1 = vpop.f32.mrb[36].mxu0  ;;  %3174 = vmatprep.mubr.bf16.mxu1 %v9343_v34 }
 0x3d4   :  { %v2960_v20 = vpack.c.bf16 %v2793_v58, %v2793_v58  ;;  %v2942_v24 = vadd.f32 %v2836_v1, %v2707_v12  ;;  %v2945_v31 = vadd.f32 %v2944_v4, %v2836_v1  ;;  %v5434_v10 = vpop.f32.mrb[45].mxu1  ;;  %v5454_v35 = vpop.f32.mrb[37].mxu0  ;;  %v2964_v37 = vpack.c.bf16 %v2836_v1, %v2836_v1 }
 0x3d5   :  { %v2796_v0 = vpop.f32.mrb[46].mxu1  ;;  %v2839_v28 = vpop.f32.mrb[38].mxu0  ;;  %v2954_v29 = vsub.f32 0.0, %v2793_v58 }
 0x3d6   :  { %v8250_v23 = vadd.f32 %v2942_v24, %v8023_v21  ;;  %v8253_v12 = vadd.f32 %v2945_v31, %v8023_v21  ;;  %v5435_v4 = vpop.f32.mrb[47].mxu1  ;;  %4984 = vmatprep.subr.msk.bf16.mxu0 %vm3008_vm7, %v2960_v20  ;;  %5708 = vmatprep.subr.msk.bf16.mxu1 %vm3008_vm7, %v2960_v20  ;;  %v5455_v3 = vpop.f32.mrb[39].mxu0  ;;  %v3022_v28 = vsel %vm3008_vm7, %v2961_v38, 0  ;;  %v3028_v0 = vsel %vm3008_vm7, %v2963_v11, 0 }
 0x3d7   :  { %3113 = vmatpush1.bf16.msra.mxu0 %v3016_v16  ;;  %5709 = vmatpush1.bf16.msra.mxu1 %v3016_v16  ;;  %v2949_v11 = vsub.f32 0.0, %v8191_v40 }
 0x3d8   :  { %9350 = vst [vmem:[#allocation34_spill] sm:$0xff] %v8250_v23  ;;  %9351 = vst [vmem:[#allocation35_spill] sm:$0xff] %v8253_v12  ;;  %4989 = vmatprep.subr.msk.bf16.mxu1 %vm3008_vm7, %v2962_v46  ;;  %4994 = vmatprep.subr.msk.bf16.mxu0 %vm3008_vm7, %v2964_v37 }
 0x3da   :  { %4985 = vmatmul.mubr.msk.bf16.vlgmr.msra.gmra.mrb[44].mxu0 %vm2995_vm8, %v8198_v57  ;;  %4988 = vmatmul.mubr.msk.bf16.vlgmr.msra.gmra.mrb[68].mxu1 %vm2995_vm8, %v8236_v49 }
 0x3db   :  { %3186 = vmatpush1.bf16.msra.mxu1 %v3022_v28  ;;  %3259 = vmatpush1.bf16.msra.mxu0 %v3028_v0 }
 0x3dc   :  { %3154 = vmatprep.mubr.bf16.mxu0 %v9343_v34  ;;  %3217 = vmatprep.mubr.bf16.mxu1 %v9343_v34 }
 0x3e2   :  { %4986 = vmatmul.mubr.msk.bf16.gmra.mrb[48].mxu0 %vm2995_vm8, %v8206_v61  ;;  %4990 = vmatmul.mubr.msk.bf16.vlgmr.msra.gmra.mrb[72].mxu1 %vm2995_vm8, %v8198_v57 }
 0x3e3   :  { %3164 = vmatprep.mubr.bf16.mxu0 %v9343_v34  ;;  %3227 = vmatprep.mubr.bf16.mxu1 %v9343_v34 }
 0x3ea   :  { %4987 = vmatmul.mubr.msk.bf16.gmra.mrb[52].mxu0 %vm2995_vm8, %v8220_v45  ;;  %4991 = vmatmul.mubr.msk.bf16.gmra.mrb[76].mxu1 %vm2995_vm8, %v8206_v61 }
 0x3eb   :  { %3237 = vmatprep.mubr.bf16.mxu1 %v9343_v34  ;;  %3290 = vmatprep.mubr.bf16.mxu0 %v9343_v34 }
 0x3f2   :  { %4992 = vmatmul.mubr.msk.bf16.gmra.mrb[80].mxu1 %vm2995_vm8, %v8220_v45  ;;  %4995 = vmatmul.mubr.msk.bf16.vlgmr.msra.gmra.mrb[56].mxu0 %vm2995_vm8, %v8198_v57 }
 0x3f3   :  { %v2879_v50 = vpop.f32.mrb[48].mxu1  ;;  %v2922_v1 = vpop.f32.mrb[40].mxu0  ;;  %3247 = vmatprep.mubr.bf16.mxu1 %v9343_v34  ;;  %3300 = vmatprep.mubr.bf16.mxu0 %v9343_v34 }
 0x3f4   :  { %v2947_v20 = vadd.f32 %v2879_v50, %v8191_v40  ;;  %v2950_v24 = vadd.f32 %v2949_v11, %v2879_v50  ;;  %v2965_v31 = vpack.c.bf16 %v2879_v50, %v2879_v50  ;;  %v2952_v10 = vadd.f32 %v2922_v1, %v2793_v58  ;;  %v5474_v35 = vpop.f32.mrb[49].mxu1  ;;  %v5494_v38 = vpop.f32.mrb[41].mxu0 }
 0x3f5   :  { %v2955_v46 = vadd.f32 %v2954_v29, %v2922_v1  ;;  %v2966_v37 = vpack.c.bf16 %v2922_v1, %v2922_v1  ;;  %v2882_v4 = vpop.f32.mrb[50].mxu1  ;;  %v2925_v16 = vpop.f32.mrb[42].mxu0 }
 0x3f6   :  { %v8289_v3 = vadd.f32 %v2947_v20, %v8023_v21  ;;  %v8292_v28 = vadd.f32 %v2950_v24, %v8023_v21  ;;  %v8295_v0 = vadd.f32 %v2952_v10, %v8023_v21  ;;  %v5475_v22 = vpop.f32.mrb[51].mxu1  ;;  %v5495_v40 = vpop.f32.mrb[43].mxu0  ;;  %v3034_v11 = vsel %vm3008_vm7, %v2965_v31, 0 }
 0x3f7   :  { %v8299_v58 = vadd.f32 %v2955_v46, %v8023_v21  ;;  %4999 = vmatprep.subr.msk.bf16.mxu1 %vm3008_vm7, %v2966_v37 }
 0x3f8   :  { %9352 = vst [vmem:[#allocation36_spill] sm:$0xff] %v8289_v3  ;;  %9353 = vst [vmem:[#allocation37_spill] sm:$0xff] %v8292_v28  ;;  %3332 = vmatpush1.bf16.msra.mxu1 %v3034_v11 }
 0x3f9   :  { %9354 = vst [vmem:[#allocation38_spill] sm:$0xff] %v8295_v0  ;;  %9355 = vst [vmem:[#allocation39_spill] sm:$0xff] %v8299_v58 }
 0x3fa   :  { %4993 = vmatmul.mubr.msk.bf16.gmra.mrb[84].mxu1 %vm2995_vm8, %v8236_v49  ;;  %4996 = vmatmul.mubr.msk.bf16.gmra.mrb[60].mxu0 %vm2995_vm8, %v8206_v61 }
 0x3fb   :  { %3310 = vmatprep.mubr.bf16.mxu0 %v9343_v34  ;;  %3363 = vmatprep.mubr.bf16.mxu1 %v9343_v34 }
 0x402   :  { %4997 = vmatmul.mubr.msk.bf16.gmra.mrb[64].mxu0 %vm2995_vm8, %v8220_v45  ;;  %5000 = vmatmul.mubr.msk.bf16.vlgmr.msra.gmra.mrb[88].mxu1 %vm2995_vm8, %v8198_v57 }
 0x403   :  { %3320 = vmatprep.mubr.bf16.mxu0 %v9343_v34  ;;  %3373 = vmatprep.mubr.bf16.mxu1 %v9343_v34 }
 0x40a   :  { %4998 = vmatmul.mubr.msk.bf16.gmra.mrb[68].mxu0 %vm2995_vm8, %v8236_v49  ;;  %5001 = vmatmul.mubr.msk.bf16.gmra.mrb[92].mxu1 %vm2995_vm8, %v8206_v61 }
 0x40b   :  { %3383 = vmatprep.mubr.bf16.mxu1 %v9343_v34  ;;  %3743 = vmatprep.mubr.bf16.mxu0 %v9343_v34 }
 0x412   :  { %5002 = vmatmul.mubr.msk.bf16.gmra.mrb[96].mxu1 %vm2995_vm8, %v8220_v45 }
 0x413   :  { %3393 = vmatprep.mubr.bf16.mxu1 %v9343_v34 }
 0x41a   :  { %5003 = vmatmul.mubr.msk.bf16.gmra.mrb[100].mxu1 %vm2995_vm8, %v8236_v49 }
 0x41b   :  { %3784 = vmatprep.mubr.bf16.mxu1 %v9343_v34 }
 0x48d   :  { %v3073_v22 = vpop.f32.mrb[52].mxu1 }
 0x48e   :  { %v3462_v21 = vmul.f32 %v3073_v22, %v8046_v25  ;;  %v3075_v57 = vpop.f32.mrb[53].mxu1 }
 0x48f   :  { %v8328_v61 = vmul.f32 %v3075_v57, %v8041_v19  ;;  %v3077_v29 = vpop.f32.mrb[54].mxu1 }
 0x490   :  { %v8331_v50 = vadd.f32 %v3462_v21, %v8086_v27  ;;  %v3463_v45 = vmul.f32 %v3077_v29, %v8076_v15  ;;  %v3079_v1 = vpop.f32.mrb[55].mxu1 }
 0x491   :  { %v8336_v20 = vadd.f32 %v8328_v61, %v8086_v27  ;;  %v8341_v25 = vmul.f32 %v3079_v1, %v8059_v6 }
 0x492   :  { %v8344_v24 = vadd.f32 %v3463_v45, %v8104_v56 }
 0x493   :  { %v8348_v31 = vadd.f32 %v8341_v25, %v8104_v56 }
 0x495   :  { %v3083_v10 = vpop.f32.mrb[56].mxu1 }
 0x496   :  { %v3464_v35 = vmul.f32 %v3083_v10, %v8093_v43  ;;  %v3085_v38 = vpop.f32.mrb[57].mxu1 }
 0x497   :  { %v8354_v46 = vmul.f32 %v3085_v38, %v8072_v36  ;;  %v3087_v37 = vpop.f32.mrb[58].mxu1 }
 0x498   :  { %v8357_v4 = vadd.f32 %v3464_v35, %v8113_v9  ;;  %v3465_v16 = vmul.f32 %v3087_v37, %v8101_v63  ;;  %v3089_v40 = vpop.f32.mrb[59].mxu1 }
 0x499   :  { %v8362_v11 = vadd.f32 %v8354_v46, %v8113_v9  ;;  %v8367_v43 = vmul.f32 %v3089_v40, %v8084_v59 }
 0x49a   :  { %v8370_v21 = vadd.f32 %v3465_v16, %v8119_v39 }
 0x49b   :  { %v8374_v57 = vadd.f32 %v8367_v43, %v8119_v39 }
 0x49d   :  { %v3093_v29 = vpop.f32.mrb[60].mxu1 }
 0x49e   :  { %v3466_v45 = vmul.f32 %v3093_v29, %v8117_v53  ;;  %v3095_v1 = vpop.f32.mrb[61].mxu1 }
 0x49f   :  { %v8380_v10 = vmul.f32 %v3095_v1, %v8124_v41  ;;  %v3097_v35 = vpop.f32.mrb[62].mxu1 }
 0x4a0   :  { %v8383_v38 = vadd.f32 %v3466_v45, %v8146_v60  ;;  %v3467_v37 = vmul.f32 %v3097_v35, %v8134_v44  ;;  %v3099_v16 = vpop.f32.mrb[63].mxu1 }
 0x4a1   :  { %v8388_v40 = vadd.f32 %v8380_v10, %v8146_v60  ;;  %v8393_v53 = vmul.f32 %v3099_v16, %v8136_v42 }
 0x4a2   :  { %v8396_v29 = vadd.f32 %v3467_v37, %v8158_v30 }
 0x4a3   :  { %v8400_v45 = vadd.f32 %v8393_v53, %v8158_v30 }
 0x4a5   :  { %v3103_v1 = vpop.f32.mrb[64].mxu1 }
 0x4a6   :  { %v3468_v35 = vmul.f32 %v3103_v1, %v8175_v7  ;;  %v3105_v22 = vpop.f32.mrb[65].mxu1 }
 0x4a7   :  { %v8406_v15 = vmul.f32 %v3105_v22, %v8177_v2  ;;  %v3107_v63 = vpop.f32.mrb[66].mxu1 }
 0x4a8   :  { %v8409_v16 = vadd.f32 %v3468_v35, %v8187_v17  ;;  %v3469_v37 = vmul.f32 %v3107_v63, %v8211_v13  ;;  %v3109_v49 = vpop.f32.mrb[67].mxu1 }
 0x4a9   :  { %9356 = vst [vmem:[#allocation40_spill] sm:$0xff] %v8406_v15  ;;  %v8414_v18 = vadd.f32 %v8406_v15, %v8187_v17  ;;  %v8419_v7 = vmul.f32 %v3109_v49, %v8213_v8 }
 0x4aa   :  { %v8422_v22 = vadd.f32 %v3469_v37, %v8231_v54 }
 0x4ab   :  { %9357 = vst [vmem:[#allocation41_spill] sm:$0xff] %v8414_v18  ;;  %9358 = vst [vmem:[#allocation42_spill] sm:$0xff] %v8419_v7  ;;  %v8426_v1 = vadd.f32 %v8419_v7, %v8231_v54 }
 0x4ad   :  { %9359 = vst [vmem:[#allocation43_spill] sm:$0xff] %v8426_v1  ;;  %v3146_v63 = vpop.f32.mrb[44].mxu0  ;;  %v3176_v35 = vpop.f32.mrb[68].mxu1 }
 0x4ae   :  { %v8431_v47 = vmul.f32 %v3146_v63, %v8041_v19  ;;  %v8434_v44 = vmul.f32 %v3176_v35, %v8177_v2  ;;  %v3148_v49 = vpop.f32.mrb[45].mxu0  ;;  %v3178_v58 = vpop.f32.mrb[69].mxu1 }
 0x4af   :  { %v8437_v37 = vmul.f32 %v3148_v49, %v8041_v19  ;;  %v8440_v0 = vmul.f32 %v3178_v58, %v8177_v2  ;;  %v3150_v55 = vpop.f32.mrb[46].mxu0  ;;  %v3180_v28 = vpop.f32.mrb[70].mxu1 }
 0x4b0   :  { %9360 = vst [vmem:[#allocation44_spill] sm:$0xff] %v8434_v44  ;;  %v8444_v13 = vadd.f32 %v8431_v47, %v8086_v27  ;;  %v8450_v35 = vadd.f32 %v8434_v44, %v8187_v17  ;;  %v3152_v49 = vpop.f32.mrb[47].mxu0  ;;  %v3182_v12 = vpop.f32.mrb[71].mxu1  ;;  %v8467_v23 = vmul.f32 %v3150_v55, %v8059_v6  ;;  %v8470_v19 = vmul.f32 %v3180_v28, %v8213_v8 }
 0x4b1   :  { %9361 = vst [vmem:[#allocation45_spill] sm:$0xff] %v8440_v0  ;;  %v8456_v2 = vadd.f32 %v8437_v37, %v8086_v27  ;;  %v8462_v3 = vadd.f32 %v8440_v0, %v8187_v17  ;;  %v8473_v48 = vmul.f32 %v3152_v49, %v8059_v6  ;;  %v8476_v44 = vmul.f32 %v3182_v12, %v8213_v8 }
 0x4b2   :  { %9362 = vst [vmem:[#allocation46_spill] sm:$0xff] %v8450_v35  ;;  %9364 = vst [vmem:[#allocation48_spill] sm:$0xff] %v8470_v19  ;;  %v8480_v58 = vadd.f32 %v8467_v23, %v8104_v56  ;;  %v8486_v55 = vadd.f32 %v8470_v19, %v8231_v54 }
 0x4b3   :  { %9363 = vst [vmem:[#allocation47_spill] sm:$0xff] %v8462_v3  ;;  %9365 = vst [vmem:[#allocation49_spill] sm:$0xff] %v8476_v44  ;;  %v8492_v6 = vadd.f32 %v8473_v48, %v8104_v56  ;;  %v8498_v12 = vadd.f32 %v8476_v44, %v8231_v54 }
 0x4b4   :  { %9366 = vst [vmem:[#allocation50_spill] sm:$0xff] %v8486_v55 }
 0x4b5   :  { %9367 = vst [vmem:[#allocation51_spill] sm:$0xff] %v8498_v12  ;;  %v3156_v63 = vpop.f32.mrb[48].mxu0  ;;  %v3219_v3 = vpop.f32.mrb[72].mxu1 }
 0x4b6   :  { %v8503_v55 = vmul.f32 %v3156_v63, %v8072_v36  ;;  %v3478_v28 = vmul.f32 %v3219_v3, %v8057_v14  ;;  %v3158_v19 = vpop.f32.mrb[49].mxu0  ;;  %v3221_v0 = vpop.f32.mrb[73].mxu1 }
 0x4b7   :  { %v8507_v35 = vmul.f32 %v3158_v19, %v8072_v36  ;;  %v3494_v8 = vmul.f32 %v3221_v0, %v8057_v14  ;;  %v3160_v34 = vpop.f32.mrb[50].mxu0  ;;  %v3223_v7 = vpop.f32.mrb[74].mxu1 }
 0x4b8   :  { %v8512_v12 = vadd.f32 %v8503_v55, %v8113_v9  ;;  %v8517_v63 = vadd.f32 %v3478_v28, %v8331_v50  ;;  %v8520_v3 = vmul.f32 %v3160_v34, %v8084_v59  ;;  %v3162_v44 = vpop.f32.mrb[51].mxu0  ;;  %v3225_v36 = vpop.f32.mrb[75].mxu1  ;;  %v3479_v49 = vmul.f32 %v3223_v7, %v8066_v5 }
 0x4b9   :  { %9368 = vst [vmem:[#allocation52_spill] sm:$0xff] %v8507_v35  ;;  %v8524_v0 = vadd.f32 %v8507_v35, %v8113_v9  ;;  %v8529_v54 = vadd.f32 %v3494_v8, %v8331_v50  ;;  %v8539_v1 = vmul.f32 %v3162_v44, %v8084_v59 }
 0x4ba   :  { %9369 = vst [vmem:[#allocation53_spill] sm:$0xff] %v8520_v3  ;;  %v8534_v28 = vadd.f32 %v8520_v3, %v8119_v39  ;;  %v8543_v15 = vadd.f32 %v3479_v49, %v8344_v24 }
 0x4bb   :  { %9370 = vst [vmem:[#allocation54_spill] sm:$0xff] %v8524_v0  ;;  %9371 = vst [vmem:[#allocation55_spill] sm:$0xff] %v8529_v54  ;;  %v3495_v0 = vmul.f32 %v3225_v36, %v8066_v5  ;;  %v8547_v8 = vadd.f32 %v8539_v1, %v8119_v39 }
 0x4bc   :  { %9372 = vst [vmem:[#allocation56_spill] sm:$0xff] %v8534_v28  ;;  %9373 = vst [vmem:[#allocation57_spill] sm:$0xff] %v8539_v1 }
 0x4bd   :  { %9374 = vst [vmem:[#allocation58_spill] sm:$0xff] %v8547_v8  ;;  %v8552_v19 = vadd.f32 %v3495_v0, %v8344_v24  ;;  %v3166_v59 = vpop.f32.mrb[52].mxu0  ;;  %v3229_v44 = vpop.f32.mrb[76].mxu1 }
 0x4be   :  { %v8559_v49 = vmul.f32 %v3166_v59, %v8124_v41  ;;  %v3480_v3 = vmul.f32 %v3229_v44, %v8082_v26  ;;  %v3168_v8 = vpop.f32.mrb[53].mxu0  ;;  %v3231_v28 = vpop.f32.mrb[77].mxu1 }
 0x4bf   :  { %9375 = vst [vmem:[#allocation59_spill] sm:$0xff] %v8552_v19  ;;  %v8563_v7 = vmul.f32 %v3168_v8, %v8124_v41  ;;  %v3496_v0 = vmul.f32 %v3231_v28, %v8082_v26  ;;  %v3170_v1 = vpop.f32.mrb[54].mxu0  ;;  %v3233_v35 = vpop.f32.mrb[78].mxu1 }
 0x4c0   :  { %9376 = vst [vmem:[#allocation60_spill] sm:$0xff] %v8559_v49  ;;  %v8568_v34 = vadd.f32 %v8559_v49, %v8146_v60  ;;  %v8573_v59 = vadd.f32 %v3480_v3, %v8357_v4  ;;  %v8576_v44 = vmul.f32 %v3170_v1, %v8136_v42  ;;  %v3172_v54 = vpop.f32.mrb[55].mxu0  ;;  %v3235_v41 = vpop.f32.mrb[79].mxu1  ;;  %v3481_v36 = vmul.f32 %v3233_v35, %v8111_v52 }
 0x4c1   :  { %9377 = vst [vmem:[#allocation61_spill] sm:$0xff] %v8563_v7  ;;  %v8580_v28 = vadd.f32 %v8563_v7, %v8146_v60  ;;  %v8585_v19 = vadd.f32 %v3496_v0, %v8357_v4  ;;  %v8595_v49 = vmul.f32 %v3172_v54, %v8136_v42 }
 0x4c2   :  { %9378 = vst [vmem:[#allocation62_spill] sm:$0xff] %v8568_v34  ;;  %9379 = vst [vmem:[#allocation63_spill] sm:$0xff] %v8576_v44  ;;  %v8590_v3 = vadd.f32 %v8576_v44, %v8158_v30  ;;  %v8599_v34 = vadd.f32 %v3481_v36, %v8370_v21 }
 0x4c3   :  { %9380 = vst [vmem:[#allocation64_spill] sm:$0xff] %v8580_v28  ;;  %9381 = vst [vmem:[#allocation65_spill] sm:$0xff] %v8585_v19  ;;  %v3497_v28 = vmul.f32 %v3235_v41, %v8111_v52  ;;  %v8603_v0 = vadd.f32 %v8595_v49, %v8158_v30 }
 0x4c4   :  { %9382 = vst [vmem:[#allocation66_spill] sm:$0xff] %v8590_v3  ;;  %9383 = vst [vmem:[#allocation67_spill] sm:$0xff] %v8595_v49 }
 0x4c5   :  { %9384 = vst [vmem:[#allocation68_spill] sm:$0xff] %v8603_v0  ;;  %v8608_v8 = vadd.f32 %v3497_v28, %v8370_v21  ;;  %v3239_v42 = vpop.f32.mrb[80].mxu1  ;;  %v3292_v54 = vpop.f32.mrb[56].mxu0 }
 0x4c6   :  { %v3482_v36 = vmul.f32 %v3239_v42, %v8129_v51  ;;  %v3510_v44 = vmul.f32 %v3292_v54, %v8057_v14  ;;  %v3241_v3 = vpop.f32.mrb[81].mxu1  ;;  %v3294_v0 = vpop.f32.mrb[57].mxu0 }
 0x4c7   :  { %9385 = vst [vmem:[#allocation69_spill] sm:$0xff] %v8608_v8  ;;  %v3498_v7 = vmul.f32 %v3241_v3, %v8129_v51  ;;  %v3534_v35 = vmul.f32 %v3294_v0, %v8057_v14  ;;  %v3243_v28 = vpop.f32.mrb[82].mxu1  ;;  %v3296_v49 = vpop.f32.mrb[58].mxu0  ;;  %v9388_v0 = vsub.f32 %v8086_v27, %v8328_v61 }
 0x4c8   :  { %v8619_v17 = vadd.f32 %v3482_v36, %v8383_v38  ;;  %v8622_v1 = vadd.f32 %v3510_v44, %v8331_v50  ;;  %v3483_v41 = vmul.f32 %v3243_v28, %v8140_v62  ;;  %v3511_v42 = vmul.f32 %v3296_v49, %v8066_v5  ;;  %v3245_v19 = vpop.f32.mrb[83].mxu1  ;;  %v3298_v54 = vpop.f32.mrb[59].mxu0 }
 0x4c9   :  { %v8627_v8 = vadd.f32 %v3498_v7, %v8383_v38  ;;  %v3550_v3 = vadd.f32 %v8336_v20, %v3534_v35  ;;  %v3566_v18 = vadd.f32 %v9388_v0, %v3534_v35  ;;  %v3499_v36 = vmul.f32 %v3245_v19, %v8140_v62 }
 0x4ca   :  { %9386 = vst [vmem:[#allocation70_spill] sm:$0xff] %v8619_v17  ;;  %9387 = vst [vmem:[#allocation71_spill] sm:$0xff] %v8622_v1  ;;  %v8635_v50 = vadd.f32 %v3483_v41, %v8396_v29  ;;  %v8638_v44 = vadd.f32 %v3511_v42, %v8344_v24  ;;  %v3535_v49 = vmul.f32 %v3298_v54, %v8066_v5 }
 0x4cb   :  { %v8642_v28 = vadd.f32 %v3499_v36, %v8396_v29  ;;  %v9390_v19 = vsub.f32 %v8104_v56, %v8341_v25 }
 0x4cc   :  { %9389 = vst [vmem:[#allocation72_spill] sm:$0xff] %v8635_v50  ;;  %v3551_v7 = vadd.f32 %v8348_v31, %v3535_v49 }
 0x4cd   :  { %v3567_v35 = vadd.f32 %v9390_v19, %v3535_v49  ;;  %v3249_v41 = vpop.f32.mrb[84].mxu1  ;;  %v3302_v42 = vpop.f32.mrb[60].mxu0 }
 0x4ce   :  { %v3484_v54 = vmul.f32 %v3249_v41, %v8179_v32  ;;  %v3512_v0 = vmul.f32 %v3302_v42, %v8082_v26  ;;  %v3251_v36 = vpop.f32.mrb[85].mxu1  ;;  %v3304_v20 = vpop.f32.mrb[61].mxu0  ;;  %v3674_v17 = vpack.c.bf16 %v3551_v7, %v3550_v3  ;;  %v9391_v7 = vsub.f32 %v8113_v9, %v8354_v46 }
 0x4cf   :  { %v3682_v50 = vpack.c.bf16 %v3567_v35, %v3566_v18  ;;  %v3500_v61 = vmul.f32 %v3251_v36, %v8179_v32  ;;  %v3536_v31 = vmul.f32 %v3304_v20, %v8082_v26  ;;  %v3253_v1 = vpop.f32.mrb[86].mxu1  ;;  %v3306_v25 = vpop.f32.mrb[62].mxu0 }
 0x4d0   :  { %v8659_v49 = vadd.f32 %v3484_v54, %v8409_v16  ;;  %v8662_v19 = vadd.f32 %v3512_v0, %v8357_v4  ;;  %v3485_v41 = vmul.f32 %v3253_v1, %v8215_v33  ;;  %v3513_v42 = vmul.f32 %v3306_v25, %v8111_v52  ;;  %3711 = vmatprep.subr.bf16.mxu0 %v3674_v17  ;;  %v3255_v24 = vpop.f32.mrb[87].mxu1  ;;  %v3308_v3 = vpop.f32.mrb[63].mxu0 }
 0x4d1   :  { %v8667_v18 = vadd.f32 %v3500_v61, %v8409_v16  ;;  %v3552_v20 = vadd.f32 %v8362_v11, %v3536_v31  ;;  %v8673_v35 = vadd.f32 %v9391_v7, %v3536_v31  ;;  %3752 = vmatprep.subr.bf16.mxu1 %v3682_v50  ;;  %v3501_v4 = vmul.f32 %v3255_v24, %v8215_v33 }
 0x4d2   :  { %v8677_v1 = vadd.f32 %v3485_v41, %v8422_v22  ;;  %v8680_v17 = vadd.f32 %v3513_v42, %v8370_v21  ;;  %v3537_v54 = vmul.f32 %v3308_v3, %v8111_v52  ;;  %v9392_v61 = vpack.c.bf16 %v8543_v15, %v8517_v63 }
 0x4d3   :  { %v8687_v11 = vadd.f32 %v3501_v4, %v8422_v22  ;;  %v9393_v21 = vsub.f32 %v8119_v39, %v8367_v43 }
 0x4d4   :  { %3712 = vmatpush1.bf16.msra.mxu0 %v9392_v61  ;;  %v3673_v46 = vpack.c.bf16 %v8677_v1, %v8659_v49  ;;  %v3703_v50 = vpack.c.bf16 %v8680_v17, %v8662_v19  ;;  %v3553_v24 = vadd.f32 %v8374_v57, %v3537_v54  ;;  %v8933_v19 = vld [vmem:[#allocation11 + $0x80] sm:$0xff]   ;;  %v8936_v17 = vld [vmem:[#allocation11 + $0x88] sm:$0xff]  }
 0x4d5   :  { %v8697_v0 = vadd.f32 %v9393_v21, %v3537_v54  ;;  %v3689_v15 = vpack.c.bf16 %v8687_v11, %v8667_v18  ;;  %v3312_v63 = vpop.f32.mrb[64].mxu0  ;;  %v3365_v36 = vpop.f32.mrb[88].mxu1  ;;  %v5896_v18 = vld [vmem:[#allocation11 + $0x8] sm:$0xff]   ;;  %v5898_v11 = vld [vmem:[#allocation11 + $0x10] sm:$0xff]  }
 0x4d6   :  { %v3514_v31 = vmul.f32 %v3312_v63, %v8129_v51  ;;  %v3582_v25 = vmul.f32 %v3365_v36, %v8057_v14  ;;  %v3314_v41 = vpop.f32.mrb[65].mxu0  ;;  %v3367_v42 = vpop.f32.mrb[89].mxu1  ;;  %v3675_v3 = vpack.c.bf16 %v3553_v24, %v3552_v20  ;;  %v9394_v63 = vsub.f32 %v8086_v27, %v8431_v47 }
 0x4d7   :  { %v3683_v57 = vpack.c.bf16 %v8697_v0, %v8673_v35  ;;  %v3538_v7 = vmul.f32 %v3314_v41, %v8129_v51  ;;  %v3630_v43 = vmul.f32 %v3367_v42, %v8057_v14  ;;  %v3316_v4 = vpop.f32.mrb[66].mxu0  ;;  %v3369_v54 = vpop.f32.mrb[90].mxu1  ;;  %v9395_v14 = vsub.f32 %v8146_v60, %v8380_v10 }
 0x4d8   :  { %v8708_v61 = vadd.f32 %v3514_v31, %v8383_v38  ;;  %v3598_v21 = vadd.f32 %v8444_v13, %v3582_v25  ;;  %v8714_v36 = vadd.f32 %v9394_v63, %v3582_v25  ;;  %v3515_v20 = vmul.f32 %v3316_v4, %v8140_v62  ;;  %3713 = vmatprep.subr.bf16.mxu0 %v3675_v3  ;;  %v3318_v35 = vpop.f32.mrb[67].mxu0  ;;  %v3371_v24 = vpop.f32.mrb[91].mxu1 }
 0x4d9   :  { %v3554_v0 = vadd.f32 %v8388_v40, %v3538_v7  ;;  %v8721_v41 = vadd.f32 %v9395_v14, %v3538_v7  ;;  %v8724_v38 = vadd.f32 %v8456_v2, %v3630_v43  ;;  %v9396_v47 = vsub.f32 %v8086_v27, %v8437_v37 }
 0x4da   :  { %v9397_v31 = vpack.c.bf16 %v8599_v34, %v8573_v59  ;;  %v8735_v25 = vadd.f32 %v3515_v20, %v8396_v29  ;;  %v3583_v40 = vmul.f32 %v3369_v54, %v8066_v5  ;;  %v3539_v10 = vmul.f32 %v3318_v35, %v8140_v62 }
 0x4db   :  { %v8729_v13 = vadd.f32 %v9396_v47, %v3630_v43  ;;  %v3631_v42 = vmul.f32 %v3371_v24, %v8066_v5  ;;  %v9398_v37 = vsub.f32 %v8104_v56, %v8467_v23  ;;  %v9399_v29 = vsub.f32 %v8158_v30, %v8393_v53 }
 0x4dc   :  { %3714 = vmatpush1.bf16.msra.mxu0 %v9397_v31  ;;  %v3704_v2 = vpack.c.bf16 %v8735_v25, %v8708_v61  ;;  %v3599_v27 = vadd.f32 %v8480_v58, %v3583_v40  ;;  %v3555_v34 = vadd.f32 %v8400_v45, %v3539_v10  ;;  %v9400_v5 = vsub.f32 %v8104_v56, %v8473_v48  ;;  %v8946_v61 = vld [vmem:[#allocation11 + $0x98] sm:$0xff]   ;;  %v8951_v25 = vld [vmem:[#allocation11 + $0xa0] sm:$0xff]  }
 0x4dd   :  { %v8746_v3 = vadd.f32 %v9398_v37, %v3583_v40  ;;  %v8752_v59 = vadd.f32 %v9399_v29, %v3539_v10  ;;  %v8755_v7 = vadd.f32 %v8492_v6, %v3631_v42  ;;  %v3322_v58 = vpop.f32.mrb[68].mxu0  ;;  %v3375_v4 = vpop.f32.mrb[92].mxu1  ;;  %v9401_v31 = vsub.f32 %v8113_v9, %v8503_v55  ;;  %v9403_v37 = vld [vmem:[#allocation32_spill] sm:$0xff] }
 0x4de   :  { %v8760_v43 = vadd.f32 %v9400_v5, %v3631_v42  ;;  %v3678_v23 = vpack.c.bf16 %v3599_v27, %v3598_v21  ;;  %v3516_v45 = vmul.f32 %v3322_v58, %v8179_v32  ;;  %v3584_v53 = vmul.f32 %v3375_v4, %v8082_v26  ;;  %v3324_v63 = vpop.f32.mrb[69].mxu0  ;;  %v3377_v20 = vpop.f32.mrb[93].mxu1  ;;  %v9402_v27 = vld [vmem:[#allocation41_spill] sm:$0xff] }
 0x4df   :  { %v3694_v54 = vpack.c.bf16 %v8746_v3, %v8714_v36  ;;  %v3540_v6 = vmul.f32 %v3324_v63, %v8179_v32  ;;  %v3632_v35 = vmul.f32 %v3377_v20, %v8082_v26  ;;  %v3326_v24 = vpop.f32.mrb[70].mxu0  ;;  %v3379_v48 = vpop.f32.mrb[94].mxu1  ;;  %v3676_v56 = vpack.c.bf16 %v3555_v34, %v3554_v0  ;;  %v9404_v34 = vld [vmem:[#allocation40_spill] sm:$0xff]  ;;  %v9410_v63 = vld [vmem:[#allocation70_spill] sm:$0xff]  ;;  %v8956_v3 = vld [vmem:[#allocation11 + $0xa8] sm:$0xff]  }
 0x4e0   :  { %v3684_v14 = vpack.c.bf16 %v8752_v59, %v8721_v41  ;;  %v8771_v21 = vadd.f32 %v3516_v45, %v8409_v16  ;;  %v3600_v47 = vadd.f32 %v8512_v12, %v3584_v53  ;;  %v8777_v40 = vadd.f32 %v9401_v31, %v3584_v53  ;;  %3753 = vmatpush1.bf16.msra.mxu1 %v3678_v23  ;;  %v3328_v26 = vpop.f32.mrb[71].mxu0  ;;  %v3381_v42 = vpop.f32.mrb[95].mxu1  ;;  %v9406_v16 = vld [vmem:[#allocation54_spill] sm:$0xff]  ;;  %v9407_v12 = vld [vmem:[#allocation52_spill] sm:$0xff] }
 0x4e1   :  { %v3517_v10 = vmul.f32 %v3326_v24, %v8215_v33  ;;  %v3556_v0 = vadd.f32 %v9402_v27, %v3540_v6  ;;  %v9405_v41 = vsub.f32 %v9403_v37, %v9404_v34  ;;  %v3648_v59 = vadd.f32 %v9406_v16, %v3632_v35  ;;  %3715 = vmatprep.subr.bf16.mxu0 %v3676_v56  ;;  %v9409_v53 = vld [vmem:[#allocation72_spill] sm:$0xff]  ;;  %v9420_v34 = vld [vmem:[#allocation57_spill] sm:$0xff]  ;;  %v5902_v36 = vld [vmem:[#allocation11 + $0x20] sm:$0xff]  }
 0x4e2   :  { %v9408_v5 = vsub.f32 %v8113_v9, %v9407_v12  ;;  %v3585_v4 = vmul.f32 %v3379_v48, %v8111_v52  ;;  %3754 = vmatprep.subr.bf16.mxu1 %v3683_v57  ;;  %v3541_v23 = vmul.f32 %v3328_v26, %v8215_v33  ;;  %v3633_v45 = vmul.f32 %v3381_v42, %v8111_v52  ;;  %v9413_v57 = vld [vmem:[#allocation53_spill] sm:$0xff]  ;;  %v9415_v52 = vld [vmem:[#allocation43_spill] sm:$0xff]  ;;  %v9417_v26 = vld [vmem:[#allocation42_spill] sm:$0xff] }
 0x4e3   :  { %v3572_v29 = vadd.f32 %v9405_v41, %v3540_v6  ;;  %v8791_v55 = vadd.f32 %v3517_v10, %v8422_v22  ;;  %v9411_v20 = vpack.c.bf16 %v9409_v53, %v9410_v63  ;;  %v3690_v9 = vpack.c.bf16 %v8755_v7, %v8724_v38  ;;  %v9416_v10 = vld [vmem:[#allocation33_spill] sm:$0xff]  ;;  %v9419_v38 = vld [vmem:[#allocation58_spill] sm:$0xff] }
 0x4e4   :  { %v8788_v58 = vadd.f32 %v9408_v5, %v3632_v35  ;;  %v3698_v6 = vpack.c.bf16 %v8760_v43, %v8729_v13  ;;  %v9412_v35 = vld [vmem:[#allocation56_spill] sm:$0xff]  ;;  %v9414_v48 = vsub.f32 %v8119_v39, %v9413_v57  ;;  %v3557_v31 = vadd.f32 %v9415_v52, %v3541_v23 }
 0x4e5   :  { %3716 = vmatpush1.bf16.msra.mxu0 %v9411_v20  ;;  %v3705_v22 = vpack.c.bf16 %v8791_v55, %v8771_v21  ;;  %v3601_v24 = vadd.f32 %v9412_v35, %v3585_v4  ;;  %v9418_v42 = vsub.f32 %v9416_v10, %v9417_v26  ;;  %v3649_v7 = vadd.f32 %v9419_v38, %v3633_v45  ;;  %v3385_v12 = vpop.f32.mrb[96].mxu1  ;;  %v9423_v26 = vld [vmem:[#allocation60_spill] sm:$0xff]  ;;  %v8845_v38 = vld [vmem:[%s9237_s4] sm:$0xf] }
 0x4e6   :  { %v8809_v56 = vadd.f32 %v9414_v48, %v3585_v4  ;;  %v9421_v41 = vsub.f32 %v8119_v39, %v9420_v34  ;;  %v3586_v4 = vmul.f32 %v3385_v12, %v8129_v51  ;;  %v3387_v63 = vpop.f32.mrb[97].mxu1  ;;  %v3677_v20 = vpack.c.bf16 %v3557_v31, %v3556_v0  ;;  %v9422_v39 = vld [vmem:[#allocation62_spill] sm:$0xff]  ;;  %v9425_v31 = vld [vmem:[#allocation64_spill] sm:$0xff]  ;;  %v5908_v21 = vld [vmem:[#allocation11 + $0x38] sm:$0xff]  }
 0x4e7   :  { %v3573_v27 = vadd.f32 %v9418_v42, %v3541_v23  ;;  %v3679_v5 = vpack.c.bf16 %v3601_v24, %v3600_v47  ;;  %v3634_v35 = vmul.f32 %v3387_v63, %v8129_v51  ;;  %v3389_v57 = vpop.f32.mrb[98].mxu1  ;;  %v3691_v23 = vpack.c.bf16 %v3649_v7, %v3648_v59  ;;  %v9426_v59 = vld [vmem:[#allocation61_spill] sm:$0xff]  ;;  %v9428_v7 = vld [vmem:[#allocation66_spill] sm:$0xff]  ;;  %v9435_v63 = vld [vmem:[#allocation55_spill] sm:$0xff] }
 0x4e8   :  { %v8819_v16 = vadd.f32 %v9421_v41, %v3633_v45  ;;  %v3695_v53 = vpack.c.bf16 %v8809_v56, %v8777_v40  ;;  %v3602_v45 = vadd.f32 %v9422_v39, %v3586_v4  ;;  %v9424_v47 = vsub.f32 %v8146_v60, %v9423_v26  ;;  %3717 = vmatprep.subr.bf16.mxu0 %v3677_v20  ;;  %v3391_v0 = vpop.f32.mrb[99].mxu1  ;;  %v9429_v41 = vld [vmem:[#allocation63_spill] sm:$0xff]  ;;  %v5906_v43 = vld [vmem:[#allocation11 + $0x30] sm:$0xff]   ;;  %v8966_v40 = vld [vmem:[#allocation11 + $0xb8] sm:$0xff]  }
 0x4e9   :  { %v3685_v48 = vpack.c.bf16 %v3573_v27, %v3572_v29  ;;  %3755 = vmatpush1.bf16.msra.mxu1 %v3679_v5  ;;  %v3587_v42 = vmul.f32 %v3389_v57, %v8140_v62  ;;  %v3650_v51 = vadd.f32 %v9425_v31, %v3634_v35  ;;  %v9427_v29 = vsub.f32 %v8146_v60, %v9426_v59  ;;  %v9458_v56 = vld [vmem:[#allocation34_spill] sm:$0xff] }
 0x4ea   :  { %v3699_v52 = vpack.c.bf16 %v8819_v16, %v8788_v58  ;;  %v8831_v24 = vadd.f32 %v9424_v47, %v3586_v4  ;;  %3756 = vmatprep.subr.bf16.mxu1 %v3684_v14  ;;  %v3635_v58 = vmul.f32 %v3391_v0, %v8140_v62  ;;  %3718 = vmatpush1.bf16.msra.mxu0 %v3673_v46  ;;  %v9431_v14 = vld [vmem:[#allocation68_spill] sm:$0xff]  ;;  %v9432_v62 = vld [vmem:[#allocation67_spill] sm:$0xff]  ;;  %v9437_v39 = vmov 0  }
 0x4eb   :  { %v3666_v27 = vadd.f32 %v9427_v29, %v3634_v35  ;;  %v3603_v34 = vadd.f32 %v9428_v7, %v3587_v42  ;;  %v9430_v16 = vsub.f32 %v8158_v30, %v9429_v41  ;;  %3793 = vmatprep.subr.bf16.mxu0 %v3690_v9  ;;  %v9433_v5 = vsub.f32 %v8158_v30, %v9432_v62  ;;  %v9434_v4 = vld [vmem:[#allocation59_spill] sm:$0xff]  ;;  %v9439_v0 = vld [vmem:[#allocation44_spill] sm:$0xff]  ;;  %v9442_v7 = vld [vmem:[#allocation45_spill] sm:$0xff] }
 0x4ec   :  { %v3651_v12 = vadd.f32 %v9431_v14, %v3635_v58  ;;  %v9436_v20 = vpack.c.bf16 %v9434_v4, %v9435_v63  ;;  %v9440_v31 = vsub.f32 %v9403_v37, %v9439_v0  ;;  %v9451_v4 = vld [vmem:[#allocation49_spill] sm:$0xff] }
 0x4ed   :  { %v3619_v60 = vadd.f32 %v9430_v16, %v3587_v42  ;;  %v3667_v49 = vadd.f32 %v9433_v5, %v3635_v58  ;;  %v3680_v1 = vpack.c.bf16 %v3603_v34, %v3602_v45  ;;  %5004 = vmatmul.mubr.msk.bf16.vlgmr.msra.gmra.mrb[72].mxu0 %vm3707_vm9, %v8845_v38  ;;  %v3395_v35 = vpop.f32.mrb[100].mxu1  ;;  %v9441_v58 = vld [vmem:[#allocation47_spill] sm:$0xff]  ;;  %v9445_v16 = vld [vmem:[#allocation65_spill] sm:$0xff]  ;;  %v9452_v63 = vsub.f32 %v9416_v10, %v9451_v4 }
 0x4ee   :  { %3794 = vmatpush1.bf16.msra.mxu0 %v9436_v20  ;;  %v3692_v57 = vpack.c.bf16 %v3651_v12, %v3650_v51  ;;  %3825 = vmatprep.mubr.bf16.mxu0 %v9437_v39  ;;  %v3588_v26 = vmul.f32 %v3395_v35, %v8179_v32  ;;  %v3397_v30 = vpop.f32.mrb[101].mxu1  ;;  %v9448_v12 = vld [vmem:[#allocation48_spill] sm:$0xff] }
 0x4ef   :  { %v3696_v46 = vpack.c.bf16 %v3619_v60, %v8831_v24  ;;  %v3700_v9 = vpack.c.bf16 %v3667_v49, %v3666_v27  ;;  %3795 = vmatprep.subr.bf16.mxu0 %v3691_v23  ;;  %3757 = vmatpush1.bf16.msra.mxu1 %v3680_v1  ;;  %v3636_v45 = vmul.f32 %v3397_v30, %v8179_v32  ;;  %v3399_v47 = vpop.f32.mrb[102].mxu1  ;;  %v9438_v24 = vld [vmem:[#allocation46_spill] sm:$0xff]  ;;  %v9444_v32 = vld [vmem:[#allocation69_spill] sm:$0xff]  ;;  %v9450_v49 = vld [vmem:[#allocation51_spill] sm:$0xff] }
 0x4f0   :  { %3758 = vmatprep.subr.bf16.mxu1 %v3685_v48  ;;  %v3604_v42 = vadd.f32 %v9438_v24, %v3588_v26  ;;  %v3620_v59 = vadd.f32 %v9440_v31, %v3588_v26  ;;  %v3589_v51 = vmul.f32 %v3399_v47, %v8215_v33  ;;  %v3401_v29 = vpop.f32.mrb[103].mxu1  ;;  %v9443_v23 = vsub.f32 %v9403_v37, %v9442_v7  ;;  %v9447_v60 = vld [vmem:[#allocation50_spill] sm:$0xff] }
 0x4f1   :  { %v3652_v27 = vadd.f32 %v9441_v58, %v3636_v45  ;;  %v3637_v41 = vmul.f32 %v3401_v29, %v8215_v33  ;;  %v9446_v48 = vpack.c.bf16 %v9444_v32, %v9445_v16  ;;  %v9449_v62 = vsub.f32 %v9416_v10, %v9448_v12  ;;  %v9462_v24 = vld [vmem:[#allocation30_spill] sm:$0xff]  ;;  %v9464_v32 = vld [vmem:[#allocation39_spill] sm:$0xff] }
 0x4f2   :  { %v3668_v34 = vadd.f32 %v9443_v23, %v3636_v45  ;;  %v3605_v14 = vadd.f32 %v9447_v60, %v3589_v51  ;;  %v9453_v33 = vpack.c.bf16 %v8642_v28, %v8627_v8  ;;  %v9454_v8 = vmov 0.0   ;;  %v9455_v28 = vld [vmem:[#allocation71_spill] sm:$0xff] }
 0x4f3   :  { %3796 = vmatpush1.bf16.msra.mxu0 %v9446_v48  ;;  %v3621_v5 = vadd.f32 %v9449_v62, %v3589_v51  ;;  %v3653_v1 = vadd.f32 %v9450_v49, %v3637_v41  ;;  %v3669_v37 = vadd.f32 %v9452_v63, %v3637_v41  ;;  %v9456_v13 = vpack.c.bf16 %v8638_v44, %v9455_v28  ;;  %v5894_v44 = vld [vmem:[#allocation11] sm:$0xff]   ;;  %v9465_v60 = vld [vmem:[#allocation31_spill] sm:$0xff] }
 0x4f4   :  { %3797 = vmatprep.subr.bf16.mxu0 %v3692_v57  ;;  %v3681_v20 = vpack.c.bf16 %v3605_v14, %v3604_v42 }
 0x4f5   :  { %v3697_v35 = vpack.c.bf16 %v3621_v5, %v3620_v59  ;;  %v3693_v26 = vpack.c.bf16 %v3653_v1, %v3652_v27  ;;  %v3701_v30 = vpack.c.bf16 %v3669_v37, %v3668_v34  ;;  %v9463_v59 = vld [vmem:[#allocation38_spill] sm:$0xff] }
 0x4f6   :  { %3759 = vmatpush1.bf16.msra.mxu1 %v3681_v20 }
 0x4f7   :  { %3798 = vmatpush1.bf16.msra.mxu0 %v9453_v33  ;;  %3834 = vmatprep.subr.bf16.mxu1 %v3698_v6  ;;  %v9457_v6 = vld [vmem:[#allocation29_spill] sm:$0xff] }
 0x4f8   :  { %3799 = vmatprep.subr.bf16.mxu0 %v3693_v26 }
 0x4f9   :  { %5005 = vmatmul.mubr.msk.bf16.vlgmr.msra.gmra.mrb[104].mxu1 %vm3707_vm9, %v8845_v38 }
 0x4fa   :  { %3835 = vmatpush1.bf16.msra.mxu1 %v3694_v54  ;;  %3866 = vmatprep.mubr.bf16.mxu1 %v9437_v39  ;;  %v8961_v54 = vld [vmem:[#allocation11 + $0xb0] sm:$0xff]   ;;  %v9461_v39 = vld [vmem:[#allocation37_spill] sm:$0xff] }
 0x4fb   :  { %3800 = vmatpush1.bf16.msra.mxu0 %v3689_v15  ;;  %3836 = vmatprep.subr.bf16.mxu1 %v3699_v52  ;;  %v5900_v15 = vld [vmem:[#allocation11 + $0x18] sm:$0xff]  }
 0x4fc   :  { %5496 = vmatprep.subr.bf16.mxu0 %v9454_v8 }
 0x4fe   :  { %5006 = vmatmul.mubr.msk.bf16.vlgmr.msra.gmra.mrb[76].mxu0 %vm3707_vm9, %v8845_v38  ;;  %3837 = vmatpush1.bf16.msra.mxu1 %v3695_v53  ;;  %v9459_v53 = vld [vmem:[#allocation36_spill] sm:$0xff] }
 0x4ff   :  { %5497 = vmatpush3.bf16.msra.mxu0 %v9456_v13  ;;  %5504 = vmatprep.mubr.msk.bf16.mxu0 %vm6353_vm11, %v9454_v8 }
 0x500   :  { %5498 = vmatprep.subr.bf16.mxu0 %v9454_v8  ;;  %3838 = vmatprep.subr.bf16.mxu1 %v3700_v9 }
 0x502   :  { %3839 = vmatpush1.bf16.msra.mxu1 %v3696_v46 }
 0x503   :  { %5499 = vmatpush3.bf16.msra.mxu0 %v3703_v50  ;;  %3840 = vmatprep.subr.bf16.mxu1 %v3701_v30  ;;  %v8941_v50 = vld [vmem:[#allocation11 + $0x90] sm:$0xff]  }
 0x504   :  { %5500 = vmatprep.subr.bf16.mxu0 %v9454_v8 }
 0x506   :  { %3841 = vmatpush1.bf16.msra.mxu1 %v3697_v35 }
 0x507   :  { %5501 = vmatpush3.bf16.msra.mxu0 %v3704_v2  ;;  %5508 = vmatprep.subr.bf16.mxu1 %v9454_v8  ;;  %v5904_v2 = vld [vmem:[#allocation11 + $0x28] sm:$0xff]  }
 0x508   :  { %5502 = vmatprep.subr.bf16.mxu0 %v9454_v8 }
 0x509   :  { %5007 = vmatmul.mubr.msk.bf16.vlgmr.msra.gmra.mrb[108].mxu1 %vm3707_vm9, %v8845_v38 }
 0x50a   :  { %5524 = vmatprep.mubr.msk.bf16.mxu1 %vm6353_vm11, %v9454_v8  ;;  %5509 = vmatpush3.bf16.msra.mxu1 %v5894_v44 }
 0x50b   :  { %5503 = vmatpush3.bf16.msra.mxu0 %v3705_v22  ;;  %5510 = vmatprep.subr.bf16.mxu1 %v9454_v8 }
 0x50c   :  { %5528 = vmatprep.subr.bf16.mxu0 %v9454_v8 }
 0x50e   :  { %5505 = vmatmul.mubr.msk.bf16.vlgmr.msra.gmra.mrb[80].mxu0 %vm3707_vm9, %v8845_v38  ;;  %5511 = vmatpush3.bf16.msra.mxu1 %v5896_v18  ;;  %v9460_v38 = vld [vmem:[#allocation35_spill] sm:$0xff] }
 0x50f   :  { %5544 = vmatprep.mubr.msk.bf16.mxu0 %vm6353_vm11, %v9454_v8  ;;  %5529 = vmatpush3.bf16.msra.mxu0 %v8933_v19 }
 0x510   :  { %5530 = vmatprep.subr.bf16.mxu0 %v9454_v8  ;;  %5512 = vmatprep.subr.bf16.mxu1 %v9454_v8 }
 0x512   :  { %5513 = vmatpush3.bf16.msra.mxu1 %v5898_v11 }
 0x513   :  { %5531 = vmatpush3.bf16.msra.mxu0 %v8936_v17  ;;  %5514 = vmatprep.subr.bf16.mxu1 %v9454_v8 }
 0x514   :  { %5532 = vmatprep.subr.bf16.mxu0 %v9454_v8 }
 0x516   :  { %5515 = vmatpush3.bf16.msra.mxu1 %v5900_v15 }
 0x517   :  { %5533 = vmatpush3.bf16.msra.mxu0 %v8941_v50  ;;  %5516 = vmatprep.subr.bf16.mxu1 %v9454_v8 }
 0x518   :  { %5534 = vmatprep.subr.bf16.mxu0 %v9454_v8 }
 0x51a   :  { %5517 = vmatpush3.bf16.msra.mxu1 %v5902_v36 }
 0x51b   :  { %5535 = vmatpush3.bf16.msra.mxu0 %v8946_v61  ;;  %5518 = vmatprep.subr.bf16.mxu1 %v9454_v8 }
 0x51c   :  { %5536 = vmatprep.subr.bf16.mxu0 %v9454_v8 }
 0x51e   :  { %5519 = vmatpush3.bf16.msra.mxu1 %v5904_v2 }
 0x51f   :  { %5537 = vmatpush3.bf16.msra.mxu0 %v8951_v25  ;;  %5520 = vmatprep.subr.bf16.mxu1 %v9454_v8 }
 0x520   :  { %5538 = vmatprep.subr.bf16.mxu0 %v9454_v8 }
 0x522   :  { %5521 = vmatpush3.bf16.msra.mxu1 %v5906_v43 }
 0x523   :  { %5539 = vmatpush3.bf16.msra.mxu0 %v8956_v3  ;;  %5522 = vmatprep.subr.bf16.mxu1 %v9454_v8 }
 0x524   :  { %5540 = vmatprep.subr.bf16.mxu0 %v9454_v8 }
 0x526   :  { %5523 = vmatpush3.bf16.msra.mxu1 %v5908_v21 }
 0x527   :  { %5541 = vmatpush3.bf16.msra.mxu0 %v8961_v54  ;;  %5548 = vmatprep.subr.bf16.mxu1 %v9454_v8 }
 0x528   :  { %5542 = vmatprep.subr.bf16.mxu0 %v9454_v8 }
 0x52b   :  { %5543 = vmatpush3.bf16.msra.mxu0 %v8966_v40 }
 0x52c   :  { %5568 = vmatprep.subr.bf16.mxu0 %v9454_v8 }
 0x5c0   :  { %v3745_v55 = vpop.f32.mrb[72].mxu0 }
 0x5c1   :  { %v3915_v22 = vmul.f32 %v3745_v55, %v9457_v6  ;;  %v3925_v10 = vmul.f32 %v3745_v55, %v9458_v56  ;;  %v3936_v52 = vmul.f32 %v3745_v55, %v9459_v53  ;;  %v3948_v46 = vmul.f32 %v3745_v55, %v9460_v38  ;;  %v3747_v57 = vpop.f32.mrb[73].mxu0 }
 0x5c2   :  { %v8978_v9 = vmul.f32 %v3745_v55, %v9461_v39  ;;  %v3917_v45 = vmul.f32 %v3747_v57, %v9460_v38  ;;  %v3926_v47 = vmul.f32 %v3747_v57, %v9457_v6  ;;  %v3928_v42 = vmul.f32 %v3747_v57, %v9462_v24  ;;  %v3749_v0 = vpop.f32.mrb[74].mxu0 }
 0x5c3   :  { %v3916_v31 = vadd.f32 %v3915_v22, %v3915_v22  ;;  %v3939_v51 = vmul.f32 %v3747_v57, %v9463_v59  ;;  %v8985_v29 = vmul.f32 %v3747_v57, %v9461_v39  ;;  %v3750_v58 = vpop.f32.mrb[75].mxu0 }
 0x5c4   :  { %v3927_v27 = vadd.f32 %v3926_v47, %v3925_v10 }
 0x5c5   :  { %v3918_v7 = vadd.f32 %v3917_v45, %v3916_v31 }
 0x5c6   :  { %v3929_v23 = vadd.f32 %v3928_v42, %v3927_v27 }
 0x5cc   :  { %v3786_v34 = vpop.f32.mrb[104].mxu1 }
 0x5cd   :  { %v3921_v41 = vmul.f32 %v3786_v34, %v9461_v39  ;;  %v3932_v16 = vmul.f32 %v3786_v34, %v9464_v32  ;;  %v3937_v48 = vmul.f32 %v3786_v34, %v9457_v6  ;;  %v3943_v14 = vmul.f32 %v3786_v34, %v9465_v60  ;;  %v3788_v12 = vpop.f32.mrb[105].mxu1 }
 0x5ce   :  { %v3967_v62 = vmul.f32 %v3786_v34, %v9460_v38  ;;  %v3919_v5 = vmul.f32 %v3788_v12, %v9458_v56  ;;  %v3947_v49 = vmul.f32 %v3788_v12, %v9457_v6  ;;  %v3952_v1 = vmul.f32 %v3788_v12, %v9462_v24  ;;  %v3790_v4 = vpop.f32.mrb[106].mxu1 }
 0x5cf   :  { %v3938_v63 = vadd.f32 %v3937_v48, %v3936_v52  ;;  %v3966_v37 = vmul.f32 %v3788_v12, %v9459_v53  ;;  %v8997_v20 = vmul.f32 %v3788_v12, %v9464_v32  ;;  %v3791_v33 = vpop.f32.mrb[107].mxu1 }
 0x5d0   :  { %v3920_v26 = vadd.f32 %v3919_v5, %v3918_v7  ;;  %v3949_v30 = vadd.f32 %v3948_v46, %v3947_v49  ;;  %v3958_v28 = vadd.f32 %v3919_v5, %v3917_v45 }
 0x5d1   :  { %v3827_v35 = vpop.f32.mrb[76].mxu0  ;;  %v3968_v18 = vadd.f32 %v3967_v62, %v3966_v37  ;;  %v3940_v55 = vadd.f32 %v3939_v51, %v3938_v63 }
 0x5d2   :  { %v3930_v13 = vmul.f32 %v3827_v35, %v9458_v56  ;;  %v3829_v44 = vpop.f32.mrb[77].mxu0  ;;  %v3950_v11 = vmul.f32 %v3827_v35, %v9460_v38  ;;  %v3959_v15 = vmul.f32 %v3827_v35, %v9462_v24  ;;  %v3969_v36 = vmul.f32 %v3827_v35, %v9463_v59 }
 0x5d3   :  { %v3831_v2 = vpop.f32.mrb[78].mxu0  ;;  %v3993_v21 = vmul.f32 %v3827_v35, %v9464_v32  ;;  %v3941_v22 = vmul.f32 %v3829_v44, %v9458_v56  ;;  %v3954_v45 = vmul.f32 %v3829_v44, %v9461_v39  ;;  %v3962_v42 = vmul.f32 %v3829_v44, %v9464_v32 }
 0x5d4   :  { %v3931_v43 = vadd.f32 %v3930_v13, %v3929_v23  ;;  %v3832_v10 = vpop.f32.mrb[79].mxu0  ;;  %v3951_v52 = vadd.f32 %v3950_v11, %v3949_v30  ;;  %v3960_v46 = vadd.f32 %v3959_v15, %v3958_v28  ;;  %v3970_v57 = vadd.f32 %v3969_v36, %v3968_v18 }
 0x5d5   :  { %v3942_v47 = vadd.f32 %v3941_v22, %v3940_v55  ;;  %v3971_v0 = vmul.f32 %v3829_v44, %v9462_v24  ;;  %v3973_v31 = vmul.f32 %v3829_v44, %v9465_v60  ;;  %v3922_v7 = vadd.f32 %v3921_v41, %v3920_v26 }
 0x5d6   :  { %v3961_v58 = vadd.f32 %v3960_v46, %v3959_v15  ;;  %v3953_v27 = vadd.f32 %v3952_v1, %v3951_v52  ;;  %v3933_v23 = vadd.f32 %v3932_v16, %v3931_v43 }
 0x5d7   :  { %v3972_v51 = vadd.f32 %v3971_v0, %v3970_v57  ;;  %v3944_v34 = vadd.f32 %v3943_v14, %v3942_v47 }
 0x5d8   :  { %v3955_v48 = vadd.f32 %v3954_v45, %v3953_v27  ;;  %v3963_v12 = vadd.f32 %v3962_v42, %v3961_v58 }
 0x5d9   :  { %v3974_v62 = vadd.f32 %v3973_v31, %v3972_v51 }
 0x5dc   :  { %v3868_v5 = vpop.f32.mrb[108].mxu1 }
 0x5dd   :  { %v3923_v49 = vmul.f32 %v3868_v5, %v9459_v53  ;;  %v3956_v4 = vmul.f32 %v3868_v5, %v9463_v59  ;;  %v3977_v63 = vmul.f32 %v3868_v5, %v9457_v6  ;;  %v3986_v37 = vmul.f32 %v3868_v5, %v9465_v60  ;;  %v3870_v35 = vpop.f32.mrb[109].mxu1 }
 0x5de   :  { %v3988_v33 = vmul.f32 %v3868_v5, %v9458_v56  ;;  %v3934_v1 = vmul.f32 %v3870_v35, %v9459_v53  ;;  %v3964_v16 = vmul.f32 %v3870_v35, %v9463_v59  ;;  %v3980_v14 = vmul.f32 %v3870_v35, %v9460_v38  ;;  %v3872_v26 = vpop.f32.mrb[110].mxu1 }
 0x5df   :  { %v9017_v30 = vadd.f32 %v3923_v49, %v3922_v7  ;;  %v9019_v28 = vadd.f32 %v3956_v4, %v3955_v48  ;;  %v3979_v13 = vadd.f32 %v8978_v9, %v3977_v63  ;;  %v3999_v44 = vadd.f32 %v3923_v49, %v3921_v41  ;;  %v3873_v18 = vpop.f32.mrb[111].mxu1 }
 0x5e0   :  { %v3990_v11 = vadd.f32 %v8985_v29, %v3988_v33  ;;  %v9023_v15 = vadd.f32 %v3934_v1, %v3933_v23  ;;  %v9025_v56 = vadd.f32 %v3964_v16, %v3963_v12  ;;  %v3991_v36 = vmul.f32 %v3870_v35, %v9462_v24 }
 0x5e1   :  { %v3909_v6 = vpop.f32.mrb[80].mxu0  ;;  %v4005_v38 = vmul.f32 %v9017_v30, %v9017_v30  ;;  %v3981_v43 = vadd.f32 %v3980_v14, %v3979_v13  ;;  %v3997_v55 = vmul.f32 %v3870_v35, %v9465_v60  ;;  %v4000_v41 = vadd.f32 %v3999_v44, %v3964_v16 }
 0x5e2   :  { %v5506_v2 = vpop.f32.mrb[81].mxu0  ;;  %v3992_v9 = vadd.f32 %v3991_v36, %v3990_v11  ;;  %v4006_v10 = vmul.f32 %v9023_v15, %v9023_v15  ;;  %v4086_v52 = vadd.f32 %v9025_v56, %v9017_v30  ;;  %v3945_v46 = vmul.f32 %v3909_v6, %v9459_v53 }
 0x5e3   :  { %v3912_v22 = vpop.f32.mrb[82].mxu0  ;;  %v3975_v24 = vmul.f32 %v3909_v6, %v9463_v59  ;;  %v3983_v57 = vadd.f32 %v8997_v20, %v3981_v43  ;;  %v3984_v47 = vmul.f32 %v3909_v6, %v9461_v39  ;;  %v3995_v31 = vmul.f32 %v3909_v6, %v9464_v32 }
 0x5e4   :  { %v5507_v29 = vpop.f32.mrb[83].mxu0  ;;  %v4007_v45 = vadd.f32 %v4006_v10, %v4005_v38  ;;  %v3994_v0 = vadd.f32 %v3993_v21, %v3992_v9  ;;  %v3946_v58 = vadd.f32 %v3945_v46, %v3944_v34  ;;  %v4001_v7 = vadd.f32 %v4000_v41, %v3962_v42 }
 0x5e5   :  { %v3976_v27 = vadd.f32 %v3975_v24, %v3974_v62  ;;  %v4002_v23 = vmul.f32 %v3909_v6, %v9465_v60  ;;  %v3985_v51 = vadd.f32 %v3984_v47, %v3983_v57  ;;  %v4356_v53 = vsub.f32 %v9023_v15, %v9019_v28 }
 0x5e6   :  { %v3996_v48 = vadd.f32 %v3995_v31, %v3994_v0  ;;  %v4536_v59 = vadd.f32 %v9019_v28, %v9023_v15  ;;  %v4008_v12 = vmul.f32 %v3946_v58, %v3946_v58  ;;  %v4010_v32 = vmul.f32 %v9019_v28, %v9019_v28 }
 0x5e7   :  { %v4003_v20 = vadd.f32 %v4002_v23, %v4001_v7  ;;  %v3987_v5 = vadd.f32 %v3986_v37, %v3985_v51  ;;  %v4012_v60 = vmul.f32 %v9025_v56, %v9025_v56  ;;  %v4014_v1 = vmul.f32 %v3976_v27, %v3976_v27 }
 0x5e8   :  { %v3998_v39 = vadd.f32 %v3997_v55, %v3996_v48  ;;  %v4009_v34 = vadd.f32 %v4008_v12, %v4007_v45  ;;  %v4537_v10 = vmul.f32 0.5, %v4536_v59  ;;  %v5910_v48 = vld [vmem:[#allocation11 + $0x40] sm:$0xff]   ;;  %v5912_v12 = vld [vmem:[#allocation11 + $0x50] sm:$0xff]  }
 0x5e9   :  { %v4004_v21 = vadd.f32 %v4003_v20, %v4002_v23  ;;  %v4448_v42 = vsub.f32 %v3946_v58, %v3987_v5  ;;  %v4580_v63 = vadd.f32 %v3987_v5, %v3946_v58  ;;  %v4016_v14 = vmul.f32 %v3987_v5, %v3987_v5  ;;  %v5911_v20 = vld [vmem:[#allocation11 + $0x48] sm:$0xff]   ;;  %v5913_v5 = vld [vmem:[#allocation11 + $0x58] sm:$0xff]  }
 0x5ea   :  { %v4492_v62 = vsub.f32 %v3976_v27, %v3998_v39  ;;  %v4011_v49 = vadd.f32 %v4010_v32, %v4009_v34  ;;  %v4624_v35 = vadd.f32 %v3998_v39, %v3976_v27  ;;  %v4018_v6 = vmul.f32 %v3998_v39, %v3998_v39  ;;  %v5914_v39 = vld [vmem:[#allocation11 + $0x60] sm:$0xff]   ;;  %v5915_v32 = vld [vmem:[#allocation11 + $0x68] sm:$0xff]   ;;  %v5917_v34 = vld [vmem:[#allocation11 + $0x78] sm:$0xff]  }
 0x5eb   :  { %v4087_v4 = vadd.f32 %v4086_v52, %v4004_v21  ;;  %v4020_v11 = vmul.f32 %v4004_v21, %v4004_v21  ;;  %v4449_v41 = vmul.f32 0.5, %v4448_v42  ;;  %v4581_v27 = vmul.f32 0.5, %v4580_v63 }
 0x5ec   :  { %v4013_v33 = vadd.f32 %v4012_v60, %v4011_v49  ;;  %v4625_v7 = vmul.f32 0.5, %v4624_v35 }
 0x5ed   :  { %v4088_v16 = vmul.f32 0.33333334, %v4087_v4 }
 0x5ee   :  { %v4015_v37 = vadd.f32 %v4014_v1, %v4013_v33 }
 0x5ef   :  { %v4179_v26 = vsub.f32 %v9017_v30, %v4088_v16  ;;  %v4270_v28 = vsub.f32 %v9025_v56, %v4088_v16  ;;  %v4313_v13 = vsub.f32 %v4004_v21, %v4088_v16  ;;  %v4357_v30 = vmul.f32 0.5, %v4356_v53  ;;  %v5916_v21 = vld [vmem:[#allocation11 + $0x70] sm:$0xff]  }
 0x5f0   :  { %v4017_v44 = vadd.f32 %v4016_v14, %v4015_v37  ;;  %v4493_v56 = vmul.f32 0.5, %v4492_v62 }
 0x5f2   :  { %v4019_v18 = vadd.f32 %v4018_v6, %v4017_v44 }
 0x5f4   :  { %v4021_v15 = vadd.f32 %v4020_v11, %v4019_v18 }
 0x5f6   :  { %6146 = vrsqrt.f32 %v4021_v15  ;;  %vm4024_vm10 = vcmp.eq.f32.partialorder %v4021_v15, inf  ;;  %v4027_v38 = vand.u32 2147483648, %v4021_v15  ;;  %vm4026_vm12 = vcmp.eq.f32.partialorder %v4021_v15, 0.0 }
 0x600   :  { %v6147_v36 = vpop.eup %6146 }
 0x601   :  { %v4023_v2 = vmul.f32 %v6147_v36, %v4021_v15 }
 0x603   :  { %v4025_v43 = vsel %vm4024_vm10, %v4021_v15, %v4023_v2 }
 0x604   :  { %v4028_v55 = vsel %vm4026_vm12, %v4027_v38, %v4025_v43 }
 0x605   :  { %v4029_v22 = vadd.f32 1.0, %v4028_v55  ;;  %v4081_v55 = vld [vmem:[%s9247_s14] sm:$0x1] }
 0x607   :  { %6148 = vrcp.f32 %v4029_v22  ;;  %v5009_v22 = vld [vmem:[%s9247_s14 + $0x1] sm:$0x1] }
 0x611   :  { %v6149_v9 = vpop.eup %6148 }
 0x612   :  { %v4089_v29 = vmul.f32 %v6149_v9, %v4088_v16  ;;  %v4180_v52 = vmul.f32 %v6149_v9, %v4179_v26  ;;  %v4271_v46 = vmul.f32 %v6149_v9, %v4270_v28  ;;  %v4314_v24 = vmul.f32 %v6149_v9, %v4313_v13 }
 0x613   :  { %v9051_v57 = vmul.f32 %v6149_v9, %v4357_v30  ;;  %v9053_v45 = vmul.f32 %v6149_v9, %v4449_v41  ;;  %v9055_v47 = vmul.f32 %v6149_v9, %v4493_v56  ;;  %v9057_v0 = vmul.f32 %v6149_v9, %v4537_v10  ;;  %v5010_v30 = vld [vmem:[%s9247_s14 + $0x2] sm:$0x1]  ;;  %v9466_v56 = vld [vmem:[#allocation19_spill] sm:$0xff]  ;;  %s6354_s14 = smov [#allocation13]  }
 0x614   :  { %v4090_v31 = vpack.c.bf16 %v4089_v29, %v4089_v29  ;;  %v4181_v58 = vpack.c.bf16 %v4180_v52, %v4180_v52  ;;  %v9059_v23 = vmul.f32 %v6149_v9, %v4581_v27  ;;  %v9061_v51 = vmul.f32 %v6149_v9, %v4625_v7  ;;  %s4772_s26 = sshll.u32 %s6354_s14, 4  ;;  %s4773_s26 = int_to_ptr.vmem [resolvable:$true] %s4772_s26 }
 0x615   :  { %v4272_v53 = vpack.c.bf16 %v4271_v46, %v4271_v46  ;;  %v4315_v59 = vpack.c.bf16 %v4314_v24, %v4314_v24  ;;  %v4359_v42 = vpack.c.bf16 %v9051_v57, %v9051_v57  ;;  %v4451_v62 = vpack.c.bf16 %v9053_v45, %v9053_v45  ;;  %s6301_s27 = scalar_lea.vmem %s4773_s26, 1152  ;;  %p6306_p7 = scmp.lt.s32.totalorder %s4773_s26, %s4773_s26 }
 0x616   :  { %5525 = vmatmul.mubr.bf16.vlgmr.msra.gmra.mrb[112].mxu1 %v4090_v31  ;;  %5545 = vmatmul.mubr.bf16.vlgmr.msra.gmra.mrb[84].mxu0 %v4181_v58  ;;  %v4495_v60 = vpack.c.bf16 %v9055_v47, %v9055_v47  ;;  %v4539_v49 = vpack.c.bf16 %v9057_v0, %v9057_v0  ;;  %v4668_v9 = vadd.f32 %v5009_v22, %v4081_v55  ;;  %p6302_p6 = scmp.ne.s32.totalorder %s4773_s26, %s6301_s27  ;;  %p6307_p8 = scmp.lt.s32.totalorder %s6301_s27, %s6301_s27 }
 0x617   :  { %5549 = vmatpush3.bf16.msra.mxu1 %v8933_v19  ;;  %5569 = vmatpush3.bf16.msra.mxu0 %v8933_v19 }
 0x618   :  { %5550 = vmatprep.subr.bf16.mxu1 %v9454_v8  ;;  %5570 = vmatprep.subr.bf16.mxu0 %v9454_v8  ;;  %v4669_v41 = vadd.f32 %v5010_v30, %v4668_v9  ;;  %p6308_p9 = por %p6307_p8, %p6306_p7 }
 0x619   :  { %5564 = vmatprep.mubr.msk.bf16.mxu1 %vm6353_vm11, %v9454_v8  ;;  %5584 = vmatprep.mubr.msk.bf16.mxu0 %vm6353_vm11, %v9454_v8 }
 0x61a   :  { %v4675_v10 = vrot.slane %v4669_v41, %v9466_v56  ;;  %p6309_p10 = pnand %p6308_p9, %p6302_p6 }
 0x61b   :  { %5551 = vmatpush3.bf16.msra.mxu1 %v8936_v17  ;;  %5571 = vmatpush3.bf16.msra.mxu0 %v8936_v17 }
 0x61c   :  { %5552 = vmatprep.subr.bf16.mxu1 %v9454_v8  ;;  %5572 = vmatprep.subr.bf16.mxu0 %v9454_v8 }
 0x61f   :  { %5553 = vmatpush3.bf16.msra.mxu1 %v8941_v50  ;;  %5573 = vmatpush3.bf16.msra.mxu0 %v8941_v50 }
 0x620   :  { %5554 = vmatprep.subr.bf16.mxu1 %v9454_v8  ;;  %5574 = vmatprep.subr.bf16.mxu0 %v9454_v8 }
 0x623   :  { %5555 = vmatpush3.bf16.msra.mxu1 %v8946_v61  ;;  %5575 = vmatpush3.bf16.msra.mxu0 %v8946_v61 }
 0x624   :  { %5556 = vmatprep.subr.bf16.mxu1 %v9454_v8  ;;  %5576 = vmatprep.subr.bf16.mxu0 %v9454_v8 }
 0x627   :  { %5557 = vmatpush3.bf16.msra.mxu1 %v8951_v25  ;;  %5577 = vmatpush3.bf16.msra.mxu0 %v8951_v25 }
 0x628   :  { %5558 = vmatprep.subr.bf16.mxu1 %v9454_v8  ;;  %5578 = vmatprep.subr.bf16.mxu0 %v9454_v8 }
 0x62b   :  { %5559 = vmatpush3.bf16.msra.mxu1 %v8956_v3  ;;  %5579 = vmatpush3.bf16.msra.mxu0 %v8956_v3 }
 0x62c   :  { %5560 = vmatprep.subr.bf16.mxu1 %v9454_v8  ;;  %5580 = vmatprep.subr.bf16.mxu0 %v9454_v8 }
 0x62f   :  { %5561 = vmatpush3.bf16.msra.mxu1 %v8961_v54  ;;  %5581 = vmatpush3.bf16.msra.mxu0 %v8961_v54 }
 0x630   :  { %5562 = vmatprep.subr.bf16.mxu1 %v9454_v8  ;;  %5582 = vmatprep.subr.bf16.mxu0 %v9454_v8 }
 0x633   :  { %5563 = vmatpush3.bf16.msra.mxu1 %v8966_v40  ;;  %5583 = vmatpush3.bf16.msra.mxu0 %v8966_v40 }
 0x634   :  { %5588 = vmatprep.subr.bf16.mxu1 %v9454_v8  ;;  %5608 = vmatprep.subr.bf16.mxu0 %v9454_v8 }
 0x636   :  { %5565 = vmatmul.mubr.bf16.vlgmr.msra.gmra.mrb[116].mxu1 %v4272_v53  ;;  %5585 = vmatmul.mubr.bf16.vlgmr.msra.gmra.mrb[88].mxu0 %v4315_v59 }
 0x637   :  { %5589 = vmatpush3.bf16.msra.mxu1 %v5910_v48  ;;  %5609 = vmatpush3.bf16.msra.mxu0 %v5910_v48 }
 0x638   :  { %5590 = vmatprep.subr.bf16.mxu1 %v9454_v8  ;;  %5610 = vmatprep.subr.bf16.mxu0 %v9454_v8 }
 0x639   :  { %5604 = vmatprep.mubr.msk.bf16.mxu1 %vm6353_vm11, %v9454_v8  ;;  %5624 = vmatprep.mubr.msk.bf16.mxu0 %vm6353_vm11, %v9454_v8 }
 0x63b   :  { %5591 = vmatpush3.bf16.msra.mxu1 %v5911_v20  ;;  %5611 = vmatpush3.bf16.msra.mxu0 %v5911_v20 }
 0x63c   :  { %5592 = vmatprep.subr.bf16.mxu1 %v9454_v8  ;;  %5612 = vmatprep.subr.bf16.mxu0 %v9454_v8 }
 0x63f   :  { %5593 = vmatpush3.bf16.msra.mxu1 %v5912_v12  ;;  %5613 = vmatpush3.bf16.msra.mxu0 %v5912_v12 }
 0x640   :  { %5594 = vmatprep.subr.bf16.mxu1 %v9454_v8  ;;  %5614 = vmatprep.subr.bf16.mxu0 %v9454_v8 }
 0x643   :  { %5595 = vmatpush3.bf16.msra.mxu1 %v5913_v5  ;;  %5615 = vmatpush3.bf16.msra.mxu0 %v5913_v5 }
 0x644   :  { %5596 = vmatprep.subr.bf16.mxu1 %v9454_v8  ;;  %5616 = vmatprep.subr.bf16.mxu0 %v9454_v8 }
 0x647   :  { %5597 = vmatpush3.bf16.msra.mxu1 %v5914_v39  ;;  %5617 = vmatpush3.bf16.msra.mxu0 %v5914_v39 }
 0x648   :  { %5598 = vmatprep.subr.bf16.mxu1 %v9454_v8  ;;  %5618 = vmatprep.subr.bf16.mxu0 %v9454_v8 }
 0x64b   :  { %5599 = vmatpush3.bf16.msra.mxu1 %v5915_v32  ;;  %5619 = vmatpush3.bf16.msra.mxu0 %v5915_v32 }
 0x64c   :  { %5600 = vmatprep.subr.bf16.mxu1 %v9454_v8  ;;  %5620 = vmatprep.subr.bf16.mxu0 %v9454_v8 }
 0x64f   :  { %5601 = vmatpush3.bf16.msra.mxu1 %v5916_v21  ;;  %5621 = vmatpush3.bf16.msra.mxu0 %v5916_v21 }
 0x650   :  { %5602 = vmatprep.subr.bf16.mxu1 %v9454_v8  ;;  %5622 = vmatprep.subr.bf16.mxu0 %v9454_v8 }
 0x653   :  { %5603 = vmatpush3.bf16.msra.mxu1 %v5917_v34  ;;  %5623 = vmatpush3.bf16.msra.mxu0 %v5917_v34 }
 0x654   :  { %5628 = vmatprep.subr.bf16.mxu1 %v9454_v8  ;;  %5648 = vmatprep.subr.bf16.mxu0 %v9454_v8 }
 0x656   :  { %5605 = vmatmul.mubr.bf16.vlgmr.msra.gmra.mrb[120].mxu1 %v4359_v42  ;;  %5625 = vmatmul.mubr.bf16.vlgmr.msra.gmra.mrb[92].mxu0 %v4451_v62 }
 0x657   :  { %5629 = vmatpush3.bf16.msra.mxu1 %v5910_v48  ;;  %5649 = vmatpush3.bf16.msra.mxu0 %v8933_v19 }
 0x658   :  { %5630 = vmatprep.subr.bf16.mxu1 %v9454_v8  ;;  %5650 = vmatprep.subr.bf16.mxu0 %v9454_v8 }
 0x659   :  { %5644 = vmatprep.mubr.msk.bf16.mxu1 %vm6353_vm11, %v9454_v8  ;;  %5664 = vmatprep.mubr.msk.bf16.mxu0 %vm6353_vm11, %v9454_v8 }
 0x65b   :  { %5631 = vmatpush3.bf16.msra.mxu1 %v5911_v20  ;;  %5651 = vmatpush3.bf16.msra.mxu0 %v8936_v17 }
 0x65c   :  { %5632 = vmatprep.subr.bf16.mxu1 %v9454_v8  ;;  %5652 = vmatprep.subr.bf16.mxu0 %v9454_v8 }
 0x65f   :  { %5633 = vmatpush3.bf16.msra.mxu1 %v5912_v12  ;;  %5653 = vmatpush3.bf16.msra.mxu0 %v8941_v50 }
 0x660   :  { %5634 = vmatprep.subr.bf16.mxu1 %v9454_v8  ;;  %5654 = vmatprep.subr.bf16.mxu0 %v9454_v8 }
 0x663   :  { %5635 = vmatpush3.bf16.msra.mxu1 %v5913_v5  ;;  %5655 = vmatpush3.bf16.msra.mxu0 %v8946_v61 }
 0x664   :  { %5636 = vmatprep.subr.bf16.mxu1 %v9454_v8  ;;  %5656 = vmatprep.subr.bf16.mxu0 %v9454_v8 }
 0x667   :  { %5637 = vmatpush3.bf16.msra.mxu1 %v5914_v39  ;;  %5657 = vmatpush3.bf16.msra.mxu0 %v8951_v25 }
 0x668   :  { %5638 = vmatprep.subr.bf16.mxu1 %v9454_v8  ;;  %5658 = vmatprep.subr.bf16.mxu0 %v9454_v8 }
 0x66b   :  { %5639 = vmatpush3.bf16.msra.mxu1 %v5915_v32  ;;  %5659 = vmatpush3.bf16.msra.mxu0 %v8956_v3 }
 0x66c   :  { %5640 = vmatprep.subr.bf16.mxu1 %v9454_v8  ;;  %5660 = vmatprep.subr.bf16.mxu0 %v9454_v8 }
 0x66f   :  { %5641 = vmatpush3.bf16.msra.mxu1 %v5916_v21  ;;  %5661 = vmatpush3.bf16.msra.mxu0 %v8961_v54 }
 0x670   :  { %5642 = vmatprep.subr.bf16.mxu1 %v9454_v8  ;;  %5662 = vmatprep.subr.bf16.mxu0 %v9454_v8 }
 0x673   :  { %5643 = vmatpush3.bf16.msra.mxu1 %v5917_v34  ;;  %5663 = vmatpush3.bf16.msra.mxu0 %v8966_v40 }
 0x674   :  { %5668 = vmatprep.subr.bf16.mxu1 %v9454_v8  ;;  %5688 = vmatprep.subr.bf16.mxu0 %v9454_v8 }
 0x676   :  { %5645 = vmatmul.mubr.bf16.vlgmr.msra.gmra.mrb[124].mxu1 %v4495_v60  ;;  %5665 = vmatmul.mubr.bf16.vlgmr.msra.gmra.mrb[96].mxu0 %v4539_v49 }
 0x677   :  { %5669 = vmatpush3.bf16.msra.mxu1 %v8933_v19  ;;  %5689 = vmatpush3.bf16.msra.mxu0 %v8933_v19  ;;  %v4583_v19 = vpack.c.bf16 %v9059_v23, %v9059_v23 }
 0x678   :  { %5670 = vmatprep.subr.bf16.mxu1 %v9454_v8  ;;  %5690 = vmatprep.subr.bf16.mxu0 %v9454_v8 }
 0x679   :  { %5684 = vmatprep.mubr.msk.bf16.mxu1 %vm6353_vm11, %v9454_v8  ;;  %5704 = vmatprep.mubr.msk.bf16.mxu0 %vm6353_vm11, %v9454_v8 }
 0x67b   :  { %5671 = vmatpush3.bf16.msra.mxu1 %v8936_v17  ;;  %5691 = vmatpush3.bf16.msra.mxu0 %v8936_v17  ;;  %v4627_v17 = vpack.c.bf16 %v9061_v51, %v9061_v51 }
 0x67c   :  { %5672 = vmatprep.subr.bf16.mxu1 %v9454_v8  ;;  %5692 = vmatprep.subr.bf16.mxu0 %v9454_v8 }
 0x67f   :  { %5673 = vmatpush3.bf16.msra.mxu1 %v8941_v50  ;;  %5693 = vmatpush3.bf16.msra.mxu0 %v8941_v50 }
 0x680   :  { %5674 = vmatprep.subr.bf16.mxu1 %v9454_v8  ;;  %5694 = vmatprep.subr.bf16.mxu0 %v9454_v8 }
 0x683   :  { %5675 = vmatpush3.bf16.msra.mxu1 %v8946_v61  ;;  %5695 = vmatpush3.bf16.msra.mxu0 %v8946_v61 }
 0x684   :  { %5676 = vmatprep.subr.bf16.mxu1 %v9454_v8  ;;  %5696 = vmatprep.subr.bf16.mxu0 %v9454_v8 }
 0x687   :  { %5677 = vmatpush3.bf16.msra.mxu1 %v8951_v25  ;;  %5697 = vmatpush3.bf16.msra.mxu0 %v8951_v25 }
 0x688   :  { %5678 = vmatprep.subr.bf16.mxu1 %v9454_v8  ;;  %5698 = vmatprep.subr.bf16.mxu0 %v9454_v8 }
 0x68b   :  { %5679 = vmatpush3.bf16.msra.mxu1 %v8956_v3  ;;  %5699 = vmatpush3.bf16.msra.mxu0 %v8956_v3 }
 0x68c   :  { %5680 = vmatprep.subr.bf16.mxu1 %v9454_v8  ;;  %5700 = vmatprep.subr.bf16.mxu0 %v9454_v8 }
 0x68f   :  { %5681 = vmatpush3.bf16.msra.mxu1 %v8961_v54  ;;  %5701 = vmatpush3.bf16.msra.mxu0 %v8961_v54 }
 0x690   :  { %5682 = vmatprep.subr.bf16.mxu1 %v9454_v8  ;;  %5702 = vmatprep.subr.bf16.mxu0 %v9454_v8 }
 0x693   :  { %5683 = vmatpush3.bf16.msra.mxu1 %v8966_v40  ;;  %5703 = vmatpush3.bf16.msra.mxu0 %v8966_v40 }
 0x696   :  { %5685 = vmatmul.mubr.bf16.vlgmr.msra.gmra.mrb[128].mxu1 %v4583_v19  ;;  %5705 = vmatmul.mubr.bf16.vlgmr.msra.gmra.mrb[100].mxu0 %v4627_v17 }
 0x6e9   :  { %v4173_v50 = vpop.f32.mrb[112].mxu1  ;;  %v4264_v61 = vpop.f32.mrb[84].mxu0 }
 0x6ea   :  { %v4670_v25 = vadd.f32 %v4264_v61, %v4173_v50  ;;  %v5526_v3 = vpop.f32.mrb[113].mxu1  ;;  %v5546_v54 = vpop.f32.mrb[85].mxu0 }
 0x6eb   :  { %v4176_v4 = vpop.f32.mrb[114].mxu1  ;;  %v4267_v63 = vpop.f32.mrb[86].mxu0 }
 0x6ec   :  { %v5527_v8 = vpop.f32.mrb[115].mxu1  ;;  %v5547_v35 = vpop.f32.mrb[87].mxu0  ;;  %v4677_v52 = vadd.f32 %v4675_v10, %v4670_v25 }
 0x6ee   :  { %v4697_v53 = vmul.f32 %v4677_v52, %v4677_v52 }
 0x709   :  { %v4307_v33 = vpop.f32.mrb[116].mxu1  ;;  %v4350_v1 = vpop.f32.mrb[88].mxu0 }
 0x70a   :  { %v4678_v40 = vadd.f32 %v4307_v33, %v4173_v50  ;;  %v4680_v16 = vadd.f32 %v4350_v1, %v4173_v50  ;;  %v5566_v14 = vpop.f32.mrb[117].mxu1  ;;  %v5586_v37 = vpop.f32.mrb[89].mxu0 }
 0x70b   :  { %v4310_v26 = vpop.f32.mrb[118].mxu1  ;;  %v4353_v28 = vpop.f32.mrb[90].mxu0 }
 0x70c   :  { %v5567_v13 = vpop.f32.mrb[119].mxu1  ;;  %v5587_v44 = vpop.f32.mrb[91].mxu0  ;;  %v9203_v57 = vadd.f32 %v4678_v40, %v4675_v10  ;;  %v4681_v63 = vadd.f32 %v4680_v16, %v4675_v10  ;;  %v9467_v28 = vld [vmem:[#allocation20_spill] sm:$0xff] }
 0x70d   :  { %v4702_v13 = vadd.f32 %v4677_v52, %v9467_v28  ;;  %v9468_v44 = vld [vmem:[#allocation21_spill] sm:$0xff] }
 0x70e   :  { %v4729_v59 = vmul.f32 %v9203_v57, %v9203_v57 }
 0x729   :  { %v4442_v6 = vpop.f32.mrb[120].mxu1  ;;  %v4486_v18 = vpop.f32.mrb[92].mxu0 }
 0x72a   :  { %v5606_v11 = vpop.f32.mrb[121].mxu1  ;;  %v5626_v15 = vpop.f32.mrb[93].mxu0  ;;  %v4684_v29 = vsub.f32 0.0, %v4442_v6  ;;  %v4689_v60 = vsub.f32 0.0, %v4486_v18 }
 0x72b   :  { %v4445_v36 = vpop.f32.mrb[122].mxu1  ;;  %v4489_v2 = vpop.f32.mrb[94].mxu0  ;;  %v9470_v15 = vld [vmem:[#allocation24_spill] sm:$0xff] }
 0x72c   :  { %v5607_v38 = vpop.f32.mrb[123].mxu1  ;;  %v5627_v43 = vpop.f32.mrb[95].mxu0 }
 0x72d   :  { %v9471_v43 = vld [vmem:[#allocation25_spill] sm:$0xff] }
 0x749   :  { %v4530_v46 = vpop.f32.mrb[124].mxu1  ;;  %v4574_v24 = vpop.f32.mrb[96].mxu0 }
 0x74a   :  { %v4682_v45 = vadd.f32 %v4574_v24, %v4442_v6  ;;  %v4685_v47 = vadd.f32 %v4684_v29, %v4574_v24  ;;  %v5646_v0 = vpop.f32.mrb[125].mxu1  ;;  %v5666_v31 = vpop.f32.mrb[97].mxu0  ;;  %v4694_v49 = vsub.f32 0.0, %v4530_v46  ;;  %v4733_v6 = vadd.f32 %v9203_v57, %v9468_v44 }
 0x74b   :  { %v4533_v58 = vpop.f32.mrb[126].mxu1  ;;  %v4577_v27 = vpop.f32.mrb[98].mxu0 }
 0x74c   :  { %v4683_v7 = vadd.f32 %v4682_v45, %v4675_v10  ;;  %v4686_v23 = vadd.f32 %v4685_v47, %v4675_v10  ;;  %v5647_v51 = vpop.f32.mrb[127].mxu1  ;;  %v5667_v48 = vpop.f32.mrb[99].mxu0  ;;  %v9472_v27 = vld [vmem:[#allocation27_spill] sm:$0xff] }
 0x74e   :  { %v4698_v20 = vmul.f32 %v4686_v23, %v4683_v7  ;;  %v4705_v12 = vmul.f32 %v4683_v7, %v4677_v52  ;;  %v4706_v5 = vmul.f32 %v4683_v7, %v9203_v57  ;;  %v4721_v39 = vmul.f32 %v4686_v23, %v4677_v52 }
 0x74f   :  { %v4722_v32 = vmul.f32 %v4686_v23, %v9203_v57  ;;  %v4726_v36 = vadd.f32 %v4686_v23, %v9470_v15 }
 0x750   :  { %v4699_v21 = vadd.f32 %v4698_v20, %v4697_v53  ;;  %v4707_v34 = vadd.f32 %v4706_v5, %v4705_v12  ;;  %v4730_v42 = vadd.f32 %v4729_v59, %v4698_v20 }
 0x751   :  { %v4723_v62 = vadd.f32 %v4722_v32, %v4721_v39 }
 0x769   :  { %v4618_v19 = vpop.f32.mrb[128].mxu1  ;;  %v4662_v17 = vpop.f32.mrb[100].mxu0 }
 0x76a   :  { %v4687_v50 = vadd.f32 %v4618_v19, %v4486_v18  ;;  %v4690_v61 = vadd.f32 %v4689_v60, %v4618_v19  ;;  %v4692_v25 = vadd.f32 %v4662_v17, %v4530_v46  ;;  %v4695_v3 = vadd.f32 %v4694_v49, %v4662_v17  ;;  %v5686_v54 = vpop.f32.mrb[129].mxu1  ;;  %v5706_v4 = vpop.f32.mrb[101].mxu0  ;;  %v9469_v18 = vld [vmem:[#allocation23_spill] sm:$0xff] }
 0x76b   :  { %v4621_v8 = vpop.f32.mrb[130].mxu1  ;;  %v4665_v35 = vpop.f32.mrb[102].mxu0  ;;  %v4710_v11 = vadd.f32 %v4683_v7, %v9469_v18  ;;  %v4761_v49 = vmul.f32 %v4681_v63, %v4681_v63 }
 0x76c   :  { %v4688_v33 = vadd.f32 %v4687_v50, %v4675_v10  ;;  %v4691_v1 = vadd.f32 %v4690_v61, %v4675_v10  ;;  %v4693_v40 = vadd.f32 %v4692_v25, %v4675_v10  ;;  %v4696_v14 = vadd.f32 %v4695_v3, %v4675_v10  ;;  %v5687_v37 = vpop.f32.mrb[131].mxu1  ;;  %v5707_v26 = vpop.f32.mrb[103].mxu0  ;;  %v9473_v50 = vld [vmem:[#allocation26_spill] sm:$0xff]  ;;  %v9475_v3 = vld [vmem:[#allocation28_spill] sm:$0xff] }
 0x76d   :  { %v9474_v61 = vld [vmem:[#allocation22_spill] sm:$0xff] }
 0x76e   :  { %v4700_v2 = vmul.f32 %v4691_v1, %v4688_v33  ;;  %v4713_v38 = vmul.f32 %v4688_v33, %v4677_v52  ;;  %v4716_v16 = vmul.f32 %v4688_v33, %v4681_v63  ;;  %v4718_v55 = vadd.f32 %v4688_v33, %v9471_v43 }
 0x76f   :  { %v4736_v22 = vmul.f32 %v4688_v33, %v4686_v23  ;;  %v4744_v9 = vmul.f32 %v4691_v1, %v4677_v52  ;;  %v4747_v30 = vmul.f32 %v4691_v1, %v4681_v63  ;;  %v4752_v56 = vmul.f32 %v4691_v1, %v4683_v7 }
 0x770   :  { %v4701_v41 = vadd.f32 %v4700_v2, %v4699_v21  ;;  %v4708_v10 = vmul.f32 %v4696_v14, %v4688_v33  ;;  %v4714_v29 = vmul.f32 %v4693_v40, %v4683_v7  ;;  %v4724_v46 = vmul.f32 %v4693_v40, %v4691_v1 }
 0x771   :  { %v4731_v24 = vmul.f32 %v4696_v14, %v4693_v40  ;;  %v4737_v45 = vmul.f32 %v4693_v40, %v9203_v57  ;;  %v4739_v47 = vmul.f32 %v4693_v40, %v4681_v63  ;;  %v4741_v51 = vadd.f32 %v4693_v40, %v9472_v27 }
 0x772   :  { %v4703_v0 = vadd.f32 %v4702_v13, %v4701_v41  ;;  %v4709_v31 = vadd.f32 %v4708_v10, %v4707_v34  ;;  %v4715_v58 = vadd.f32 %v4714_v29, %v4713_v38  ;;  %v4725_v48 = vadd.f32 %v4724_v46, %v4723_v62 }
 0x773   :  { %v4732_v53 = vadd.f32 %v4731_v24, %v4730_v42  ;;  %v4738_v59 = vadd.f32 %v4737_v45, %v4736_v22  ;;  %v4745_v20 = vmul.f32 %v4696_v14, %v4686_v23  ;;  %v4753_v5 = vmul.f32 %v4696_v14, %v9203_v57 }
 0x774   :  { %4704 = vst [vmem:[#allocation13] sm:$0xff] %v4703_v0  ;;  %v4711_v52 = vadd.f32 %v4710_v11, %v4709_v31  ;;  %v4717_v12 = vadd.f32 %v4716_v16, %v4715_v58  ;;  %v4755_v7 = vmul.f32 %v4696_v14, %v4681_v63  ;;  %v4727_v39 = vadd.f32 %v4726_v36, %v4725_v48 }
 0x775   :  { %v4734_v32 = vadd.f32 %v4733_v6, %v4732_v53  ;;  %v4740_v21 = vadd.f32 %v4739_v47, %v4738_v59  ;;  %v4746_v60 = vadd.f32 %v4745_v20, %v4744_v9  ;;  %v4754_v19 = vadd.f32 %v4753_v5, %v4752_v56 }
 0x776   :  { %4712 = vst [vmem:[#allocation13 + $0x8] sm:$0xff] %v4711_v52  ;;  %v4719_v34 = vadd.f32 %v4718_v55, %v4717_v12  ;;  %v4760_v17 = vadd.f32 %v4731_v24, %v4700_v2  ;;  %v4749_v62 = vadd.f32 %v4691_v1, %v9473_v50  ;;  %4728 = vst [vmem:[#allocation13 + $0x18] sm:$0xff] %v4727_v39 }
 0x777   :  { %4735 = vst [vmem:[#allocation13 + $0x20] sm:$0xff] %v4734_v32  ;;  %v4742_v23 = vadd.f32 %v4741_v51, %v4740_v21  ;;  %v4748_v42 = vadd.f32 %v4747_v30, %v4746_v60  ;;  %v4763_v57 = vadd.f32 %v4681_v63, %v9474_v61  ;;  %v4756_v25 = vadd.f32 %v4755_v7, %v4754_v19 }
 0x778   :  { %v4757_v54 = vadd.f32 %v4696_v14, %v9475_v3  ;;  %v4762_v4 = vadd.f32 %v4761_v49, %v4760_v17  ;;  %4720 = vst [vmem:[#allocation13 + $0x10] sm:$0xff] %v4719_v34 }
 0x779   :  { %4743 = vst [vmem:[#allocation13 + $0x28] sm:$0xff] %v4742_v23  ;;  %v4750_v8 = vadd.f32 %v4749_v62, %v4748_v42 }
 0x77a   :  { %v4758_v35 = vadd.f32 %v4757_v54, %v4756_v25  ;;  %v4764_v33 = vadd.f32 %v4763_v57, %v4762_v4 }
 0x77b   :  { %4751 = vst [vmem:[#allocation13 + $0x30] sm:$0xff] %v4750_v8 }
 0x77c   :  { %4759 = vst [vmem:[#allocation13 + $0x38] sm:$0xff] %v4758_v35  ;;  %4765 = vst [vmem:[#allocation13 + $0x40] sm:$0xff] %v4764_v33 }
 0x77d   :  { %6312 = shalt.err (!%p6309_p10)
}
 0x77e   :  { %s6313_s17 = scalar_lea.hbm %s9248_s15, 1152 }
 0x77f   :  { %p6314_p11 = scmp.ne.s32.totalorder %s9248_s15, %s6313_s17  ;;  %p6317_p12 = scmp.lt.u32.totalorder %s6313_s17, %s9248_s15 }
 0x781   :  { %p6319_p13 = pnand %p6317_p12, %p6314_p11 }
 0x783   :  { %6322 = shalt.err (!%p6319_p13)
}
 0x784   :  { %4775 = dma.vmem_to_hbm [thread:$0]  %s4773_s26, 1152, %s9248_s15, [#allocation4]  }
 0x785   :  { %6331 = dma.done.wait [#allocation4], 1152  }
 0x786   :  { %6332 = vsyncadd [#allocation4], 4294966144 }
 0x787   :  { %4779 = vsyncpa [#allocation3], 1 }
 0x788   :  { %4780 = vsyncpa [#allocation6], 1 }
 0x789   :  { %4781 = vsyncpa [#allocation9], 1 }
 0x78a   :  { %4782 = vsyncpa [#allocation12], 1 }
 0x78b   :  { %4783 = vsyncpa [#allocation4], 1 }

</bundles_post_ra>
